<compile_context>
chip_gen: v6e
topology: v6e:2x2x1
jax: 0.10.0
libtpu: 0.0.40
codegen_flags: <defaults>
</compile_context>

<pallas_src>
import functools
import math

import jax
import jax.numpy as jnp
import numpy as np
from jax import lax
from jax.experimental import pallas as pl
from jax.experimental.pallas import tpu as pltpu

_LANE = 128
_SUBLANE = 8


def _round_up(x, m):
    return (x + m - 1) // m * m


# ----------------------------------------------------------------------------
# Fused episode kernel:
#   backbone:  (patches @ Wconv + b) -> ReLU -> avg-pool (MXU) -> proj
#   attention: episode-wide scaled dot-product attention with residual
# All feature dims are zero-padded to 128 lanes; the attention scale is folded
# into Wq at weight-prep time.
# ----------------------------------------------------------------------------
def _episode_kernel(patches_ref, pool_ref, wconv_ref, bconv_ref,
                    wproj_ref, bproj_ref, wqkv_ref, wo_ref, out_ref, *, t_real):
    # patches_ref: (T_pad*HW, Kp) bf16     pool_ref:  (T_pad, T_pad*HW) bf16
    # wconv_ref:   (Kp, Hp) bf16           bconv_ref: (1, Hp) f32
    # wproj_ref:   (Hp, Fp) bf16           bproj_ref: (1, Fp) f32
    # wqkv_ref:    (Fp, 3*Fp) bf16         wo_ref:    (Fp, Fp) bf16
    # out_ref:     (T_pad, Fp) f32
    fp = out_ref.shape[-1]

    # ---- Backbone ----
    h = jnp.dot(patches_ref[...], wconv_ref[...],
                preferred_element_type=jnp.float32) + bconv_ref[...]
    h = jnp.maximum(h, 0.0)                                    # ReLU (f32)
    # Global average pool on the MXU: pool_ref is a constant block-diagonal
    # averaging matrix (1/HW per image block) -> no big sublane reduction.
    pooled = jnp.dot(pool_ref[...], h.astype(jnp.bfloat16),
                     preferred_element_type=jnp.float32)       # (T_pad, Hp)
    feats = jnp.dot(pooled.astype(jnp.bfloat16), wproj_ref[...],
                    preferred_element_type=jnp.float32) + bproj_ref[...]  # (T_pad, Fp)

    # ---- Episode-wide attention (scale already folded into Wq) ----
    x_b = feats.astype(jnp.bfloat16)
    qkv = jnp.dot(x_b, wqkv_ref[...],
                  preferred_element_type=jnp.float32)          # (T_pad, 3*Fp)
    q = qkv[:, :fp]
    k = qkv[:, fp:2 * fp]
    v = qkv[:, 2 * fp:]

    # scores without materializing k.T: contract on the last dim of both operands
    s = lax.dot_general(q.astype(jnp.bfloat16), k.astype(jnp.bfloat16),
                        dimension_numbers=(((1,), (1,)), ((), ())),
                        preferred_element_type=jnp.float32)    # (T_pad, T_pad)

    t_pad = s.shape[0]
    if t_real < t_pad:
        # Padded batch rows carry garbage features (bias -> ReLU -> proj is
        # nonzero on zero images); mask them out of the key/value set so they
        # cannot corrupt the softmax.  Static branch: skipped when T == T_pad.
        col_ids = lax.broadcasted_iota(jnp.int32, s.shape, 1)
        s = jnp.where(col_ids < t_real, s, -1e30)

    m = jnp.max(s, axis=-1, keepdims=True)
    p = jnp.exp(s - m)                                         # f32 softmax math
    denom = jnp.sum(p, axis=-1, keepdims=True)
    attn = p * pl.reciprocal(denom, approx=True)

    a = jnp.dot(attn.astype(jnp.bfloat16), v.astype(jnp.bfloat16),
                preferred_element_type=jnp.float32)            # (T_pad, Fp)
    out = jnp.dot(a.astype(jnp.bfloat16), wo_ref[...],
                  preferred_element_type=jnp.float32) + feats  # residual, f32
    out_ref[...] = out.astype(out_ref.dtype)


def episode_forward(patches2d, pool, prep, *, t_pad, t_real):
    fp = prep["wo"].shape[-1]
    kernel = functools.partial(_episode_kernel, t_real=t_real)
    return pl.pallas_call(
        kernel,
        out_shape=jax.ShapeDtypeStruct((t_pad, fp), jnp.float32),
        grid_spec=pltpu.PrefetchScalarGridSpec(
            num_scalar_prefetch=0,
            grid=(1,),                       # one step: whole episode in VMEM
            in_specs=[
                pl.BlockSpec(patches2d.shape, lambda i: (0, 0)),
                pl.BlockSpec(pool.shape, lambda i: (0, 0)),
                pl.BlockSpec(prep["wconv"].shape, lambda i: (0, 0)),
                pl.BlockSpec(prep["bconv"].shape, lambda i: (0, 0)),
                pl.BlockSpec(prep["wproj"].shape, lambda i: (0, 0)),
                pl.BlockSpec(prep["bproj"].shape, lambda i: (0, 0)),
                pl.BlockSpec(prep["wqkv"].shape, lambda i: (0, 0)),
                pl.BlockSpec(prep["wo"].shape, lambda i: (0, 0)),
            ],
            out_specs=pl.BlockSpec((t_pad, fp), lambda i: (0, 0)),
        ),
        compiler_params=pltpu.CompilerParams(
            dimension_semantics=("arbitrary",)),
    )(patches2d, pool, prep["wconv"], prep["bconv"],
      prep["wproj"], prep["bproj"], prep["wqkv"], prep["wo"])


# ----------------------------------------------------------------------------
# Host-side im2col for a 3x3 conv with padding=1 (NCHW input).
# Patch column ordering is (channel-major, kernel-offset-minor), matching the
# wconv (in_ch*9, hidden) row ordering used by init_params.  The patch axis is
# zero-padded to k_pad lanes so the in-kernel LHS is lane-dense.
# ----------------------------------------------------------------------------
def im2col_3x3(x_nchw, k_pad):
    B, C, H, W = x_nchw.shape
    xp = jnp.pad(x_nchw, ((0, 0), (0, 0), (1, 1), (1, 1)))
    cols = [xp[:, :, dy:dy + H, dx:dx + W] for dy in range(3) for dx in range(3)]
    patches = jnp.stack(cols, axis=2)                          # (B, C, 9, H, W)
    patches = patches.transpose(0, 3, 4, 1, 2).reshape(B, H * W, C * 9)
    if k_pad > C * 9:
        patches = jnp.pad(patches, ((0, 0), (0, 0), (0, k_pad - C * 9)))
    return patches                                             # (B, HW, k_pad)


# ----------------------------------------------------------------------------
# One-time weight prep (hoisted OFF the per-call hot path): zero-pad feature
# dims to 128 lanes, fold the attention scale into Wq, fuse Q/K/V, cast matmul
# operands to bf16.  Padded rows/columns are exactly zero, which keeps the
# padded matmuls bit-equivalent to the unpadded math.
# ----------------------------------------------------------------------------
def prepare_params(params, *, feat_dim):
    K, hidden = params["wconv"].shape
    Kp = _round_up(K, _LANE)
    Hp = _round_up(hidden, _LANE)
    Fp = _round_up(feat_dim, _LANE)

    def pad2(w, r, c):
        return jnp.pad(w, ((0, r - w.shape[0]), (0, c - w.shape[1])))

    scale = 1.0 / math.sqrt(float(feat_dim))
    wq_scaled = params["wq"] * scale                           # fold scale into Wq
    wqkv = jnp.concatenate([pad2(wq_scaled, Fp, Fp),
                            pad2(params["wk"], Fp, Fp),
                            pad2(params["wv"], Fp, Fp)], axis=1)
    return {
        "wconv": pad2(params["wconv"], Kp, Hp).astype(jnp.bfloat16),
        "bconv": pad2(params["bconv"], 1, Hp).astype(jnp.float32),
        "wproj": pad2(params["wproj"], Hp, Fp).astype(jnp.bfloat16),
        "bproj": pad2(params["bproj"], 1, Fp).astype(jnp.float32),
        "wqkv": wqkv.astype(jnp.bfloat16),                     # (Fp, 3*Fp)
        "wo": pad2(params["wo"], Fp, Fp).astype(jnp.bfloat16),
    }


# ----------------------------------------------------------------------------
# CrossAttention forward (episode)
# ----------------------------------------------------------------------------
def cross_attention_forward(support_images, query_images, prep,
                            *, n_way, n_shot, n_query, feat_dim):
    del n_query  # split only needs n_way * n_shot
    Kp = prep["wconv"].shape[0]

    # Shared backbone: support + query go through in one batched pass.
    images = jnp.concatenate([support_images, query_images], axis=0)  # (B, C, H, W)
    B = images.shape[0]
    H, W = images.shape[2], images.shape[3]
    HW = H * W
    B_pad = _round_up(B, _SUBLANE)
    if B_pad != B:
        images = jnp.pad(images, ((0, B_pad - B), (0, 0), (0, 0), (0, 0)))

    patches = im2col_3x3(images, Kp)                          # (B_pad, HW, Kp)
    patches2d = patches.reshape(B_pad * HW, Kp).astype(jnp.bfloat16)

    # Constant block-diagonal averaging matrix (numpy at trace time -> baked
    # into the executable as a constant): pooled = pool @ relu(conv).
    pool = jnp.asarray(
        np.kron(np.eye(B_pad, dtype=np.float32),
                np.full((1, HW), 1.0 / HW, dtype=np.float32)),
        dtype=jnp.bfloat16)                                   # (B_pad, B_pad*HW)

    # y_shot (support labels) of the reference is unused by this synthetic,
    # label-agnostic attention (see TODO at top of file).

    tx = episode_forward(patches2d, pool, prep, t_pad=B_pad, t_real=B)  # (B_pad, Fp)
    tx = tx[:B, :feat_dim]                                    # drop batch + lane pad

    split = n_way * n_shot
    return tx[:split], tx[split:]


# ----------------------------------------------------------------------------
# Pure-JAX f32 reference (for tolerance testing only).
# ----------------------------------------------------------------------------
def reference_forward(support_images, query_images, params,
                      *, n_way, n_shot, feat_dim):
    images = jnp.concatenate([support_images, query_images], axis=0)
    C = images.shape[1]
    patches = im2col_3x3(images, C * 9)                       # (B, HW, C*9)
    h = jnp.maximum(
        jnp.einsum("bpk,kh->bph", patches, params["wconv"]) + params["bconv"], 0.0)
    pooled = h.mean(axis=1)
    feats = pooled @ params["wproj"] + params["bproj"]
    scale = 1.0 / math.sqrt(float(feat_dim))
    q = feats @ params["wq"]
    k = feats @ params["wk"]
    v = feats @ params["wv"]
    attn = jax.nn.softmax((q @ k.T) * scale, axis=-1)
    out = attn @ v @ params["wo"] + feats
    split = n_way * n_shot
    return out[:split], out[split:]


def init_params(key, in_ch, hidden, feat_dim):
    ks = jax.random.split(key, 6)
    k_conv = 1.0 / math.sqrt(in_ch * 9)
    k_proj = 1.0 / math.sqrt(hidden)
    k_attn = 1.0 / math.sqrt(feat_dim)
    return {
        "wconv": jax.random.uniform(ks[0], (in_ch * 9, hidden), jnp.float32,
                                    -k_conv, k_conv),
        "bconv": jnp.zeros((1, hidden), jnp.float32),
        "wproj": jax.random.uniform(ks[1], (hidden, feat_dim), jnp.float32,
                                    -k_proj, k_proj),
        "bproj": jnp.zeros((1, feat_dim), jnp.float32),
        "wq": jax.random.uniform(ks[2], (feat_dim, feat_dim), jnp.float32,
                                 -k_attn, k_attn),
        "wk": jax.random.uniform(ks[3], (feat_dim, feat_dim), jnp.float32,
                                 -k_attn, k_attn),
        "wv": jax.random.uniform(ks[4], (feat_dim, feat_dim), jnp.float32,
                                 -k_attn, k_attn),
        "wo": jax.random.uniform(ks[5], (feat_dim, feat_dim), jnp.float32,
                                 -k_attn, k_attn),
    }


if __name__ == "__main__":
    # Small episode: n_way=4, n_shot=1, n_query=3  (reference hardcodes 20/1/15;
    # split semantics identical, just smaller for the example).
    n_way, n_shot, n_query = 4, 1, 3
    C, H, W = 4, 16, 16
    hidden, feat_dim = 32, 32
    M = n_way * n_shot
    N = n_way * n_query

    key = jax.random.PRNGKey(0)
    k_sup, k_qry, k_par = jax.random.split(key, 3)
    support_images = jax.random.normal(k_sup, (M, C, H, W), jnp.float32)
    query_images = jax.random.normal(k_qry, (N, C, H, W), jnp.float32)
    params = init_params(k_par, C, hidden, feat_dim)

    prep = prepare_params(params, feat_dim=feat_dim)  # one-time, off the hot path

    fwd = jax.jit(functools.partial(cross_attention_forward,
                                    n_way=n_way, n_shot=n_shot, n_query=n_query,
                                    feat_dim=feat_dim))
    support_feats, query_feats = fwd(support_images, query_images, prep)
    jax.block_until_ready((support_feats, query_feats))

    assert support_feats.shape == (M, feat_dim)
    assert query_feats.shape == (N, feat_dim)
    assert jnp.all(jnp.isfinite(support_feats)) and jnp.all(jnp.isfinite(query_feats))

    # Tolerance check vs. pure-JAX f32 reference (bf16 MXU feeds + approx
    # reciprocal give ~1e-3 relative error; tolerances kept loose).
    ref_s, ref_q = reference_forward(support_images, query_images, params,
                                     n_way=n_way, n_shot=n_shot, feat_dim=feat_dim)
    np.testing.assert_allclose(np.asarray(support_feats), np.asarray(ref_s),
                               rtol=5e-2, atol=5e-2)
    np.testing.assert_allclose(np.asarray(query_feats), np.asarray(ref_q),
                               rtol=5e-2, atol=5e-2)

    print("KERNEL_OK")
</pallas_src>

<mosaic_0001>
module attributes {stable_mosaic.version = 11 : i64} {
  func.func @_episode_kernel(%arg0: i32, %arg1: memref<4096x128xbf16, #tpu.memory_space<vmem>>, %arg2: memref<16x4096xbf16, #tpu.memory_space<vmem>>, %arg3: memref<128x128xbf16, #tpu.memory_space<vmem>>, %arg4: memref<1x128xf32, #tpu.memory_space<vmem>>, %arg5: memref<128x128xbf16, #tpu.memory_space<vmem>>, %arg6: memref<1x128xf32, #tpu.memory_space<vmem>>, %arg7: memref<128x384xbf16, #tpu.memory_space<vmem>>, %arg8: memref<128x128xbf16, #tpu.memory_space<vmem>>, %arg9: memref<16x128xf32, #tpu.memory_space<vmem>>) attributes {dimension_semantics = [#tpu.dimension_semantics<arbitrary>], iteration_bounds = array<i64: 1>, scalar_prefetch = 0 : i64, scratch_operands = 0 : i64, tpu.core_type = #tpu.core_type<tc>, window_params = [{pipeline_mode = #tpu.pipeline_mode<synchronous>, transform_indices = @transform_0, window_bounds = array<i64: 4096, 128>}, {pipeline_mode = #tpu.pipeline_mode<synchronous>, transform_indices = @transform_1, window_bounds = array<i64: 16, 4096>}, {pipeline_mode = #tpu.pipeline_mode<synchronous>, transform_indices = @transform_2, window_bounds = array<i64: 128, 128>}, {pipeline_mode = #tpu.pipeline_mode<synchronous>, transform_indices = @transform_3, window_bounds = array<i64: 1, 128>}, {pipeline_mode = #tpu.pipeline_mode<synchronous>, transform_indices = @transform_4, window_bounds = array<i64: 128, 128>}, {pipeline_mode = #tpu.pipeline_mode<synchronous>, transform_indices = @transform_5, window_bounds = array<i64: 1, 128>}, {pipeline_mode = #tpu.pipeline_mode<synchronous>, transform_indices = @transform_6, window_bounds = array<i64: 128, 384>}, {pipeline_mode = #tpu.pipeline_mode<synchronous>, transform_indices = @transform_7, window_bounds = array<i64: 128, 128>}, {pipeline_mode = #tpu.pipeline_mode<synchronous>, transform_indices = @transform_8, window_bounds = array<i64: 16, 128>}]} {
    %c0 = arith.constant 0 : index
    %c0_0 = arith.constant 0 : index
    %0 = vector.load %arg1[%c0, %c0_0] : memref<4096x128xbf16, #tpu.memory_space<vmem>>, vector<4096x128xbf16>
    %c0_1 = arith.constant 0 : index
    %c0_2 = arith.constant 0 : index
    %1 = vector.load %arg3[%c0_1, %c0_2] : memref<128x128xbf16, #tpu.memory_space<vmem>>, vector<128x128xbf16>
    %cst = arith.constant dense<0.000000e+00> : vector<4096x128xf32>
    %2 = tpu.matmul %0, %1, %cst {dimension_numbers = #tpu.dot_dimension_numbers<[1], [0], [0], [1], [0, 0, 1, 1], [], []>} : vector<4096x128xbf16>, vector<128x128xbf16>, vector<4096x128xf32> -> vector<4096x128xf32>
    %c0_3 = arith.constant 0 : index
    %c0_4 = arith.constant 0 : index
    %3 = vector.load %arg4[%c0_3, %c0_4] : memref<1x128xf32, #tpu.memory_space<vmem>>, vector<1x128xf32>
    %4 = vector.broadcast %3 : vector<1x128xf32> to vector<4096x128xf32>
    %5 = arith.addf %2, %4 : vector<4096x128xf32>
    %cst_5 = arith.constant 0.000000e+00 : f32
    %6 = vector.broadcast %cst_5 : f32 to vector<4096x128xf32>
    %7 = arith.maximumf %5, %6 : vector<4096x128xf32>
    %c0_6 = arith.constant 0 : index
    %c0_7 = arith.constant 0 : index
    %8 = vector.load %arg2[%c0_6, %c0_7] : memref<16x4096xbf16, #tpu.memory_space<vmem>>, vector<16x4096xbf16>
    %9 = arith.truncf %7 : vector<4096x128xf32> to vector<4096x128xbf16>
    %cst_8 = arith.constant dense<0.000000e+00> : vector<16x128xf32>
    %10 = tpu.matmul %8, %9, %cst_8 {dimension_numbers = #tpu.dot_dimension_numbers<[1], [0], [0], [1], [0, 0, 1, 1], [], []>} : vector<16x4096xbf16>, vector<4096x128xbf16>, vector<16x128xf32> -> vector<16x128xf32>
    %11 = arith.truncf %10 : vector<16x128xf32> to vector<16x128xbf16>
    %c0_9 = arith.constant 0 : index
    %c0_10 = arith.constant 0 : index
    %12 = vector.load %arg5[%c0_9, %c0_10] : memref<128x128xbf16, #tpu.memory_space<vmem>>, vector<128x128xbf16>
    %cst_11 = arith.constant dense<0.000000e+00> : vector<16x128xf32>
    %13 = tpu.matmul %11, %12, %cst_11 {dimension_numbers = #tpu.dot_dimension_numbers<[1], [0], [0], [1], [0, 0, 1, 1], [], []>} : vector<16x128xbf16>, vector<128x128xbf16>, vector<16x128xf32> -> vector<16x128xf32>
    %c0_12 = arith.constant 0 : index
    %c0_13 = arith.constant 0 : index
    %14 = vector.load %arg6[%c0_12, %c0_13] : memref<1x128xf32, #tpu.memory_space<vmem>>, vector<1x128xf32>
    %15 = vector.broadcast %14 : vector<1x128xf32> to vector<16x128xf32>
    %16 = arith.addf %13, %15 : vector<16x128xf32>
    %17 = arith.truncf %16 : vector<16x128xf32> to vector<16x128xbf16>
    %c0_14 = arith.constant 0 : index
    %c0_15 = arith.constant 0 : index
    %18 = vector.load %arg7[%c0_14, %c0_15] : memref<128x384xbf16, #tpu.memory_space<vmem>>, vector<128x384xbf16>
    %cst_16 = arith.constant dense<0.000000e+00> : vector<16x384xf32>
    %19 = tpu.matmul %17, %18, %cst_16 {dimension_numbers = #tpu.dot_dimension_numbers<[1], [0], [0], [1], [0, 0, 1, 1], [], []>} : vector<16x128xbf16>, vector<128x384xbf16>, vector<16x384xf32> -> vector<16x384xf32>
    %20 = vector.extract_strided_slice %19 {offsets = [0, 0], sizes = [16, 128], strides = [1, 1]} : vector<16x384xf32> to vector<16x128xf32>
    %21 = vector.extract_strided_slice %19 {offsets = [0, 128], sizes = [16, 128], strides = [1, 1]} : vector<16x384xf32> to vector<16x128xf32>
    %22 = vector.extract_strided_slice %19 {offsets = [0, 256], sizes = [16, 128], strides = [1, 1]} : vector<16x384xf32> to vector<16x128xf32>
    %23 = arith.truncf %20 : vector<16x128xf32> to vector<16x128xbf16>
    %24 = arith.truncf %21 : vector<16x128xf32> to vector<16x128xbf16>
    %cst_17 = arith.constant dense<0.000000e+00> : vector<16x16xf32>
    %25 = tpu.matmul %23, %24, %cst_17 {dimension_numbers = #tpu.dot_dimension_numbers<[1], [1], [0], [0], [0, 0, 1, 0], [], []>} : vector<16x128xbf16>, vector<16x128xbf16>, vector<16x16xf32> -> vector<16x16xf32>
    %cst_18 = arith.constant dense<0xFF800000> : vector<16xf32>
    %26 = vector.multi_reduction <maximumf>, %25, %cst_18 [1] : vector<16x16xf32> to vector<16xf32>
    %27 = vector.shape_cast %26 : vector<16xf32> to vector<16x1xf32>
    %28 = vector.broadcast %27 : vector<16x1xf32> to vector<16x16xf32>
    %29 = arith.subf %25, %28 : vector<16x16xf32>
    %30 = math.exp %29 : vector<16x16xf32>
    %cst_19 = arith.constant dense<0.000000e+00> : vector<16xf32>
    %31 = vector.multi_reduction <add>, %30, %cst_19 [1] : vector<16x16xf32> to vector<16xf32>
    %32 = vector.shape_cast %31 : vector<16xf32> to vector<16x1xf32>
    %33 = tpu.reciprocal %32 {approx = true} : vector<16x1xf32> -> vector<16x1xf32>
    %34 = vector.broadcast %33 : vector<16x1xf32> to vector<16x16xf32>
    %35 = arith.mulf %30, %34 : vector<16x16xf32>
    %36 = arith.truncf %35 : vector<16x16xf32> to vector<16x16xbf16>
    %37 = arith.truncf %22 : vector<16x128xf32> to vector<16x128xbf16>
    %cst_20 = arith.constant dense<0.000000e+00> : vector<16x128xf32>
    %38 = tpu.matmul %36, %37, %cst_20 {dimension_numbers = #tpu.dot_dimension_numbers<[1], [0], [0], [1], [0, 0, 1, 1], [], []>} : vector<16x16xbf16>, vector<16x128xbf16>, vector<16x128xf32> -> vector<16x128xf32>
    %39 = arith.truncf %38 : vector<16x128xf32> to vector<16x128xbf16>
    %c0_21 = arith.constant 0 : index
    %c0_22 = arith.constant 0 : index
    %40 = vector.load %arg8[%c0_21, %c0_22] : memref<128x128xbf16, #tpu.memory_space<vmem>>, vector<128x128xbf16>
    %cst_23 = arith.constant dense<0.000000e+00> : vector<16x128xf32>
    %41 = tpu.matmul %39, %40, %cst_23 {dimension_numbers = #tpu.dot_dimension_numbers<[1], [0], [0], [1], [0, 0, 1, 1], [], []>} : vector<16x128xbf16>, vector<128x128xbf16>, vector<16x128xf32> -> vector<16x128xf32>
    %42 = arith.addf %41, %16 : vector<16x128xf32>
    %c0_24 = arith.constant 0 : index
    %c0_25 = arith.constant 0 : index
    %43 = vector.load %arg9[%c0_24, %c0_25] : memref<16x128xf32, #tpu.memory_space<vmem>>, vector<16x128xf32>
    tpu.vector_store %arg9[%c0_24, %c0_25], %42 {strides = array<i32>} : memref<16x128xf32, #tpu.memory_space<vmem>>, vector<16x128xf32>,
    return
  }
  func.func @transform_0(%arg0: i32) -> (i32, i32) {
    %c0_i32 = arith.constant 0 : i32
    %c0_i32_0 = arith.constant 0 : i32
    %c0_i32_1 = arith.constant 0 : i32
    return %c0_i32, %c0_i32_0 : i32, i32
  }
  func.func @transform_1(%arg0: i32) -> (i32, i32) {
    %c0_i32 = arith.constant 0 : i32
    %c0_i32_0 = arith.constant 0 : i32
    %c0_i32_1 = arith.constant 0 : i32
    return %c0_i32, %c0_i32_0 : i32, i32
  }
  func.func @transform_2(%arg0: i32) -> (i32, i32) {
    %c0_i32 = arith.constant 0 : i32
    %c0_i32_0 = arith.constant 0 : i32
    %c0_i32_1 = arith.constant 0 : i32
    return %c0_i32, %c0_i32_0 : i32, i32
  }
  func.func @transform_3(%arg0: i32) -> (i32, i32) {
    %c0_i32 = arith.constant 0 : i32
    %c0_i32_0 = arith.constant 0 : i32
    %c0_i32_1 = arith.constant 0 : i32
    return %c0_i32, %c0_i32_0 : i32, i32
  }
  func.func @transform_4(%arg0: i32) -> (i32, i32) {
    %c0_i32 = arith.constant 0 : i32
    %c0_i32_0 = arith.constant 0 : i32
    %c0_i32_1 = arith.constant 0 : i32
    return %c0_i32, %c0_i32_0 : i32, i32
  }
  func.func @transform_5(%arg0: i32) -> (i32, i32) {
    %c0_i32 = arith.constant 0 : i32
    %c0_i32_0 = arith.constant 0 : i32
    %c0_i32_1 = arith.constant 0 : i32
    return %c0_i32, %c0_i32_0 : i32, i32
  }
  func.func @transform_6(%arg0: i32) -> (i32, i32) {
    %c0_i32 = arith.constant 0 : i32
    %c0_i32_0 = arith.constant 0 : i32
    %c0_i32_1 = arith.constant 0 : i32
    return %c0_i32, %c0_i32_0 : i32, i32
  }
  func.func @transform_7(%arg0: i32) -> (i32, i32) {
    %c0_i32 = arith.constant 0 : i32
    %c0_i32_0 = arith.constant 0 : i32
    %c0_i32_1 = arith.constant 0 : i32
    return %c0_i32, %c0_i32_0 : i32, i32
  }
  func.func @transform_8(%arg0: i32) -> (i32, i32) {
    %c0_i32 = arith.constant 0 : i32
    %c0_i32_0 = arith.constant 0 : i32
    %c0_i32_1 = arith.constant 0 : i32
    return %c0_i32, %c0_i32_0 : i32, i32
  }
}

</mosaic_0001>

<bundles_post_ra>
// kernel: cross_attention_forward.1
= control target key start
LH: loop header
LB: loop body
LE: loop exit
PB: predicated region body
PF: predicated region fallthrough
CT: control target
= control target key end

     0   :  { %vm8358_vm0 = vmmov 0   ;;  %vm6247_vm1 = vcmask 130048   ;;  %s11024_s2 = inlined_call_operand.vmem [shape: bf16[128,128], index: 2, kind: input, shape index: {}]   ;;  %s11025_s0 = inlined_call_operand.vmem [shape: bf16[4096,128], index: 0, kind: input, shape index: {}]   ;;  %s11026_s3 = inlined_call_operand.vmem [shape: f32[1,128], index: 3, kind: input, shape index: {}]   ;;  %s11027_s1 = inlined_call_operand.vmem [shape: bf16[16,4096], index: 1, kind: input, shape index: {}]   ;;  %s11028_s4 = inlined_call_operand.vmem [shape: bf16[128,128], index: 4, kind: input, shape index: {}]   ;;  %s11029_s6 = inlined_call_operand.vmem [shape: bf16[128,384], index: 6, kind: input, shape index: {}]   ;;  %s11030_s5 = inlined_call_operand.vmem [shape: f32[1,128], index: 5, kind: input, shape index: {}]   ;;  %s11031_s7 = inlined_call_operand.vmem [shape: bf16[128,128], index: 7, kind: input, shape index: {}]   ;;  %s11032_s8 = inlined_call_operand.vmem [shape: f32[16,128], index: 8, kind: output, shape index: {}]  }
   0x1   :  { %v8033_v0 = vld [vmem:[%s11024_s2 + $0x38] sm:$0xff]   ;;  %v8034_v1 = vld [vmem:[%s11024_s2 + $0x30] sm:$0xff]   ;;  %v8035_v2 = vld [vmem:[%s11024_s2 + $0x28] sm:$0xff]  }
   0x2   :  { %7414 = vmatprep.subr.bf16.mxu0 %v8033_v0  ;;  %8014 = vmatprep.subr.bf16.mxu1 %v8033_v0  ;;  %v8036_v3 = vld [vmem:[%s11024_s2 + $0x20] sm:$0xff]   ;;  %v8037_v5 = vld [vmem:[%s11024_s2 + $0x18] sm:$0xff]   ;;  %v8038_v6 = vld [vmem:[%s11024_s2 + $0x10] sm:$0xff]  }
   0x3   :  { %7415 = vmatpush3.bf16.msra.mxu0 %v8033_v0  ;;  %8022 = vmatpush3.bf16.msra.mxu1 %v8033_v0  ;;  %v8041_v4 = vld [vmem:[%s11025_s0] sm:$0xff]   ;;  %v8039_v7 = vld [vmem:[%s11024_s2 + $0x8] sm:$0xff]   ;;  %v8043_v10 = vld [vmem:[%s11025_s0 + $0x10] sm:$0xff]  }
   0x4   :  { %7416 = vmatprep.subr.bf16.mxu0 %v8034_v1  ;;  %8015 = vmatprep.subr.bf16.mxu1 %v8034_v1  ;;  %v8040_v8 = vld [vmem:[%s11024_s2] sm:$0xff]   ;;  %v8042_v9 = vld [vmem:[%s11025_s0 + $0x8] sm:$0xff]   ;;  %v8044_v11 = vld [vmem:[%s11025_s0 + $0x18] sm:$0xff]  }
   0x5   :  { %7430 = vmatprep.mubr.bf16.mxu0 %v8041_v4  ;;  %v8045_v12 = vld [vmem:[%s11025_s0 + $0x20] sm:$0xff]   ;;  %v8076_v14 = vld [vmem:[%s11025_s0 + $0x688] sm:$0xff]   ;;  %v8079_v16 = vld [vmem:[%s11025_s0 + $0x690] sm:$0xff]  }
   0x6   :  { %v8075_v13 = vld [vmem:[%s11025_s0 + $0x680] sm:$0xff]   ;;  %v8046_v15 = vld [vmem:[%s11025_s0 + $0x28] sm:$0xff]   ;;  %v8047_v17 = vld [vmem:[%s11025_s0 + $0x30] sm:$0xff]  }
   0x7   :  { %7417 = vmatpush3.bf16.msra.mxu0 %v8034_v1  ;;  %8023 = vmatpush3.bf16.msra.mxu1 %v8034_v1  ;;  %v8080_v18 = vld [vmem:[%s11025_s0 + $0x698] sm:$0xff]   ;;  %v8083_v19 = vld [vmem:[%s11025_s0 + $0x6a0] sm:$0xff]   ;;  %v8084_v22 = vld [vmem:[%s11025_s0 + $0x6a8] sm:$0xff]  }
   0x8   :  { %7418 = vmatprep.subr.bf16.mxu0 %v8035_v2  ;;  %8016 = vmatprep.subr.bf16.mxu1 %v8035_v2  ;;  %v8048_v20 = vld [vmem:[%s11025_s0 + $0x38] sm:$0xff]   ;;  %v8049_v21 = vld [vmem:[%s11025_s0 + $0x40] sm:$0xff]   ;;  %v8087_v23 = vld [vmem:[%s11025_s0 + $0x6b0] sm:$0xff]  }
   0x9   :  { %7846 = vmatprep.mubr.bf16.mxu1 %v8075_v13  ;;  %v8050_v24 = vld [vmem:[%s11025_s0 + $0x48] sm:$0xff]   ;;  %v8051_v25 = vld [vmem:[%s11025_s0 + $0x50] sm:$0xff]   ;;  %v8088_v26 = vld [vmem:[%s11025_s0 + $0x6b8] sm:$0xff]  }
   0xa   :  { %v8091_v27 = vld [vmem:[%s11025_s0 + $0x6c0] sm:$0xff]   ;;  %v8052_v28 = vld [vmem:[%s11025_s0 + $0x58] sm:$0xff]   ;;  %v8092_v30 = vld [vmem:[%s11025_s0 + $0x6c8] sm:$0xff]  }
   0xb   :  { %7419 = vmatpush3.bf16.msra.mxu0 %v8035_v2  ;;  %8024 = vmatpush3.bf16.msra.mxu1 %v8035_v2  ;;  %v8053_v29 = vld [vmem:[%s11025_s0 + $0x60] sm:$0xff]   ;;  %v8095_v31 = vld [vmem:[%s11025_s0 + $0x6d0] sm:$0xff]   ;;  %v8054_v32 = vld [vmem:[%s11025_s0 + $0x68] sm:$0xff]  }
   0xc   :  { %7420 = vmatprep.subr.bf16.mxu0 %v8036_v3  ;;  %8017 = vmatprep.subr.bf16.mxu1 %v8036_v3  ;;  %v8055_v33 = vld [vmem:[%s11025_s0 + $0x70] sm:$0xff]   ;;  %v8096_v34 = vld [vmem:[%s11025_s0 + $0x6d8] sm:$0xff]   ;;  %v8099_v35 = vld [vmem:[%s11025_s0 + $0x6e0] sm:$0xff]  }
   0xd   :  { %v8056_v36 = vld [vmem:[%s11025_s0 + $0x78] sm:$0xff]   ;;  %v8057_v37 = vld [vmem:[%s11025_s0 + $0x80] sm:$0xff]   ;;  %v8100_v38 = vld [vmem:[%s11025_s0 + $0x6e8] sm:$0xff]  }
   0xe   :  { %v8103_v39 = vld [vmem:[%s11025_s0 + $0x6f0] sm:$0xff]   ;;  %v8058_v40 = vld [vmem:[%s11025_s0 + $0x88] sm:$0xff]   ;;  %v8104_v42 = vld [vmem:[%s11025_s0 + $0x6f8] sm:$0xff]  }
   0xf   :  { %7421 = vmatpush3.bf16.msra.mxu0 %v8036_v3  ;;  %8025 = vmatpush3.bf16.msra.mxu1 %v8036_v3  ;;  %v8059_v41 = vld [vmem:[%s11025_s0 + $0x90] sm:$0xff]   ;;  %v8107_v43 = vld [vmem:[%s11025_s0 + $0x700] sm:$0xff]   ;;  %v8060_v44 = vld [vmem:[%s11025_s0 + $0x98] sm:$0xff]  }
  0x10   :  { %7422 = vmatprep.subr.bf16.mxu0 %v8037_v5  ;;  %8018 = vmatprep.subr.bf16.mxu1 %v8037_v5  ;;  %v8061_v45 = vld [vmem:[%s11025_s0 + $0xa0] sm:$0xff]   ;;  %v8108_v46 = vld [vmem:[%s11025_s0 + $0x708] sm:$0xff]   ;;  %v8111_v47 = vld [vmem:[%s11025_s0 + $0x710] sm:$0xff]  }
  0x11   :  { %v8062_v48 = vld [vmem:[%s11025_s0 + $0xa8] sm:$0xff]   ;;  %v8063_v49 = vld [vmem:[%s11025_s0 + $0xb0] sm:$0xff]   ;;  %v8112_v50 = vld [vmem:[%s11025_s0 + $0x718] sm:$0xff]  }
  0x12   :  { %v8115_v51 = vld [vmem:[%s11025_s0 + $0x720] sm:$0xff]   ;;  %v8064_v52 = vld [vmem:[%s11025_s0 + $0xb8] sm:$0xff]   ;;  %v8116_v54 = vld [vmem:[%s11025_s0 + $0x728] sm:$0xff]  }
  0x13   :  { %7423 = vmatpush3.bf16.msra.mxu0 %v8037_v5  ;;  %8026 = vmatpush3.bf16.msra.mxu1 %v8037_v5  ;;  %v8065_v53 = vld [vmem:[%s11025_s0 + $0xc0] sm:$0xff]   ;;  %v8119_v55 = vld [vmem:[%s11025_s0 + $0x730] sm:$0xff]   ;;  %v8066_v56 = vld [vmem:[%s11025_s0 + $0xc8] sm:$0xff]  }
  0x14   :  { %7424 = vmatprep.subr.bf16.mxu0 %v8038_v6  ;;  %8019 = vmatprep.subr.bf16.mxu1 %v8038_v6  ;;  %v8067_v57 = vld [vmem:[%s11025_s0 + $0xd0] sm:$0xff]   ;;  %v8120_v58 = vld [vmem:[%s11025_s0 + $0x738] sm:$0xff]   ;;  %v8123_v59 = vld [vmem:[%s11025_s0 + $0x740] sm:$0xff]  }
  0x15   :  { %v8068_v60 = vld [vmem:[%s11025_s0 + $0xd8] sm:$0xff]   ;;  %v8069_v61 = vld [vmem:[%s11025_s0 + $0xe0] sm:$0xff]   ;;  %v8124_v62 = vld [vmem:[%s11025_s0 + $0x748] sm:$0xff]  }
  0x16   :  { %v8127_v63 = vld [vmem:[%s11025_s0 + $0x750] sm:$0xff]   ;;  %v8070_v0 = vld [vmem:[%s11025_s0 + $0xe8] sm:$0xff]   ;;  %v8128_v2 = vld [vmem:[%s11025_s0 + $0x758] sm:$0xff]  }
  0x17   :  { %7425 = vmatpush3.bf16.msra.mxu0 %v8038_v6  ;;  %8027 = vmatpush3.bf16.msra.mxu1 %v8038_v6  ;;  %v8071_v1 = vld [vmem:[%s11025_s0 + $0xf0] sm:$0xff]   ;;  %v8131_v3 = vld [vmem:[%s11025_s0 + $0x760] sm:$0xff]   ;;  %v8072_v4 = vld [vmem:[%s11025_s0 + $0xf8] sm:$0xff]  }
  0x18   :  { %7426 = vmatprep.subr.bf16.mxu0 %v8039_v7  ;;  %8020 = vmatprep.subr.bf16.mxu1 %v8039_v7  ;;  %v8073_v5 = vld [vmem:[%s11025_s0 + $0x100] sm:$0xff]   ;;  %v8132_v6 = vld [vmem:[%s11025_s0 + $0x768] sm:$0xff]  }
  0x19   :  { %v8081_v13 = vld [vmem:[%s11025_s0 + $0x120] sm:$0xff]  }
  0x1b   :  { %7427 = vmatpush3.bf16.msra.mxu0 %v8039_v7  ;;  %8028 = vmatpush3.bf16.msra.mxu1 %v8039_v7  ;;  %v8135_v7 = vld [vmem:[%s11025_s0 + $0x770] sm:$0xff]  }
  0x1c   :  { %7428 = vmatprep.subr.bf16.mxu0 %v8040_v8  ;;  %8021 = vmatprep.subr.bf16.mxu1 %v8040_v8 }
  0x1f   :  { %7429 = vmatpush3.bf16.msra.mxu0 %v8040_v8  ;;  %8029 = vmatpush3.bf16.msra.mxu1 %v8040_v8  ;;  %v8074_v8 = vld [vmem:[%s11025_s0 + $0x108] sm:$0xff]  }
  0x22   :  { %7431 = vmatmul.mubr.bf16.vlgmr.msra.gmra.mxu0 %v8042_v9  ;;  %7847 = vmatmul.mubr.bf16.vlgmr.msra.gmra.mxu1 %v8076_v14  ;;  %v8077_v9 = vld [vmem:[%s11025_s0 + $0x110] sm:$0xff]   ;;  %v8140_v14 = vld [vmem:[%s11025_s0 + $0x788] sm:$0xff]  }
  0x23   :  { %7434 = vmatprep.mubr.bf16.mxu0 %v8043_v10  ;;  %7850 = vmatprep.mubr.bf16.mxu1 %v8079_v16  ;;  %v8136_v10 = vld [vmem:[%s11025_s0 + $0x778] sm:$0xff]   ;;  %v8082_v16 = vld [vmem:[%s11025_s0 + $0x128] sm:$0xff]  }
  0x2a   :  { %7435 = vmatmul.mubr.bf16.gmra.mxu0 %v8044_v11  ;;  %7851 = vmatmul.mubr.bf16.gmra.mxu1 %v8080_v18  ;;  %v8139_v11 = vld [vmem:[%s11025_s0 + $0x780] sm:$0xff]   ;;  %v8144_v18 = vld [vmem:[%s11025_s0 + $0x798] sm:$0xff]  }
  0x2b   :  { %7438 = vmatprep.mubr.bf16.mxu0 %v8045_v12  ;;  %7854 = vmatprep.mubr.bf16.mxu1 %v8083_v19  ;;  %v8078_v12 = vld [vmem:[%s11025_s0 + $0x118] sm:$0xff]   ;;  %v8147_v19 = vld [vmem:[%s11025_s0 + $0x7a0] sm:$0xff]  }
  0x32   :  { %7439 = vmatmul.mubr.bf16.gmra.mxu0 %v8046_v15  ;;  %7855 = vmatmul.mubr.bf16.gmra.mxu1 %v8084_v22  ;;  %v8143_v15 = vld [vmem:[%s11025_s0 + $0x790] sm:$0xff]   ;;  %v8148_v22 = vld [vmem:[%s11025_s0 + $0x7a8] sm:$0xff]  }
  0x33   :  { %7442 = vmatprep.mubr.bf16.mxu0 %v8047_v17  ;;  %7858 = vmatprep.mubr.bf16.mxu1 %v8087_v23  ;;  %v8085_v17 = vld [vmem:[%s11025_s0 + $0x130] sm:$0xff]  }
  0x34   :  { %v8151_v23 = vld [vmem:[%s11025_s0 + $0x7b0] sm:$0xff]  }
  0x3a   :  { %7443 = vmatmul.mubr.bf16.gmra.mxu0 %v8048_v20  ;;  %7859 = vmatmul.mubr.bf16.gmra.mxu1 %v8088_v26  ;;  %v8086_v20 = vld [vmem:[%s11025_s0 + $0x138] sm:$0xff]  }
  0x3b   :  { %7446 = vmatprep.mubr.bf16.mxu0 %v8049_v21  ;;  %7862 = vmatprep.mubr.bf16.mxu1 %v8091_v27  ;;  %v8089_v21 = vld [vmem:[%s11025_s0 + $0x140] sm:$0xff]   ;;  %v8152_v26 = vld [vmem:[%s11025_s0 + $0x7b8] sm:$0xff]  }
  0x3c   :  { %v8155_v27 = vld [vmem:[%s11025_s0 + $0x7c0] sm:$0xff]  }
  0x42   :  { %7447 = vmatmul.mubr.bf16.gmra.mxu0 %v8050_v24  ;;  %7863 = vmatmul.mubr.bf16.gmra.mxu1 %v8092_v30  ;;  %v8090_v24 = vld [vmem:[%s11025_s0 + $0x148] sm:$0xff]  }
  0x43   :  { %7450 = vmatprep.mubr.bf16.mxu0 %v8051_v25  ;;  %7866 = vmatprep.mubr.bf16.mxu1 %v8095_v31  ;;  %v8093_v25 = vld [vmem:[%s11025_s0 + $0x150] sm:$0xff]   ;;  %v8156_v30 = vld [vmem:[%s11025_s0 + $0x7c8] sm:$0xff]  }
  0x44   :  { %v8159_v31 = vld [vmem:[%s11025_s0 + $0x7d0] sm:$0xff]  }
  0x4a   :  { %7451 = vmatmul.mubr.bf16.gmra.mxu0 %v8052_v28  ;;  %7867 = vmatmul.mubr.bf16.gmra.mxu1 %v8096_v34  ;;  %v8094_v28 = vld [vmem:[%s11025_s0 + $0x158] sm:$0xff]  }
  0x4b   :  { %7454 = vmatprep.mubr.bf16.mxu0 %v8053_v29  ;;  %7870 = vmatprep.mubr.bf16.mxu1 %v8099_v35  ;;  %v8097_v29 = vld [vmem:[%s11025_s0 + $0x160] sm:$0xff]   ;;  %v8160_v34 = vld [vmem:[%s11025_s0 + $0x7d8] sm:$0xff]  }
  0x4c   :  { %v8163_v35 = vld [vmem:[%s11025_s0 + $0x7e0] sm:$0xff]  }
  0x52   :  { %7455 = vmatmul.mubr.bf16.gmra.mxu0 %v8054_v32  ;;  %7871 = vmatmul.mubr.bf16.gmra.mxu1 %v8100_v38  ;;  %v8098_v32 = vld [vmem:[%s11025_s0 + $0x168] sm:$0xff]  }
  0x53   :  { %7458 = vmatprep.mubr.bf16.mxu0 %v8055_v33  ;;  %7874 = vmatprep.mubr.bf16.mxu1 %v8103_v39  ;;  %v8101_v33 = vld [vmem:[%s11025_s0 + $0x170] sm:$0xff]   ;;  %v8164_v38 = vld [vmem:[%s11025_s0 + $0x7e8] sm:$0xff]  }
  0x54   :  { %v8167_v39 = vld [vmem:[%s11025_s0 + $0x7f0] sm:$0xff]  }
  0x5a   :  { %7459 = vmatmul.mubr.bf16.gmra.mxu0 %v8056_v36  ;;  %7875 = vmatmul.mubr.bf16.gmra.mxu1 %v8104_v42  ;;  %v8102_v36 = vld [vmem:[%s11025_s0 + $0x178] sm:$0xff]  }
  0x5b   :  { %7462 = vmatprep.mubr.bf16.mxu0 %v8057_v37  ;;  %7878 = vmatprep.mubr.bf16.mxu1 %v8107_v43  ;;  %v8105_v37 = vld [vmem:[%s11025_s0 + $0x180] sm:$0xff]   ;;  %v8168_v42 = vld [vmem:[%s11025_s0 + $0x7f8] sm:$0xff]  }
  0x62   :  { %7463 = vmatmul.mubr.bf16.gmra.mxu0 %v8058_v40  ;;  %7879 = vmatmul.mubr.bf16.gmra.mxu1 %v8108_v46  ;;  %v8106_v40 = vld [vmem:[%s11025_s0 + $0x188] sm:$0xff]   ;;  %v8739_v46 = vld [vmem:[%s11027_s1 + $0x80] sm:$0xff] }
  0x63   :  { %7466 = vmatprep.mubr.bf16.mxu0 %v8059_v41  ;;  %7882 = vmatprep.mubr.bf16.mxu1 %v8111_v47  ;;  %v8109_v41 = vld [vmem:[%s11025_s0 + $0x190] sm:$0xff]  }
  0x6a   :  { %7467 = vmatmul.mubr.bf16.gmra.mxu0 %v8060_v44  ;;  %7883 = vmatmul.mubr.bf16.gmra.mxu1 %v8112_v50  ;;  %v8729_v44 = vld [vmem:[%s11026_s3] ss:$0 sm:$0xff] }
  0x6b   :  { %7470 = vmatprep.mubr.bf16.mxu0 %v8061_v45  ;;  %7886 = vmatprep.mubr.bf16.mxu1 %v8115_v51  ;;  %v8734_v45 = vld [vmem:[%s11027_s1] sm:$0xff] }
  0x6c   :  { %v6694_v47 = vcombine.high %v8734_v45, %v8739_v46 }
  0x72   :  { %7471 = vmatmul.mubr.bf16.gmra.mxu0 %v8062_v48  ;;  %7887 = vmatmul.mubr.bf16.gmra.mxu1 %v8116_v54 }
  0x73   :  { %7474 = vmatprep.mubr.bf16.mxu0 %v8063_v49  ;;  %7890 = vmatprep.mubr.bf16.mxu1 %v8119_v55  ;;  %v6693_v49 = vcombine.low %v8734_v45, %v8739_v46  ;;  %v8113_v55 = vld [vmem:[%s11025_s0 + $0x1a0] sm:$0xff]   ;;  %v8162_v46 = vld [vmem:[%s11025_s0 + $0x268] sm:$0xff]  }
  0x7a   :  { %7475 = vmatmul.mubr.bf16.gmra.mxu0 %v8064_v52  ;;  %7891 = vmatmul.mubr.bf16.gmra.mxu1 %v8120_v58  ;;  %v8110_v52 = vld [vmem:[%s11025_s0 + $0x198] sm:$0xff]  }
  0x7b   :  { %7478 = vmatprep.mubr.bf16.mxu0 %v8065_v53  ;;  %7894 = vmatprep.mubr.bf16.mxu1 %v8123_v59 }
  0x82   :  { %7479 = vmatmul.mubr.bf16.gmra.mxu0 %v8066_v56  ;;  %7895 = vmatmul.mubr.bf16.gmra.mxu1 %v8124_v62 }
  0x83   :  { %7482 = vmatprep.mubr.bf16.mxu0 %v8067_v57  ;;  %7898 = vmatprep.mubr.bf16.mxu1 %v8127_v63 }
  0x8a   :  { %7483 = vmatmul.mubr.bf16.gmra.mxu0 %v8068_v60  ;;  %7899 = vmatmul.mubr.bf16.gmra.mxu1 %v8128_v2 }
  0x8b   :  { %7486 = vmatprep.mubr.bf16.mxu0 %v8069_v61  ;;  %7902 = vmatprep.mubr.bf16.mxu1 %v8131_v3 }
  0x92   :  { %7487 = vmatmul.mubr.bf16.gmra.mxu0 %v8070_v0  ;;  %7903 = vmatmul.mubr.bf16.gmra.mxu1 %v8132_v6 }
  0x93   :  { %7490 = vmatprep.mubr.bf16.mxu0 %v8071_v1  ;;  %7906 = vmatprep.mubr.bf16.mxu1 %v8135_v7  ;;  %v8117_v7 = vld [vmem:[%s11025_s0 + $0x1b0] sm:$0xff]  }
  0x9a   :  { %7491 = vmatmul.mubr.bf16.gmra.mxu0 %v8072_v4  ;;  %7907 = vmatmul.mubr.bf16.gmra.mxu1 %v8136_v10  ;;  %v8114_v4 = vld [vmem:[%s11025_s0 + $0x1a8] sm:$0xff]  }
  0x9b   :  { %7494 = vmatprep.mubr.bf16.mxu0 %v8073_v5  ;;  %7910 = vmatprep.mubr.bf16.mxu1 %v8139_v11 }
  0xa2   :  { %7495 = vmatmul.mubr.bf16.gmra.mxu0 %v8074_v8  ;;  %7911 = vmatmul.mubr.bf16.gmra.mxu1 %v8140_v14 }
  0xa3   :  { %7498 = vmatprep.mubr.bf16.mxu0 %v8077_v9  ;;  %7914 = vmatprep.mubr.bf16.mxu1 %v8143_v15 }
  0xaa   :  { %7499 = vmatmul.mubr.bf16.gmra.mxu0 %v8078_v12  ;;  %7915 = vmatmul.mubr.bf16.gmra.mxu1 %v8144_v18 }
  0xab   :  { %7502 = vmatprep.mubr.bf16.mxu0 %v8081_v13  ;;  %7918 = vmatprep.mubr.bf16.mxu1 %v8147_v19  ;;  %v8118_v19 = vld [vmem:[%s11025_s0 + $0x1b8] sm:$0xff]  }
  0xb2   :  { %7503 = vmatmul.mubr.bf16.gmra.mxu0 %v8082_v16  ;;  %7919 = vmatmul.mubr.bf16.gmra.mxu1 %v8148_v22 }
  0xb3   :  { %7506 = vmatprep.mubr.bf16.mxu0 %v8085_v17  ;;  %7922 = vmatprep.mubr.bf16.mxu1 %v8151_v23 }
  0xba   :  { %7507 = vmatmul.mubr.bf16.gmra.mxu0 %v8086_v20  ;;  %7923 = vmatmul.mubr.bf16.gmra.mxu1 %v8152_v26  ;;  %v8121_v20 = vld [vmem:[%s11025_s0 + $0x1c0] sm:$0xff]   ;;  %v8125_v26 = vld [vmem:[%s11025_s0 + $0x1d0] sm:$0xff]  }
  0xbb   :  { %7510 = vmatprep.mubr.bf16.mxu0 %v8089_v21  ;;  %7926 = vmatprep.mubr.bf16.mxu1 %v8155_v27 }
  0xc2   :  { %7511 = vmatmul.mubr.bf16.gmra.mxu0 %v8090_v24  ;;  %7927 = vmatmul.mubr.bf16.gmra.mxu1 %v8156_v30 }
  0xc3   :  { %7514 = vmatprep.mubr.bf16.mxu0 %v8093_v25  ;;  %7930 = vmatprep.mubr.bf16.mxu1 %v8159_v31  ;;  %v8122_v25 = vld [vmem:[%s11025_s0 + $0x1c8] sm:$0xff]   ;;  %v8126_v31 = vld [vmem:[%s11025_s0 + $0x1d8] sm:$0xff]  }
  0xca   :  { %7515 = vmatmul.mubr.bf16.gmra.mxu0 %v8094_v28  ;;  %7931 = vmatmul.mubr.bf16.gmra.mxu1 %v8160_v34 }
  0xcb   :  { %7518 = vmatprep.mubr.bf16.mxu0 %v8097_v29  ;;  %7934 = vmatprep.mubr.bf16.mxu1 %v8163_v35 }
  0xd2   :  { %7519 = vmatmul.mubr.bf16.gmra.mxu0 %v8098_v32  ;;  %7935 = vmatmul.mubr.bf16.gmra.mxu1 %v8164_v38  ;;  %v8129_v32 = vld [vmem:[%s11025_s0 + $0x1e0] sm:$0xff]   ;;  %v8133_v38 = vld [vmem:[%s11025_s0 + $0x1f0] sm:$0xff]  }
  0xd3   :  { %7522 = vmatprep.mubr.bf16.mxu0 %v8101_v33  ;;  %7938 = vmatprep.mubr.bf16.mxu1 %v8167_v39 }
  0xda   :  { %7523 = vmatmul.mubr.bf16.gmra.mxu0 %v8102_v36  ;;  %7939 = vmatmul.mubr.bf16.gmra.mxu1 %v8168_v42 }
  0xdb   :  { %7526 = vmatprep.mubr.bf16.mxu0 %v8105_v37  ;;  %5222 = vmatprep.mubr.bf16.mxu1 %v6694_v47  ;;  %v8130_v37 = vld [vmem:[%s11025_s0 + $0x1e8] sm:$0xff]   ;;  %v8137_v47 = vld [vmem:[%s11025_s0 + $0x200] sm:$0xff]  }
  0xe2   :  { %v7432_v43 = vpop.f32.mrf.mxu0  ;;  %7527 = vmatmul.mubr.bf16.gmra.mxu0 %v8106_v40 }
  0xe3   :  { %7530 = vmatprep.mubr.bf16.mxu0 %v8109_v41  ;;  %v2192_v50 = vadd.f32 %v7432_v43, %v8729_v44  ;;  %v8134_v43 = vld [vmem:[%s11025_s0 + $0x1f8] sm:$0xff]  }
  0xe4   :  { %v2183_v48 = vpop.f32.mrf.mxu0 }
  0xe5   :  { %v2184_v53 = vadd.f32 %v8729_v44, %v2183_v48  ;;  %v4232_v57 = vmax.f32 %v2192_v50, 0.0 }
  0xe6   :  { %v7433_v51 = vpop.f32.mrf.mxu0 }
  0xe7   :  { %v2195_v54 = vadd.f32 %v7433_v51, %v8729_v44  ;;  %v4230_v61 = vmax.f32 %v2184_v53, 0.0 }
  0xe8   :  { %v2186_v56 = vpop.f32.mrf.mxu0 }
  0xe9   :  { %v4233_v58 = vmax.f32 %v2195_v54, 0.0  ;;  %v2187_v59 = vadd.f32 %v8729_v44, %v2186_v56  ;;  %v8138_v56 = vld [vmem:[%s11025_s0 + $0x208] sm:$0xff]  }
  0xea   :  { %v7436_v60 = vpop.f32.mrf.mxu0  ;;  %7531 = vmatmul.mubr.bf16.gmra.mxu0 %v8110_v52 }
  0xeb   :  { %v8755_v62 = vpack.c.bf16 %v4233_v58, %v4232_v57  ;;  %v4231_v63 = vmax.f32 %v2187_v59, 0.0  ;;  %7534 = vmatprep.mubr.bf16.mxu0 %v8113_v55  ;;  %v2208_v2 = vadd.f32 %v7436_v60, %v8729_v44  ;;  %v8141_v59 = vld [vmem:[%s11025_s0 + $0x210] sm:$0xff]  }
  0xec   :  { %v2199_v0 = vpop.f32.mrf.mxu0 }
  0xed   :  { %v8757_v1 = vpack.c.bf16 %v4231_v63, %v4230_v61  ;;  %v2200_v5 = vadd.f32 %v8729_v44, %v2199_v0  ;;  %v4236_v9 = vmax.f32 %v2208_v2, 0.0 }
  0xee   :  { %v7437_v3 = vpop.f32.mrf.mxu0 }
  0xef   :  { %v2211_v6 = vadd.f32 %v7437_v3, %v8729_v44  ;;  %v4234_v13 = vmax.f32 %v2200_v5, 0.0 }
  0xf0   :  { %v2202_v8 = vpop.f32.mrf.mxu0 }
  0xf1   :  { %v4237_v10 = vmax.f32 %v2211_v6, 0.0  ;;  %v2203_v11 = vadd.f32 %v8729_v44, %v2202_v8 }
  0xf2   :  { %v8769_v12 = vpop.f32.mrf.mxu0  ;;  %7535 = vmatmul.mubr.bf16.gmra.mxu0 %v8114_v4 }
  0xf3   :  { %v8771_v14 = vpack.c.bf16 %v4237_v10, %v4236_v9  ;;  %v4235_v15 = vmax.f32 %v2203_v11, 0.0  ;;  %7538 = vmatprep.mubr.bf16.mxu0 %v8117_v7 }
  0xf4   :  { %v8773_v16 = vpop.f32.mrf.mxu0 }
  0xf5   :  { %v8775_v17 = vpack.c.bf16 %v4235_v15, %v4234_v13 }
  0xf6   :  { %v7441_v18 = vpop.f32.mrf.mxu0 }
  0xf7   :  { %v2227_v9 = vadd.f32 %v7441_v18, %v8729_v44 }
  0xf8   :  { %v8783_v21 = vpop.f32.mrf.mxu0 }
  0xfa   :  { %v7444_v22 = vpop.f32.mrf.mxu0  ;;  %7539 = vmatmul.mubr.bf16.gmra.mxu0 %v8118_v19 }
  0xfb   :  { %7542 = vmatprep.mubr.bf16.mxu0 %v8121_v20  ;;  %v2240_v54 = vadd.f32 %v7444_v22, %v8729_v44 }
  0xfc   :  { %v2231_v23 = vpop.f32.mrf.mxu0 }
  0xfd   :  { %v4244_v5 = vmax.f32 %v2240_v54, 0.0  ;;  %v2232_v6 = vadd.f32 %v8729_v44, %v2231_v23 }
  0xfe   :  { %v7445_v24 = vpop.f32.mrf.mxu0 }
  0xff   :  { %v2243_v51 = vadd.f32 %v7445_v24, %v8729_v44 }
 0x100   :  { %v2234_v27 = vpop.f32.mrf.mxu0 }
 0x101   :  { %v4245_v60 = vmax.f32 %v2243_v51, 0.0  ;;  %v2235_v61 = vadd.f32 %v8729_v44, %v2234_v27  ;;  %v4242_v27 = vmax.f32 %v2232_v6, 0.0 }
 0x102   :  { %v8791_v28 = vpop.f32.mrf.mxu0  ;;  %7543 = vmatmul.mubr.bf16.gmra.mxu0 %v8122_v25 }
 0x103   :  { %7546 = vmatprep.mubr.bf16.mxu0 %v8125_v26  ;;  %v4781_v15 = vpack.c.bf16 %v4245_v60, %v4244_v5  ;;  %v4243_v19 = vmax.f32 %v2235_v61, 0.0  ;;  %v2224_v26 = vadd.f32 %v8769_v12, %v8729_v44  ;;  %v8145_v12 = vld [vmem:[%s11025_s0 + $0x220] sm:$0xff]  }
 0x104   :  { %v8793_v29 = vpop.f32.mrf.mxu0 }
 0x106   :  { %v8795_v30 = vpop.f32.mrf.mxu0 }
 0x108   :  { %v8803_v33 = vpop.f32.mrf.mxu0 }
 0x10a   :  { %v8805_v34 = vpop.f32.mrf.mxu0  ;;  %7547 = vmatmul.mubr.bf16.gmra.mxu0 %v8126_v31 }
 0x10b   :  { %7550 = vmatprep.mubr.bf16.mxu0 %v8129_v32  ;;  %v8142_v32 = vld [vmem:[%s11025_s0 + $0x218] sm:$0xff]  }
 0x10c   :  { %v8807_v35 = vpop.f32.mrf.mxu0 }
 0x10e   :  { %v8809_v36 = vpop.f32.mrf.mxu0 }
 0x110   :  { %v8817_v39 = vpop.f32.mrf.mxu0 }
 0x112   :  { %v7456_v40 = vpop.f32.mrf.mxu0  ;;  %7551 = vmatmul.mubr.bf16.gmra.mxu0 %v8130_v37  ;;  %v4241_v37 = vmax.f32 %v2227_v9, 0.0  ;;  %v2264_v9 = vadd.f32 %v8729_v44, %v8807_v35 }
 0x113   :  { %7554 = vmatprep.mubr.bf16.mxu0 %v8133_v38  ;;  %v2288_v7 = vadd.f32 %v7456_v40, %v8729_v44 }
 0x114   :  { %v2279_v41 = vpop.f32.mrf.mxu0 }
 0x115   :  { %v4256_v31 = vmax.f32 %v2288_v7, 0.0  ;;  %v2280_v38 = vadd.f32 %v8729_v44, %v2279_v41 }
 0x116   :  { %v7457_v42 = vpop.f32.mrf.mxu0 }
 0x117   :  { %v2291_v63 = vadd.f32 %v7457_v42, %v8729_v44 }
 0x118   :  { %v2282_v48 = vpop.f32.mrf.mxu0 }
 0x119   :  { %v4257_v20 = vmax.f32 %v2291_v63, 0.0  ;;  %v2283_v24 = vadd.f32 %v8729_v44, %v2282_v48  ;;  %v2275_v48 = vadd.f32 %v8809_v36, %v8729_v44 }
 0x11a   :  { %v7460_v50 = vpop.f32.mrf.mxu0  ;;  %7555 = vmatmul.mubr.bf16.gmra.mxu0 %v8134_v43  ;;  %v2219_v43 = vadd.f32 %v8729_v44, %v8783_v21  ;;  %v4254_v21 = vmax.f32 %v2280_v38, 0.0  ;;  %v2251_v38 = vadd.f32 %v8729_v44, %v8803_v33  ;;  %v8153_v33 = vld [vmem:[%s11025_s0 + $0x240] sm:$0xff]  }
 0x11b   :  { %7558 = vmatprep.mubr.bf16.mxu0 %v8137_v47  ;;  %v2304_v53 = vadd.f32 %v7460_v50, %v8729_v44  ;;  %v4780_v47 = vpack.c.bf16 %v4243_v19, %v4242_v27  ;;  %v4787_v50 = vpack.c.bf16 %v4257_v20, %v4256_v31  ;;  %v4250_v27 = vmax.f32 %v2264_v9, 0.0 }
 0x11c   :  { %v2295_v52 = vpop.f32.mrf.mxu0  ;;  %v4239_v63 = vmax.f32 %v2219_v43, 0.0 }
 0x11d   :  { %v2296_v57 = vadd.f32 %v8729_v44, %v2295_v52  ;;  %v4260_v2 = vmax.f32 %v2304_v53, 0.0  ;;  %v4255_v52 = vmax.f32 %v2283_v24, 0.0 }
 0x11e   :  { %v7461_v55 = vpop.f32.mrf.mxu0 }
 0x11f   :  { %v2307_v58 = vadd.f32 %v7461_v55, %v8729_v44  ;;  %v4258_v10 = vmax.f32 %v2296_v57, 0.0  ;;  %v4240_v55 = vmax.f32 %v2224_v26, 0.0  ;;  %v2272_v57 = vadd.f32 %v8805_v34, %v8729_v44 }
 0x120   :  { %v2298_v0 = vpop.f32.mrf.mxu0 }
 0x121   :  { %v4261_v3 = vmax.f32 %v2307_v58, 0.0  ;;  %v2299_v4 = vadd.f32 %v8729_v44, %v2298_v0  ;;  %v4779_v61 = vpack.c.bf16 %v4241_v37, %v4240_v55  ;;  %v4253_v0 = vmax.f32 %v2275_v48, 0.0  ;;  %v8157_v55 = vld [vmem:[%s11025_s0 + $0x250] sm:$0xff]  }
 0x122   :  { %v7464_v8 = vpop.f32.mrf.mxu0  ;;  %7559 = vmatmul.mubr.bf16.gmra.mxu0 %v8138_v56  ;;  %v2216_v56 = vadd.f32 %v8729_v44, %v8773_v16  ;;  %v2267_v16 = vadd.f32 %v8729_v44, %v8817_v39  ;;  %v4252_v6 = vmax.f32 %v2272_v57, 0.0 }
 0x123   :  { %v4789_v11 = vpack.c.bf16 %v4261_v3, %v4260_v2  ;;  %v4259_v13 = vmax.f32 %v2299_v4, 0.0  ;;  %7562 = vmatprep.mubr.bf16.mxu0 %v8141_v59  ;;  %v2320_v25 = vadd.f32 %v7464_v8, %v8729_v44  ;;  %v4786_v4 = vpack.c.bf16 %v4255_v52, %v4254_v21  ;;  %v8146_v8 = vld [vmem:[%s11025_s0 + $0x228] sm:$0xff]  }
 0x124   :  { %v2311_v22 = vpop.f32.mrf.mxu0  ;;  %v4238_v5 = vmax.f32 %v2216_v56, 0.0  ;;  %v4785_v19 = vpack.c.bf16 %v4253_v0, %v4252_v6  ;;  %v8925_v56 = vld [vmem:[%s11027_s1 + $0x88] sm:$0xff]  ;;  %v8169_v6 = vld [vmem:[%s11025_s0 + $0x280] sm:$0xff]  }
 0x125   :  { %7031 = vmatprep.subr.bf16.mxu1 %v4789_v11  ;;  %v4788_v23 = vpack.c.bf16 %v4259_v13, %v4258_v10  ;;  %v2312_v40 = vadd.f32 %v8729_v44, %v2311_v22  ;;  %v4264_v41 = vmax.f32 %v2320_v25, 0.0  ;;  %v8149_v11 = vld [vmem:[%s11025_s0 + $0x230] sm:$0xff]   ;;  %v4251_v22 = vmax.f32 %v2267_v16, 0.0 }
 0x126   :  { %v7465_v18 = vpop.f32.mrf.mxu0  ;;  %7032 = vmatpush3.bf16.msra.mxu1 %v4781_v15  ;;  %v4778_v13 = vpack.c.bf16 %v4239_v63, %v4238_v5  ;;  %v2259_v15 = vadd.f32 %v8795_v30, %v8729_v44  ;;  %v8166_v5 = vld [vmem:[%s11025_s0 + $0x278] sm:$0xff]  }
 0x127   :  { %v2323_v42 = vadd.f32 %v7465_v18, %v8729_v44  ;;  %7033 = vmatprep.subr.bf16.mxu1 %v4788_v23  ;;  %v4262_v59 = vmax.f32 %v2312_v40, 0.0  ;;  %v2256_v23 = vadd.f32 %v8791_v28, %v8729_v44  ;;  %v4784_v28 = vpack.c.bf16 %v4251_v22, %v4250_v27  ;;  %v8171_v22 = vld [vmem:[%s11025_s0 + $0x290] sm:$0xff]  }
 0x128   :  { %v2314_v51 = vpop.f32.mrf.mxu0  ;;  %v4249_v37 = vmax.f32 %v2259_v15, 0.0  ;;  %v8170_v15 = vld [vmem:[%s11025_s0 + $0x288] sm:$0xff]  }
 0x129   :  { %v4265_v53 = vmax.f32 %v2323_v42, 0.0  ;;  %v2315_v54 = vadd.f32 %v8729_v44, %v2314_v51  ;;  %v4248_v43 = vmax.f32 %v2256_v23, 0.0  ;;  %v4247_v51 = vmax.f32 %v2251_v38, 0.0 }
 0x12a   :  { %v7468_v58 = vpop.f32.mrf.mxu0  ;;  %7563 = vmatmul.mubr.bf16.gmra.mxu0 %v8142_v32  ;;  %7034 = vmatpush3.bf16.msra.mxu1 %v4780_v47  ;;  %v2248_v47 = vadd.f32 %v8729_v44, %v8793_v29  ;;  %v8154_v29 = vld [vmem:[%s11025_s0 + $0x248] sm:$0xff]  }
 0x12b   :  { %v8864_v36 = vpack.c.bf16 %v4265_v53, %v4264_v41  ;;  %v4263_v60 = vmax.f32 %v2315_v54, 0.0  ;;  %7035 = vmatprep.subr.bf16.mxu1 %v4787_v50  ;;  %7566 = vmatprep.mubr.bf16.mxu0 %v8145_v12  ;;  %v2336_v34 = vadd.f32 %v7468_v58, %v8729_v44  ;;  %v8150_v12 = vld [vmem:[%s11025_s0 + $0x238] sm:$0xff]   ;;  %v4783_v50 = vpack.c.bf16 %v4249_v37, %v4248_v43 }
 0x12c   :  { %v2327_v2 = vpop.f32.mrf.mxu0 }
 0x12d   :  { %v8868_v3 = vpack.c.bf16 %v4263_v60, %v4262_v59  ;;  %v2328_v10 = vadd.f32 %v8729_v44, %v2327_v2  ;;  %v4268_v24 = vmax.f32 %v2336_v34, 0.0  ;;  %v8158_v60 = vld [vmem:[%s11025_s0 + $0x258] sm:$0xff]  }
 0x12e   :  { %v7469_v7 = vpop.f32.mrf.mxu0  ;;  %7036 = vmatpush3.bf16.msra.mxu1 %v4779_v61 }
 0x12f   :  { %v2339_v39 = vadd.f32 %v7469_v7, %v8729_v44  ;;  %7037 = vmatprep.subr.bf16.mxu1 %v4786_v4  ;;  %v4266_v31 = vmax.f32 %v2328_v10, 0.0 }
 0x130   :  { %v2330_v20 = vpop.f32.mrf.mxu0 }
 0x131   :  { %v4269_v25 = vmax.f32 %v2339_v39, 0.0  ;;  %v2331_v35 = vadd.f32 %v8729_v44, %v2330_v20 }
 0x132   :  { %v8886_v26 = vpop.f32.mrf.mxu0  ;;  %7567 = vmatmul.mubr.bf16.gmra.mxu0 %v8146_v8  ;;  %7038 = vmatpush3.bf16.msra.mxu1 %v4778_v13 }
 0x133   :  { %v8888_v18 = vpack.c.bf16 %v4269_v25, %v4268_v24  ;;  %v4267_v32 = vmax.f32 %v2331_v35, 0.0  ;;  %7039 = vmatprep.subr.bf16.mxu1 %v4785_v19  ;;  %7570 = vmatprep.mubr.bf16.mxu0 %v8149_v11 }
 0x134   :  { %v8890_v30 = vpop.f32.mrf.mxu0 }
 0x135   :  { %v8894_v40 = vpack.c.bf16 %v4267_v32, %v4266_v31 }
 0x136   :  { %v8896_v42 = vpop.f32.mrf.mxu0  ;;  %7040 = vmatpush3.bf16.msra.mxu1 %v8771_v14  ;;  %v4246_v14 = vmax.f32 %v2248_v47, 0.0 }
 0x137   :  { %7041 = vmatprep.subr.bf16.mxu1 %v4784_v28  ;;  %v2355_v43 = vadd.f32 %v8896_v42, %v8729_v44 }
 0x138   :  { %v8907_v48 = vpop.f32.mrf.mxu0  ;;  %v4782_v53 = vpack.c.bf16 %v4247_v51, %v4246_v14 }
 0x13a   :  { %v7476_v52 = vpop.f32.mrf.mxu0  ;;  %7571 = vmatmul.mubr.bf16.gmra.mxu0 %v8150_v12  ;;  %7042 = vmatpush3.bf16.msra.mxu1 %v8775_v17  ;;  %v8920_v17 = vld [vmem:[%s11027_s1 + $0x8] sm:$0xff] }
 0x13b   :  { %7043 = vmatprep.subr.bf16.mxu1 %v4783_v50  ;;  %7574 = vmatprep.mubr.bf16.mxu0 %v8153_v33  ;;  %v6696_v58 = vcombine.high %v8920_v17, %v8925_v56  ;;  %v2368_v11 = vadd.f32 %v7476_v52, %v8729_v44 }
 0x13c   :  { %v2359_v41 = vpop.f32.mrf.mxu0 }
 0x13d   :  { %v4276_v37 = vmax.f32 %v2368_v11, 0.0  ;;  %v2360_v38 = vadd.f32 %v8729_v44, %v2359_v41 }
 0x13e   :  { %v7477_v54 = vpop.f32.mrf.mxu0  ;;  %7044 = vmatpush3.bf16.msra.mxu1 %v8755_v62 }
 0x13f   :  { %7045 = vmatprep.subr.bf16.mxu1 %v4782_v53  ;;  %v2371_v9 = vadd.f32 %v7477_v54, %v8729_v44 }
 0x140   :  { %v2362_v62 = vpop.f32.mrf.mxu0 }
 0x141   :  { %v4277_v24 = vmax.f32 %v2371_v9, 0.0  ;;  %v2363_v25 = vadd.f32 %v8729_v44, %v2362_v62  ;;  %v4274_v62 = vmax.f32 %v2360_v38, 0.0 }
 0x142   :  { %v8927_v57 = vpop.f32.mrf.mxu0  ;;  %7575 = vmatmul.mubr.bf16.gmra.mxu0 %v8154_v29  ;;  %7046 = vmatpush3.bf16.msra.mxu1 %v8757_v1  ;;  %v8161_v1 = vld [vmem:[%s11025_s0 + $0x260] sm:$0xff]  }
 0x143   :  { %7578 = vmatprep.mubr.bf16.mxu0 %v8157_v55  ;;  %v4797_v51 = vpack.c.bf16 %v4277_v24, %v4276_v37  ;;  %v4275_v52 = vmax.f32 %v2363_v25, 0.0  ;;  %v2352_v55 = vadd.f32 %v8886_v26, %v8729_v44  ;;  %v8173_v26 = vld [vmem:[%s11025_s0 + $0x2a0] sm:$0xff]  }
 0x144   :  { %v8932_v21 = vpop.f32.mrf.mxu0 }
 0x145   :  { %5223 = vmatmul.mubr.bf16.vlgmr.msra.gmra.mxu1 %v6693_v49  ;;  %v8165_v49 = vld [vmem:[%s11025_s0 + $0x270] sm:$0xff]   ;;  %v4272_v11 = vmax.f32 %v2352_v55, 0.0 }
 0x146   :  { %v8937_v59 = vpop.f32.mrf.mxu0  ;;  %5263 = vmatprep.mubr.bf16.mxu1 %v6696_v58 }
 0x148   :  { %v8945_v61 = vpop.f32.mrf.mxu0 }
 0x14a   :  { %v8947_v63 = vpop.f32.mrf.mxu0  ;;  %7579 = vmatmul.mubr.bf16.gmra.mxu0 %v8158_v60  ;;  %v8172_v60 = vld [vmem:[%s11025_s0 + $0x298] sm:$0xff]  }
 0x14b   :  { %7582 = vmatprep.mubr.bf16.mxu0 %v8161_v1  ;;  %v4273_v1 = vmax.f32 %v2355_v43, 0.0 }
 0x14c   :  { %v8949_v0 = vpop.f32.mrf.mxu0 }
 0x14d   :  { %v4795_v24 = vpack.c.bf16 %v4273_v1, %v4272_v11  ;;  %v2379_v1 = vadd.f32 %v8729_v44, %v8945_v61  ;;  %v8177_v61 = vld [vmem:[%s11025_s0 + $0x2c0] sm:$0xff]   ;;  %v9068_v11 = vld [vmem:[%s11027_s1 + $0x90] sm:$0xff] }
 0x14e   :  { %v8951_v45 = vpop.f32.mrf.mxu0 }
 0x150   :  { %v8959_v2 = vpop.f32.mrf.mxu0 }
 0x152   :  { %v7488_v16 = vpop.f32.mrf.mxu0  ;;  %7583 = vmatmul.mubr.bf16.gmra.mxu0 %v8162_v46 }
 0x153   :  { %7586 = vmatprep.mubr.bf16.mxu0 %v8165_v49  ;;  %v2416_v28 = vadd.f32 %v7488_v16, %v8729_v44 }
 0x154   :  { %v2407_v34 = vpop.f32.mrf.mxu0 }
 0x155   :  { %v4288_v58 = vmax.f32 %v2416_v28, 0.0  ;;  %v2408_v46 = vadd.f32 %v8729_v44, %v2407_v34  ;;  %v8174_v28 = vld [vmem:[%s11025_s0 + $0x2a8] sm:$0xff]  }
 0x156   :  { %v7489_v4 = vpop.f32.mrf.mxu0 }
 0x157   :  { %v2419_v35 = vadd.f32 %v7489_v4, %v8729_v44  ;;  %v2347_v4 = vadd.f32 %v8729_v44, %v8907_v48  ;;  %v4286_v48 = vmax.f32 %v2408_v46, 0.0 }
 0x158   :  { %v2410_v7 = vpop.f32.mrf.mxu0 }
 0x159   :  { %v4289_v14 = vmax.f32 %v2419_v35, 0.0  ;;  %v2411_v54 = vadd.f32 %v8729_v44, %v2410_v7  ;;  %v4271_v25 = vmax.f32 %v2347_v4, 0.0  ;;  %v2376_v4 = vadd.f32 %v8729_v44, %v8932_v21  ;;  %v8178_v21 = vld [vmem:[%s11025_s0 + $0x2c8] sm:$0xff]  }
 0x15a   :  { %v7492_v8 = vpop.f32.mrf.mxu0  ;;  %7587 = vmatmul.mubr.bf16.gmra.mxu0 %v8166_v5  ;;  %v4796_v5 = vpack.c.bf16 %v4275_v52, %v4274_v62 }
 0x15b   :  { %7590 = vmatprep.mubr.bf16.mxu0 %v8169_v6  ;;  %v2432_v39 = vadd.f32 %v7492_v8, %v8729_v44  ;;  %v2403_v6 = vadd.f32 %v8951_v45, %v8729_v44  ;;  %v4803_v7 = vpack.c.bf16 %v4289_v14, %v4288_v58  ;;  %v4287_v9 = vmax.f32 %v2411_v54, 0.0 }
 0x15c   :  { %v2423_v10 = vpop.f32.mrf.mxu0 }
 0x15d   :  { %v2424_v19 = vadd.f32 %v8729_v44, %v2423_v10  ;;  %v4292_v27 = vmax.f32 %v2432_v39, 0.0  ;;  %v4285_v35 = vmax.f32 %v2403_v6, 0.0 }
 0x15e   :  { %v7493_v13 = vpop.f32.mrf.mxu0 }
 0x15f   :  { %v2435_v20 = vadd.f32 %v7493_v13, %v8729_v44  ;;  %v4290_v47 = vmax.f32 %v2424_v19, 0.0  ;;  %v2344_v13 = vadd.f32 %v8729_v44, %v8890_v30  ;;  %v2395_v30 = vadd.f32 %v8729_v44, %v8959_v2 }
 0x160   :  { %v2426_v23 = vpop.f32.mrf.mxu0 }
 0x161   :  { %v4293_v31 = vmax.f32 %v2435_v20, 0.0  ;;  %v2427_v32 = vadd.f32 %v8729_v44, %v2426_v23  ;;  %v4283_v14 = vmax.f32 %v2395_v30, 0.0 }
 0x162   :  { %v7496_v12 = vpop.f32.mrf.mxu0  ;;  %7591 = vmatmul.mubr.bf16.gmra.mxu0 %v8170_v15  ;;  %v2400_v15 = vadd.f32 %v8947_v63, %v8729_v44 }
 0x163   :  { %v4805_v33 = vpack.c.bf16 %v4293_v31, %v4292_v27  ;;  %v4291_v50 = vmax.f32 %v2427_v32, 0.0  ;;  %7594 = vmatprep.mubr.bf16.mxu0 %v8171_v22  ;;  %v2448_v29 = vadd.f32 %v7496_v12, %v8729_v44  ;;  %v4802_v31 = vpack.c.bf16 %v4287_v9, %v4286_v48 }
 0x164   :  { %v2439_v53 = vpop.f32.mrf.mxu0  ;;  %v4270_v32 = vmax.f32 %v2344_v13, 0.0  ;;  %v4284_v37 = vmax.f32 %v2400_v15, 0.0  ;;  %v2392_v12 = vadd.f32 %v8729_v44, %v8949_v0  ;;  %v6695_v13 = vcombine.low %v8920_v17, %v8925_v56  ;;  %v8181_v17 = vld [vmem:[%s11025_s0 + $0x2e0] sm:$0xff]  }
 0x165   :  { %7053 = vmatprep.subr.bf16.mxu1 %v4805_v33  ;;  %v4804_v41 = vpack.c.bf16 %v4291_v50, %v4290_v47  ;;  %v2440_v49 = vadd.f32 %v8729_v44, %v2439_v53  ;;  %v4296_v34 = vmax.f32 %v2448_v29, 0.0  ;;  %v8175_v47 = vld [vmem:[%s11025_s0 + $0x2b0] sm:$0xff]   ;;  %v2387_v50 = vadd.f32 %v8937_v59, %v8729_v44 }
 0x166   :  { %v7497_v42 = vpop.f32.mrf.mxu0  ;;  %7054 = vmatpush3.bf16.msra.mxu1 %v4797_v51  ;;  %v4794_v33 = vpack.c.bf16 %v4271_v25, %v4270_v32  ;;  %v4801_v51 = vpack.c.bf16 %v4285_v35, %v4284_v37  ;;  %v2384_v29 = vadd.f32 %v8927_v57, %v8729_v44  ;;  %v4282_v55 = vmax.f32 %v2392_v12, 0.0  ;;  %v8182_v35 = vld [vmem:[%s11025_s0 + $0x2e8] sm:$0xff]   ;;  %v8184_v37 = vld [vmem:[%s11025_s0 + $0x2f8] sm:$0xff]  }
 0x167   :  { %v2451_v16 = vadd.f32 %v7497_v42, %v8729_v44  ;;  %7055 = vmatprep.subr.bf16.mxu1 %v4804_v41  ;;  %v4294_v20 = vmax.f32 %v2440_v49, 0.0 }
 0x168   :  { %v2442_v8 = vpop.f32.mrf.mxu0  ;;  %v4800_v57 = vpack.c.bf16 %v4283_v14, %v4282_v55 }
 0x169   :  { %v4297_v10 = vmax.f32 %v2451_v16, 0.0  ;;  %v2443_v39 = vadd.f32 %v8729_v44, %v2442_v8  ;;  %v8176_v16 = vld [vmem:[%s11025_s0 + $0x2b8] sm:$0xff]  }
 0x16a   :  { %v7500_v19 = vpop.f32.mrf.mxu0  ;;  %7595 = vmatmul.mubr.bf16.gmra.mxu0 %v8172_v60  ;;  %7056 = vmatpush3.bf16.msra.mxu1 %v4796_v5  ;;  %v4281_v60 = vmax.f32 %v2387_v50, 0.0 }
 0x16b   :  { %v9007_v45 = vpack.c.bf16 %v4297_v10, %v4296_v34  ;;  %v4295_v22 = vmax.f32 %v2443_v39, 0.0  ;;  %7057 = vmatprep.subr.bf16.mxu1 %v4803_v7  ;;  %7598 = vmatprep.mubr.bf16.mxu0 %v8173_v26  ;;  %v2464_v63 = vadd.f32 %v7500_v19, %v8729_v44  ;;  %v4280_v26 = vmax.f32 %v2384_v29, 0.0  ;;  %v8179_v39 = vld [vmem:[%s11025_s0 + $0x2d0] sm:$0xff]  }
 0x16c   :  { %v2455_v23 = vpop.f32.mrf.mxu0  ;;  %v4279_v7 = vmax.f32 %v2379_v1, 0.0 }
 0x16d   :  { %v9011_v27 = vpack.c.bf16 %v4295_v22, %v4294_v20  ;;  %v2456_v43 = vadd.f32 %v8729_v44, %v2455_v23  ;;  %v4300_v53 = vmax.f32 %v2464_v63, 0.0  ;;  %v4799_v6 = vpack.c.bf16 %v4281_v60, %v4280_v26  ;;  %v8180_v22 = vld [vmem:[%s11025_s0 + $0x2d8] sm:$0xff]   ;;  %v8183_v23 = vld [vmem:[%s11025_s0 + $0x2f0] sm:$0xff]  }
 0x16e   :  { %v7501_v38 = vpop.f32.mrf.mxu0  ;;  %7058 = vmatpush3.bf16.msra.mxu1 %v4795_v24 }
 0x16f   :  { %v2467_v2 = vadd.f32 %v7501_v38, %v8729_v44  ;;  %7059 = vmatprep.subr.bf16.mxu1 %v4802_v31  ;;  %v4298_v62 = vmax.f32 %v2456_v43, 0.0  ;;  %v8185_v38 = vld [vmem:[%s11025_s0 + $0x300] sm:$0xff]  }
 0x170   :  { %v2458_v52 = vpop.f32.mrf.mxu0 }
 0x171   :  { %v4301_v54 = vmax.f32 %v2467_v2, 0.0  ;;  %v2459_v0 = vadd.f32 %v8729_v44, %v2458_v52 }
 0x172   :  { %v9029_v41 = vpop.f32.mrf.mxu0  ;;  %7599 = vmatmul.mubr.bf16.gmra.mxu0 %v8174_v28  ;;  %7060 = vmatpush3.bf16.msra.mxu1 %v4794_v33 }
 0x173   :  { %v9031_v58 = vpack.c.bf16 %v4301_v54, %v4300_v53  ;;  %v4299_v42 = vmax.f32 %v2459_v0, 0.0  ;;  %7061 = vmatprep.subr.bf16.mxu1 %v4801_v51  ;;  %7602 = vmatprep.mubr.bf16.mxu0 %v8175_v47  ;;  %v8186_v51 = vld [vmem:[%s11025_s0 + $0x308] sm:$0xff]   ;;  %v8187_v53 = vld [vmem:[%s11025_s0 + $0x310] sm:$0xff]  }
 0x174   :  { %v9033_v59 = vpop.f32.mrf.mxu0 }
 0x175   :  { %v9037_v46 = vpack.c.bf16 %v4299_v42, %v4298_v62 }
 0x176   :  { %v9039_v49 = vpop.f32.mrf.mxu0  ;;  %7062 = vmatpush3.bf16.msra.mxu1 %v8888_v18  ;;  %v4278_v18 = vmax.f32 %v2376_v4, 0.0 }
 0x177   :  { %7063 = vmatprep.subr.bf16.mxu1 %v4800_v57  ;;  %v2483_v4 = vadd.f32 %v9039_v49, %v8729_v44 }
 0x178   :  { %v9050_v5 = vpop.f32.mrf.mxu0  ;;  %v4798_v34 = vpack.c.bf16 %v4279_v7, %v4278_v18 }
 0x17a   :  { %v7508_v8 = vpop.f32.mrf.mxu0  ;;  %7603 = vmatmul.mubr.bf16.gmra.mxu0 %v8176_v16  ;;  %7064 = vmatpush3.bf16.msra.mxu1 %v8894_v40  ;;  %v9063_v40 = vld [vmem:[%s11027_s1 + $0x10] sm:$0xff] }
 0x17b   :  { %7065 = vmatprep.subr.bf16.mxu1 %v4799_v6  ;;  %7606 = vmatprep.mubr.bf16.mxu0 %v8177_v61  ;;  %v6698_v19 = vcombine.high %v9063_v40, %v9068_v11  ;;  %v2496_v33 = vadd.f32 %v7508_v8, %v8729_v44 }
 0x17c   :  { %v2487_v9 = vpop.f32.mrf.mxu0 }
 0x17d   :  { %v4308_v1 = vmax.f32 %v2496_v33, 0.0  ;;  %v2488_v57 = vadd.f32 %v8729_v44, %v2487_v9 }
 0x17e   :  { %v7509_v10 = vpop.f32.mrf.mxu0  ;;  %7066 = vmatpush3.bf16.msra.mxu1 %v8864_v36 }
 0x17f   :  { %7067 = vmatprep.subr.bf16.mxu1 %v4798_v34  ;;  %v2499_v43 = vadd.f32 %v7509_v10, %v8729_v44 }
 0x180   :  { %v2490_v36 = vpop.f32.mrf.mxu0 }
 0x181   :  { %v4309_v54 = vmax.f32 %v2499_v43, 0.0  ;;  %v2491_v0 = vadd.f32 %v8729_v44, %v2490_v36  ;;  %v2480_v36 = vadd.f32 %v9029_v41, %v8729_v44  ;;  %v8189_v41 = vld [vmem:[%s11025_s0 + $0x320] sm:$0xff]  }
 0x182   :  { %v9072_v15 = vpop.f32.mrf.mxu0  ;;  %7607 = vmatmul.mubr.bf16.gmra.mxu0 %v8178_v21  ;;  %7068 = vmatpush3.bf16.msra.mxu1 %v8868_v3 }
 0x183   :  { %7610 = vmatprep.mubr.bf16.mxu0 %v8179_v39  ;;  %v4813_v8 = vpack.c.bf16 %v4309_v54, %v4308_v1  ;;  %v4307_v18 = vmax.f32 %v2491_v0, 0.0  ;;  %v4304_v33 = vmax.f32 %v2480_v36, 0.0 }
 0x184   :  { %v9077_v48 = vpop.f32.mrf.mxu0 }
 0x185   :  { %5264 = vmatmul.mubr.bf16.vlgmr.msra.gmra.mxu1 %v6695_v13  ;;  %v4306_v13 = vmax.f32 %v2488_v57, 0.0 }
 0x186   :  { %v9079_v20 = vpop.f32.mrf.mxu0  ;;  %5304 = vmatprep.mubr.bf16.mxu1 %v6698_v19 }
 0x188   :  { %v9087_v56 = vpop.f32.mrf.mxu0 }
 0x18a   :  { %v9089_v3 = vpop.f32.mrf.mxu0  ;;  %7611 = vmatmul.mubr.bf16.gmra.mxu0 %v8180_v22  ;;  %v8188_v22 = vld [vmem:[%s11025_s0 + $0x318] sm:$0xff]  }
 0x18b   :  { %7614 = vmatprep.mubr.bf16.mxu0 %v8181_v17  ;;  %v4305_v17 = vmax.f32 %v2483_v4, 0.0 }
 0x18c   :  { %v9091_v24 = vpop.f32.mrf.mxu0 }
 0x18d   :  { %v4811_v54 = vpack.c.bf16 %v4305_v17, %v4304_v33  ;;  %v9180_v17 = vld [vmem:[%s11026_s3] ss:$0 sm:$0xff]  ;;  %v9215_v33 = vld [vmem:[%s11027_s1 + $0x98] sm:$0xff] }
 0x18e   :  { %v9093_v25 = vpop.f32.mrf.mxu0 }
 0x190   :  { %v9101_v30 = vpop.f32.mrf.mxu0 }
 0x192   :  { %v7520_v63 = vpop.f32.mrf.mxu0  ;;  %7615 = vmatmul.mubr.bf16.gmra.mxu0 %v8182_v35 }
 0x193   :  { %7618 = vmatprep.mubr.bf16.mxu0 %v8183_v23  ;;  %v2544_v16 = vadd.f32 %v7520_v63, %v8729_v44 }
 0x194   :  { %v2535_v31 = vpop.f32.mrf.mxu0 }
 0x195   :  { %v4320_v19 = vmax.f32 %v2544_v16, 0.0  ;;  %v2536_v35 = vadd.f32 %v8729_v44, %v2535_v31  ;;  %v8190_v16 = vld [vmem:[%s11025_s0 + $0x328] sm:$0xff]  }
 0x196   :  { %v7521_v32 = vpop.f32.mrf.mxu0 }
 0x197   :  { %v2547_v29 = vadd.f32 %v7521_v32, %v8729_v44  ;;  %v2475_v32 = vadd.f32 %v8729_v44, %v9050_v5  ;;  %v4318_v5 = vmax.f32 %v2536_v35, 0.0 }
 0x198   :  { %v2538_v28 = vpop.f32.mrf.mxu0 }
 0x199   :  { %v4321_v34 = vmax.f32 %v2547_v29, 0.0  ;;  %v2539_v21 = vadd.f32 %v8729_v44, %v2538_v28  ;;  %v4303_v0 = vmax.f32 %v2475_v32, 0.0  ;;  %v2504_v32 = vadd.f32 %v9180_v17, %v9077_v48  ;;  %v8194_v48 = vld [vmem:[%s11025_s0 + $0x348] sm:$0xff]  }
 0x19a   :  { %v7524_v12 = vpop.f32.mrf.mxu0  ;;  %7619 = vmatmul.mubr.bf16.gmra.mxu0 %v8184_v37  ;;  %v4812_v37 = vpack.c.bf16 %v4307_v18, %v4306_v13 }
 0x19b   :  { %7622 = vmatprep.mubr.bf16.mxu0 %v8185_v38  ;;  %v2560_v47 = vadd.f32 %v7524_v12, %v8729_v44  ;;  %v2531_v38 = vadd.f32 %v9093_v25, %v8729_v44  ;;  %v4819_v28 = vpack.c.bf16 %v4321_v34, %v4320_v19  ;;  %v4319_v43 = vmax.f32 %v2539_v21, 0.0 }
 0x19c   :  { %v2551_v2 = vpop.f32.mrf.mxu0 }
 0x19d   :  { %v2552_v52 = vadd.f32 %v8729_v44, %v2551_v2  ;;  %v4324_v62 = vmax.f32 %v2560_v47, 0.0  ;;  %v4317_v29 = vmax.f32 %v2531_v38, 0.0 }
 0x19e   :  { %v7525_v50 = vpop.f32.mrf.mxu0 }
 0x19f   :  { %v2563_v14 = vadd.f32 %v7525_v50, %v8729_v44  ;;  %v4322_v61 = vmax.f32 %v2552_v52, 0.0  ;;  %v2472_v50 = vadd.f32 %v8729_v44, %v9033_v59  ;;  %v2523_v59 = vadd.f32 %v8729_v44, %v9101_v30 }
 0x1a0   :  { %v2554_v55 = vpop.f32.mrf.mxu0 }
 0x1a1   :  { %v4325_v42 = vmax.f32 %v2563_v14, 0.0  ;;  %v2555_v60 = vadd.f32 %v8729_v44, %v2554_v55  ;;  %v4315_v34 = vmax.f32 %v2523_v59, 0.0 }
 0x1a2   :  { %v7528_v26 = vpop.f32.mrf.mxu0  ;;  %7623 = vmatmul.mubr.bf16.gmra.mxu0 %v8186_v51  ;;  %v2528_v51 = vadd.f32 %v9089_v3, %v8729_v44 }
 0x1a3   :  { %v4821_v6 = vpack.c.bf16 %v4325_v42, %v4324_v62  ;;  %v4323_v7 = vmax.f32 %v2555_v60, 0.0  ;;  %7626 = vmatprep.mubr.bf16.mxu0 %v8187_v53  ;;  %v2576_v39 = vadd.f32 %v7528_v26, %v8729_v44  ;;  %v4818_v42 = vpack.c.bf16 %v4319_v43, %v4318_v5 }
 0x1a4   :  { %v2567_v10 = vpop.f32.mrf.mxu0  ;;  %v4302_v60 = vmax.f32 %v2472_v50, 0.0  ;;  %v4316_v1 = vmax.f32 %v2528_v51, 0.0  ;;  %v2520_v26 = vadd.f32 %v8729_v44, %v9091_v24  ;;  %v6697_v50 = vcombine.low %v9063_v40, %v9068_v11  ;;  %v8197_v40 = vld [vmem:[%s11025_s0 + $0x360] sm:$0xff]  }
 0x1a5   :  { %7075 = vmatprep.subr.bf16.mxu1 %v4821_v6  ;;  %v4820_v9 = vpack.c.bf16 %v4323_v7, %v4322_v61  ;;  %v2568_v23 = vadd.f32 %v8729_v44, %v2567_v10  ;;  %v4328_v31 = vmax.f32 %v2576_v39, 0.0  ;;  %v8191_v61 = vld [vmem:[%s11025_s0 + $0x330] sm:$0xff]   ;;  %v2515_v7 = vadd.f32 %v9079_v20, %v8729_v44 }
 0x1a6   :  { %v7529_v49 = vpop.f32.mrf.mxu0  ;;  %7076 = vmatpush3.bf16.msra.mxu1 %v4813_v8  ;;  %v4810_v6 = vpack.c.bf16 %v4303_v0, %v4302_v60  ;;  %v4817_v8 = vpack.c.bf16 %v4317_v29, %v4316_v1  ;;  %v2512_v39 = vadd.f32 %v9072_v15, %v8729_v44  ;;  %v4314_v36 = vmax.f32 %v2520_v26, 0.0  ;;  %v8198_v29 = vld [vmem:[%s11025_s0 + $0x368] sm:$0xff]   ;;  %v8200_v1 = vld [vmem:[%s11025_s0 + $0x378] sm:$0xff]  }
 0x1a7   :  { %v2579_v63 = vadd.f32 %v7529_v49, %v8729_v44  ;;  %7077 = vmatprep.subr.bf16.mxu1 %v4820_v9  ;;  %v4326_v14 = vmax.f32 %v2568_v23, 0.0 }
 0x1a8   :  { %v2570_v12 = vpop.f32.mrf.mxu0  ;;  %v4816_v35 = vpack.c.bf16 %v4315_v34, %v4314_v36 }
 0x1a9   :  { %v4329_v2 = vmax.f32 %v2579_v63, 0.0  ;;  %v2571_v47 = vadd.f32 %v8729_v44, %v2570_v12  ;;  %v8192_v63 = vld [vmem:[%s11025_s0 + $0x338] sm:$0xff]  }
 0x1aa   :  { %v7532_v52 = vpop.f32.mrf.mxu0  ;;  %7627 = vmatmul.mubr.bf16.gmra.mxu0 %v8188_v22  ;;  %7078 = vmatpush3.bf16.msra.mxu1 %v4812_v37  ;;  %v4313_v22 = vmax.f32 %v2515_v7, 0.0 }
 0x1ab   :  { %v9149_v25 = vpack.c.bf16 %v4329_v2, %v4328_v31  ;;  %v4327_v53 = vmax.f32 %v2571_v47, 0.0  ;;  %7079 = vmatprep.subr.bf16.mxu1 %v4819_v28  ;;  %7630 = vmatprep.mubr.bf16.mxu0 %v8189_v41  ;;  %v2592_v3 = vadd.f32 %v7532_v52, %v8729_v44  ;;  %v4312_v41 = vmax.f32 %v2512_v39, 0.0  ;;  %v8195_v47 = vld [vmem:[%s11025_s0 + $0x350] sm:$0xff]  }
 0x1ac   :  { %v2583_v55 = vpop.f32.mrf.mxu0 }
 0x1ad   :  { %v9153_v62 = vpack.c.bf16 %v4327_v53, %v4326_v14  ;;  %v2584_v4 = vadd.f32 %v8729_v44, %v2583_v55  ;;  %v4332_v10 = vmax.f32 %v2592_v3, 0.0  ;;  %v4815_v38 = vpack.c.bf16 %v4313_v22, %v4312_v41  ;;  %v8196_v53 = vld [vmem:[%s11025_s0 + $0x358] sm:$0xff]   ;;  %v8199_v55 = vld [vmem:[%s11025_s0 + $0x370] sm:$0xff]  }
 0x1ae   :  { %v7533_v57 = vpop.f32.mrf.mxu0  ;;  %7080 = vmatpush3.bf16.msra.mxu1 %v4811_v54 }
 0x1af   :  { %v2595_v30 = vadd.f32 %v7533_v57, %v8729_v44  ;;  %7081 = vmatprep.subr.bf16.mxu1 %v4818_v42  ;;  %v4330_v13 = vmax.f32 %v2584_v4, 0.0  ;;  %v8201_v57 = vld [vmem:[%s11025_s0 + $0x380] sm:$0xff]  }
 0x1b0   :  { %v2586_v18 = vpop.f32.mrf.mxu0 }
 0x1b1   :  { %v4333_v21 = vmax.f32 %v2595_v30, 0.0  ;;  %v2587_v24 = vadd.f32 %v8729_v44, %v2586_v18  ;;  %v2507_v44 = vadd.f32 %v9180_v17, %v9087_v56  ;;  %v8193_v56 = vld [vmem:[%s11025_s0 + $0x340] sm:$0xff]  }
 0x1b2   :  { %v9171_v9 = vpop.f32.mrf.mxu0  ;;  %7631 = vmatmul.mubr.bf16.gmra.mxu0 %v8190_v16  ;;  %7082 = vmatpush3.bf16.msra.mxu1 %v4810_v6 }
 0x1b3   :  { %v9173_v19 = vpack.c.bf16 %v4333_v21, %v4332_v10  ;;  %v4331_v49 = vmax.f32 %v2587_v24, 0.0  ;;  %7083 = vmatprep.subr.bf16.mxu1 %v4817_v8  ;;  %7634 = vmatprep.mubr.bf16.mxu0 %v8191_v61  ;;  %v4311_v28 = vmax.f32 %v2507_v44, 0.0  ;;  %v8202_v8 = vld [vmem:[%s11025_s0 + $0x388] sm:$0xff]   ;;  %v8203_v10 = vld [vmem:[%s11025_s0 + $0x390] sm:$0xff]  }
 0x1b4   :  { %v9175_v20 = vpop.f32.mrf.mxu0 }
 0x1b5   :  { %v9184_v15 = vpack.c.bf16 %v4331_v49, %v4330_v13  ;;  %v7848_v13 = vpop.f32.mrf.mxu1 }
 0x1b6   :  { %v9186_v23 = vpop.f32.mrf.mxu0  ;;  %7084 = vmatpush3.bf16.msra.mxu1 %v9031_v58  ;;  %v4310_v58 = vmax.f32 %v2504_v32, 0.0 }
 0x1b7   :  { %7085 = vmatprep.subr.bf16.mxu1 %v4816_v35  ;;  %v2611_v49 = vadd.f32 %v9180_v17, %v9186_v23 }
 0x1b8   :  { %v9197_v37 = vpop.f32.mrf.mxu0  ;;  %v4814_v31 = vpack.c.bf16 %v4311_v28, %v4310_v58 }
 0x1ba   :  { %v7540_v12 = vpop.f32.mrf.mxu0  ;;  %7635 = vmatmul.mubr.bf16.gmra.mxu0 %v8192_v63  ;;  %7086 = vmatpush3.bf16.msra.mxu1 %v9037_v46  ;;  %v9210_v46 = vld [vmem:[%s11027_s1 + $0x18] sm:$0xff] }
 0x1bb   :  { %7087 = vmatprep.subr.bf16.mxu1 %v4815_v38  ;;  %7638 = vmatprep.mubr.bf16.mxu0 %v8193_v56  ;;  %v6700_v52 = vcombine.high %v9210_v46, %v9215_v33  ;;  %v2624_v6 = vadd.f32 %v9180_v17, %v7540_v12  ;;  %v9274_v38 = vpop.f32.mrf.mxu1 }
 0x1bc   :  { %v2615_v43 = vpop.f32.mrf.mxu0  ;;  %11033 = vst [vmem:[#allocation2_spill] sm:$0xff] %v9274_v38 }
 0x1bd   :  { %v4340_v63 = vmax.f32 %v2624_v6, 0.0  ;;  %v2616_v41 = vadd.f32 %v9180_v17, %v2615_v43  ;;  %v2608_v43 = vadd.f32 %v9180_v17, %v9171_v9 }
 0x1be   :  { %v7541_v2 = vpop.f32.mrf.mxu0  ;;  %7088 = vmatpush3.bf16.msra.mxu1 %v9007_v45 }
 0x1bf   :  { %7089 = vmatprep.subr.bf16.mxu1 %v4814_v31  ;;  %v2627_v4 = vadd.f32 %v9180_v17, %v7541_v2  ;;  %v3856_v31 = vadd.f32 %v9180_v17, %v7848_v13 }
 0x1c0   :  { %v2618_v45 = vpop.f32.mrf.mxu0 }
 0x1c1   :  { %v4341_v21 = vmax.f32 %v2627_v4, 0.0  ;;  %v2619_v24 = vadd.f32 %v9180_v17, %v2618_v45 }
 0x1c2   :  { %v9219_v51 = vpop.f32.mrf.mxu0  ;;  %7639 = vmatmul.mubr.bf16.gmra.mxu0 %v8194_v48  ;;  %7090 = vmatpush3.bf16.msra.mxu1 %v9011_v27 }
 0x1c3   :  { %7642 = vmatprep.mubr.bf16.mxu0 %v8195_v47  ;;  %v4829_v23 = vpack.c.bf16 %v4341_v21, %v4340_v63  ;;  %v4339_v2 = vmax.f32 %v2619_v24, 0.0  ;;  %v4336_v21 = vmax.f32 %v2608_v43, 0.0  ;;  %v2600_v24 = vadd.f32 %v9180_v17, %v9175_v20 }
 0x1c4   :  { %v9224_v5 = vpop.f32.mrf.mxu0 }
 0x1c5   :  { %5305 = vmatmul.mubr.bf16.vlgmr.msra.gmra.mxu1 %v6697_v50  ;;  %v4337_v50 = vmax.f32 %v2611_v49, 0.0 }
 0x1c6   :  { %v9226_v14 = vpop.f32.mrf.mxu0  ;;  %5345 = vmatprep.mubr.bf16.mxu1 %v6700_v52 }
 0x1c7   :  { %v2643_v43 = vadd.f32 %v9180_v17, %v9226_v14 }
 0x1c8   :  { %v9234_v11 = vpop.f32.mrf.mxu0 }
 0x1ca   :  { %v9236_v27 = vpop.f32.mrf.mxu0  ;;  %7643 = vmatmul.mubr.bf16.gmra.mxu0 %v8196_v53 }
 0x1cb   :  { %7646 = vmatprep.mubr.bf16.mxu0 %v8197_v40  ;;  %v2603_v40 = vadd.f32 %v9180_v17, %v9197_v37  ;;  %v8205_v37 = vld [vmem:[%s11025_s0 + $0x3a0] sm:$0xff]  }
 0x1cc   :  { %v9238_v54 = vpop.f32.mrf.mxu0 }
 0x1cd   :  { %v4335_v63 = vmax.f32 %v2603_v40, 0.0 }
 0x1ce   :  { %v9240_v0 = vpop.f32.mrf.mxu0 }
 0x1d0   :  { %v9248_v59 = vpop.f32.mrf.mxu0 }
 0x1d1   :  { %v2651_v20 = vadd.f32 %v9180_v17, %v9248_v59 }
 0x1d2   :  { %v7552_v3 = vpop.f32.mrf.mxu0  ;;  %7647 = vmatmul.mubr.bf16.gmra.mxu0 %v8198_v29  ;;  %v4338_v29 = vmax.f32 %v2616_v41, 0.0 }
 0x1d3   :  { %7650 = vmatprep.mubr.bf16.mxu0 %v8199_v55  ;;  %v2672_v32 = vadd.f32 %v9180_v17, %v7552_v3 }
 0x1d4   :  { %v2663_v42 = vpop.f32.mrf.mxu0 }
 0x1d5   :  { %v4352_v55 = vmax.f32 %v2672_v32, 0.0  ;;  %v2664_v3 = vadd.f32 %v9180_v17, %v2663_v42  ;;  %v4828_v42 = vpack.c.bf16 %v4339_v2, %v4338_v29  ;;  %v2648_v2 = vadd.f32 %v9180_v17, %v9238_v54 }
 0x1d6   :  { %v7553_v60 = vpop.f32.mrf.mxu0 }
 0x1d7   :  { %v2675_v39 = vadd.f32 %v9180_v17, %v7553_v60 }
 0x1d8   :  { %v2666_v16 = vpop.f32.mrf.mxu0 }
 0x1d9   :  { %v4353_v48 = vmax.f32 %v2675_v39, 0.0  ;;  %v2667_v47 = vadd.f32 %v9180_v17, %v2666_v16  ;;  %v2656_v39 = vadd.f32 %v9180_v17, %v9236_v27 }
 0x1da   :  { %v7556_v26 = vpop.f32.mrf.mxu0  ;;  %7651 = vmatmul.mubr.bf16.gmra.mxu0 %v8200_v1  ;;  %v8204_v1 = vld [vmem:[%s11025_s0 + $0x398] sm:$0xff]  }
 0x1db   :  { %7654 = vmatprep.mubr.bf16.mxu0 %v8201_v57  ;;  %v2688_v61 = vadd.f32 %v9180_v17, %v7556_v26  ;;  %v7849_v57 = vpop.f32.mrf.mxu1  ;;  %v4648_v26 = vmax.f32 %v3856_v31, 0.0  ;;  %v4351_v6 = vmax.f32 %v2667_v47, 0.0  ;;  %v8207_v47 = vld [vmem:[%s11025_s0 + $0x3b0] sm:$0xff]  }
 0x1dc   :  { %v2679_v30 = vpop.f32.mrf.mxu0  ;;  %v3859_v4 = vadd.f32 %v9180_v17, %v7849_v57 }
 0x1dd   :  { %v2680_v18 = vadd.f32 %v9180_v17, %v2679_v30  ;;  %v4356_v22 = vmax.f32 %v2688_v61, 0.0  ;;  %v2659_v30 = vadd.f32 %v9180_v17, %v9240_v0  ;;  %v4835_v61 = vpack.c.bf16 %v4353_v48, %v4352_v55 }
 0x1de   :  { %v7557_v7 = vpop.f32.mrf.mxu0  ;;  %v2640_v55 = vadd.f32 %v9180_v17, %v9219_v51 }
 0x1df   :  { %v2691_v34 = vadd.f32 %v9180_v17, %v7557_v7  ;;  %v4354_v28 = vmax.f32 %v2680_v18, 0.0  ;;  %v4349_v41 = vmax.f32 %v2659_v30, 0.0 }
 0x1e0   :  { %v2682_v36 = vpop.f32.mrf.mxu0  ;;  %v4344_v30 = vmax.f32 %v2640_v55, 0.0  ;;  %v8219_v55 = vld [vmem:[%s11025_s0 + $0x410] sm:$0xff]  }
 0x1e1   :  { %v4357_v44 = vmax.f32 %v2691_v34, 0.0  ;;  %v2683_v35 = vadd.f32 %v9180_v17, %v2682_v36  ;;  %v4350_v36 = vmax.f32 %v2664_v3, 0.0 }
 0x1e2   :  { %v7560_v56 = vpop.f32.mrf.mxu0  ;;  %7655 = vmatmul.mubr.bf16.gmra.mxu0 %v8202_v8 }
 0x1e3   :  { %v4837_v12 = vpack.c.bf16 %v4357_v44, %v4356_v22  ;;  %v4355_v58 = vmax.f32 %v2683_v35, 0.0  ;;  %7658 = vmatprep.mubr.bf16.mxu0 %v8203_v10  ;;  %v2704_v52 = vadd.f32 %v9180_v17, %v7560_v56  ;;  %v4649_v10 = vmax.f32 %v3859_v4, 0.0 }
 0x1e4   :  { %v2695_v45 = vpop.f32.mrf.mxu0  ;;  %v4827_v35 = vpack.c.bf16 %v4337_v50, %v4336_v21 }
 0x1e5   :  { %7097 = vmatprep.subr.bf16.mxu1 %v4837_v12  ;;  %v4836_v53 = vpack.c.bf16 %v4355_v58, %v4354_v28  ;;  %v2696_v9 = vadd.f32 %v9180_v17, %v2695_v45  ;;  %v4360_v8 = vmax.f32 %v2704_v52, 0.0  ;;  %v9302_v44 = vpack.c.bf16 %v4649_v10, %v4648_v26 }
 0x1e6   :  { %v7561_v60 = vpop.f32.mrf.mxu0  ;;  %7098 = vmatpush3.bf16.msra.mxu1 %v4829_v23  ;;  %v4834_v28 = vpack.c.bf16 %v4351_v6, %v4350_v36  ;;  %v4334_v12 = vmax.f32 %v2600_v24, 0.0  ;;  %v4348_v58 = vmax.f32 %v2656_v39, 0.0  ;;  %v8206_v23 = vld [vmem:[%s11025_s0 + $0x3a8] sm:$0xff]   ;;  %v8211_v24 = vld [vmem:[%s11025_s0 + $0x3d0] sm:$0xff]   ;;  %v9363_v39 = vld [vmem:[%s11027_s1 + $0xa0] sm:$0xff]  ;;  %v6699_v36 = vcombine.low %v9210_v46, %v9215_v33 }
 0x1e7   :  { %v2707_v16 = vadd.f32 %v9180_v17, %v7561_v60  ;;  %7099 = vmatprep.subr.bf16.mxu1 %v4836_v53  ;;  %v4358_v0 = vmax.f32 %v2696_v9, 0.0  ;;  %11034 = vst [vmem:[#allocation3_spill] sm:$0xff] %v9302_v44  ;;  %v4347_v53 = vmax.f32 %v2651_v20, 0.0  ;;  %v4346_v60 = vmax.f32 %v2648_v2, 0.0  ;;  %v8213_v46 = vld [vmem:[%s11025_s0 + $0x3e0] sm:$0xff]   ;;  %v8214_v20 = vld [vmem:[%s11025_s0 + $0x3e8] sm:$0xff]  }
 0x1e8   :  { %v2698_v7 = vpop.f32.mrf.mxu0  ;;  %v4826_v45 = vpack.c.bf16 %v4335_v63, %v4334_v12  ;;  %v4833_v50 = vpack.c.bf16 %v4349_v41, %v4348_v58  ;;  %v8212_v63 = vld [vmem:[%s11025_s0 + $0x3d8] sm:$0xff]   ;;  %v8217_v2 = vld [vmem:[%s11025_s0 + $0x400] sm:$0xff]  }
 0x1e9   :  { %v4361_v18 = vmax.f32 %v2707_v16, 0.0  ;;  %v2699_v34 = vadd.f32 %v9180_v17, %v2698_v7  ;;  %v4345_v16 = vmax.f32 %v2643_v43, 0.0  ;;  %v4832_v51 = vpack.c.bf16 %v4347_v53, %v4346_v60  ;;  %v8218_v53 = vld [vmem:[%s11025_s0 + $0x408] sm:$0xff]  }
 0x1ea   :  { %v7564_v13 = vpop.f32.mrf.mxu0  ;;  %7659 = vmatmul.mubr.bf16.gmra.mxu0 %v8204_v1  ;;  %7100 = vmatpush3.bf16.msra.mxu1 %v4828_v42  ;;  %v8208_v42 = vld [vmem:[%s11025_s0 + $0x3b8] sm:$0xff]  }
 0x1eb   :  { %v9300_v49 = vpack.c.bf16 %v4361_v18, %v4360_v8  ;;  %v4359_v22 = vmax.f32 %v2699_v34, 0.0  ;;  %7101 = vmatprep.subr.bf16.mxu1 %v4835_v61  ;;  %7662 = vmatprep.mubr.bf16.mxu0 %v8205_v37  ;;  %v2720_v56 = vadd.f32 %v9180_v17, %v7564_v13  ;;  %v2635_v37 = vadd.f32 %v9180_v17, %v9234_v11  ;;  %v8209_v11 = vld [vmem:[%s11025_s0 + $0x3c0] sm:$0xff]  }
 0x1ec   :  { %v2711_v32 = vpop.f32.mrf.mxu0  ;;  %v2632_v61 = vadd.f32 %v9180_v17, %v9224_v5  ;;  %v4831_v7 = vpack.c.bf16 %v4345_v16, %v4344_v30  ;;  %v8210_v5 = vld [vmem:[%s11025_s0 + $0x3c8] sm:$0xff]  }
 0x1ed   :  { %v9306_v27 = vpack.c.bf16 %v4359_v22, %v4358_v0  ;;  %v2712_v48 = vadd.f32 %v9180_v17, %v2711_v32  ;;  %v4364_v40 = vmax.f32 %v2720_v56, 0.0  ;;  %v4343_v8 = vmax.f32 %v2635_v37, 0.0  ;;  %v8215_v56 = vld [vmem:[%s11025_s0 + $0x3f0] sm:$0xff]  }
 0x1ee   :  { %v7565_v31 = vpop.f32.mrf.mxu0  ;;  %7102 = vmatpush3.bf16.msra.mxu1 %v4827_v35 }
 0x1ef   :  { %v2723_v59 = vadd.f32 %v9180_v17, %v7565_v31  ;;  %7103 = vmatprep.subr.bf16.mxu1 %v4834_v28  ;;  %v4362_v1 = vmax.f32 %v2712_v48, 0.0 }
 0x1f0   :  { %v2714_v52 = vpop.f32.mrf.mxu0 }
 0x1f1   :  { %v4365_v29 = vmax.f32 %v2723_v59, 0.0  ;;  %v2715_v54 = vadd.f32 %v9180_v17, %v2714_v52 }
 0x1f2   :  { %v9324_v3 = vpop.f32.mrf.mxu0  ;;  %7663 = vmatmul.mubr.bf16.gmra.mxu0 %v8206_v23  ;;  %7104 = vmatpush3.bf16.msra.mxu1 %v4826_v45  ;;  %v8216_v23 = vld [vmem:[%s11025_s0 + $0x3f8] sm:$0xff]  }
 0x1f3   :  { %v9326_v57 = vpack.c.bf16 %v4365_v29, %v4364_v40  ;;  %v4363_v9 = vmax.f32 %v2715_v54, 0.0  ;;  %7105 = vmatprep.subr.bf16.mxu1 %v4833_v50  ;;  %7666 = vmatprep.mubr.bf16.mxu0 %v8207_v47  ;;  %v9410_v40 = vpop.f32.mrf.mxu1 }
 0x1f4   :  { %v9328_v14 = vpop.f32.mrf.mxu0  ;;  %11035 = vst [vmem:[#allocation4_spill] sm:$0xff] %v9410_v40 }
 0x1f5   :  { %v9332_v26 = vpack.c.bf16 %v4363_v9, %v4362_v1  ;;  %v7852_v37 = vpop.f32.mrf.mxu1 }
 0x1f6   :  { %v9334_v4 = vpop.f32.mrf.mxu0  ;;  %7106 = vmatpush3.bf16.msra.mxu1 %v9173_v19  ;;  %v4342_v19 = vmax.f32 %v2632_v61, 0.0 }
 0x1f7   :  { %7107 = vmatprep.subr.bf16.mxu1 %v4832_v51  ;;  %v9421_v51 = vadd.f32 %v9180_v17, %v9334_v4  ;;  %v3872_v4 = vadd.f32 %v9180_v17, %v7852_v37 }
 0x1f8   :  { %v9345_v6 = vpop.f32.mrf.mxu0  ;;  %v4830_v10 = vpack.c.bf16 %v4343_v8, %v4342_v19  ;;  %v9426_v19 = vpop.f32.mrf.mxu1 }
 0x1f9   :  { %11036 = vst [vmem:[#allocation5_spill] sm:$0xff] %v9426_v19 }
 0x1fa   :  { %v7572_v18 = vpop.f32.mrf.mxu0  ;;  %7667 = vmatmul.mubr.bf16.gmra.mxu0 %v8208_v42  ;;  %7108 = vmatpush3.bf16.msra.mxu1 %v9184_v15  ;;  %v9358_v15 = vld [vmem:[%s11027_s1 + $0x20] sm:$0xff] }
 0x1fb   :  { %7109 = vmatprep.subr.bf16.mxu1 %v4831_v7  ;;  %7670 = vmatprep.mubr.bf16.mxu0 %v8209_v11  ;;  %v6702_v0 = vcombine.high %v9358_v15, %v9363_v39  ;;  %v2752_v50 = vadd.f32 %v9180_v17, %v7572_v18 }
 0x1fc   :  { %v2743_v34 = vpop.f32.mrf.mxu0 }
 0x1fd   :  { %v4372_v11 = vmax.f32 %v2752_v50, 0.0  ;;  %v2744_v7 = vadd.f32 %v9180_v17, %v2743_v34  ;;  %v2736_v34 = vadd.f32 %v9180_v17, %v9324_v3 }
 0x1fe   :  { %v7573_v21 = vpop.f32.mrf.mxu0  ;;  %7110 = vmatpush3.bf16.msra.mxu1 %v9149_v25 }
 0x1ff   :  { %7111 = vmatprep.subr.bf16.mxu1 %v4830_v10  ;;  %v2755_v47 = vadd.f32 %v9180_v17, %v7573_v21  ;;  %v4368_v37 = vmax.f32 %v2736_v34, 0.0 }
 0x200   :  { %v2746_v25 = vpop.f32.mrf.mxu0 }
 0x201   :  { %v4373_v60 = vmax.f32 %v2755_v47, 0.0  ;;  %v2747_v1 = vadd.f32 %v9180_v17, %v2746_v25 }
 0x202   :  { %v9367_v13 = vpop.f32.mrf.mxu0  ;;  %7671 = vmatmul.mubr.bf16.gmra.mxu0 %v8210_v5  ;;  %7112 = vmatpush3.bf16.msra.mxu1 %v9153_v62 }
 0x203   :  { %7674 = vmatprep.mubr.bf16.mxu0 %v8211_v24  ;;  %v4845_v24 = vpack.c.bf16 %v4373_v60, %v4372_v11  ;;  %v4371_v25 = vmax.f32 %v2747_v1, 0.0 }
 0x204   :  { %v9372_v22 = vpop.f32.mrf.mxu0 }
 0x205   :  { %5346 = vmatmul.mubr.bf16.vlgmr.msra.gmra.mxu1 %v6699_v36 }
 0x206   :  { %v9374_v35 = vpop.f32.mrf.mxu0  ;;  %5386 = vmatprep.mubr.bf16.mxu1 %v6702_v0 }
 0x208   :  { %v9382_v33 = vpop.f32.mrf.mxu0 }
 0x20a   :  { %v9384_v62 = vpop.f32.mrf.mxu0  ;;  %7675 = vmatmul.mubr.bf16.gmra.mxu0 %v8212_v63 }
 0x20b   :  { %7678 = vmatprep.mubr.bf16.mxu0 %v8213_v46  ;;  %v7853_v46 = vpop.f32.mrf.mxu1 }
 0x20c   :  { %v9386_v41 = vpop.f32.mrf.mxu0  ;;  %v3875_v50 = vadd.f32 %v9180_v17, %v7853_v46 }
 0x20d   :  { %v2776_v46 = vadd.f32 %v9180_v17, %v9386_v41  ;;  %v2771_v41 = vadd.f32 %v9180_v17, %v9374_v35 }
 0x20e   :  { %v9388_v32 = vpop.f32.mrf.mxu0 }
 0x210   :  { %v9396_v28 = vpop.f32.mrf.mxu0 }
 0x212   :  { %v7584_v12 = vpop.f32.mrf.mxu0  ;;  %7679 = vmatmul.mubr.bf16.gmra.mxu0 %v8214_v20  ;;  %v4369_v20 = vmax.f32 %v9421_v51, 0.0  ;;  %v2728_v51 = vadd.f32 %v9180_v17, %v9328_v14 }
 0x213   :  { %7682 = vmatprep.mubr.bf16.mxu0 %v8215_v56  ;;  %v2800_v8 = vadd.f32 %v9180_v17, %v7584_v12 }
 0x214   :  { %v2791_v58 = vpop.f32.mrf.mxu0 }
 0x216   :  { %v7585_v31 = vpop.f32.mrf.mxu0 }
 0x217   :  { %v2803_v9 = vadd.f32 %v9180_v17, %v7585_v31  ;;  %v2731_v31 = vadd.f32 %v9180_v17, %v9345_v6  ;;  %v4652_v6 = vmax.f32 %v3872_v4, 0.0 }
 0x218   :  { %v2794_v48 = vpop.f32.mrf.mxu0 }
 0x219   :  { %v4385_v36 = vmax.f32 %v2803_v9, 0.0  ;;  %v2795_v0 = vadd.f32 %v9180_v17, %v2794_v48  ;;  %v8220_v48 = vld [vmem:[%s11025_s0 + $0x418] sm:$0xff]  }
 0x21a   :  { %v7588_v59 = vpop.f32.mrf.mxu0  ;;  %7683 = vmatmul.mubr.bf16.gmra.mxu0 %v8216_v23  ;;  %v4370_v23 = vmax.f32 %v2744_v7, 0.0 }
 0x21b   :  { %7686 = vmatprep.mubr.bf16.mxu0 %v8217_v2  ;;  %v2816_v43 = vadd.f32 %v9180_v17, %v7588_v59  ;;  %v4384_v2 = vmax.f32 %v2800_v8, 0.0  ;;  %v2792_v59 = vadd.f32 %v9180_v17, %v2791_v58  ;;  %v2787_v58 = vadd.f32 %v9180_v17, %v9388_v32 }
 0x21c   :  { %v2807_v45 = vpop.f32.mrf.mxu0 }
 0x21d   :  { %v2808_v29 = vadd.f32 %v9180_v17, %v2807_v45  ;;  %v4388_v42 = vmax.f32 %v2816_v43, 0.0  ;;  %v8221_v43 = vld [vmem:[%s11025_s0 + $0x420] sm:$0xff]  }
 0x21e   :  { %v7589_v52 = vpop.f32.mrf.mxu0 }
 0x21f   :  { %v2819_v54 = vadd.f32 %v9180_v17, %v7589_v52  ;;  %v4386_v10 = vmax.f32 %v2808_v29, 0.0  ;;  %v4844_v52 = vpack.c.bf16 %v4371_v25, %v4370_v23  ;;  %v4383_v29 = vmax.f32 %v2795_v0, 0.0 }
 0x220   :  { %v2810_v16 = vpop.f32.mrf.mxu0  ;;  %v4366_v0 = vmax.f32 %v2728_v51, 0.0 }
 0x221   :  { %v4389_v30 = vmax.f32 %v2819_v54, 0.0  ;;  %v2811_v61 = vadd.f32 %v9180_v17, %v2810_v16  ;;  %v4653_v16 = vmax.f32 %v3875_v50, 0.0  ;;  %v2768_v50 = vadd.f32 %v9180_v17, %v9367_v13 }
 0x222   :  { %v7592_v18 = vpop.f32.mrf.mxu0  ;;  %7687 = vmatmul.mubr.bf16.gmra.mxu0 %v8218_v53  ;;  %v4851_v53 = vpack.c.bf16 %v4385_v36, %v4384_v2  ;;  %v2763_v13 = vadd.f32 %v9180_v17, %v9382_v33  ;;  %v8225_v33 = vld [vmem:[%s11025_s0 + $0x440] sm:$0xff]  }
 0x223   :  { %v4853_v21 = vpack.c.bf16 %v4389_v30, %v4388_v42  ;;  %v4387_v5 = vmax.f32 %v2811_v61, 0.0  ;;  %7690 = vmatprep.mubr.bf16.mxu0 %v8219_v55  ;;  %v2832_v56 = vadd.f32 %v9180_v17, %v7592_v18  ;;  %v9448_v55 = vpop.f32.mrf.mxu1  ;;  %v2784_v42 = vadd.f32 %v9180_v17, %v9384_v62 }
 0x224   :  { %v2823_v63 = vpop.f32.mrf.mxu0  ;;  %11037 = vst [vmem:[#allocation6_spill] sm:$0xff] %v9448_v55  ;;  %v4382_v30 = vmax.f32 %v2792_v59, 0.0  ;;  %v9457_v18 = vpack.c.bf16 %v4653_v16, %v4652_v6  ;;  %v2779_v62 = vadd.f32 %v9180_v17, %v9396_v28 }
 0x225   :  { %7119 = vmatprep.subr.bf16.mxu1 %v4853_v21  ;;  %v4852_v12 = vpack.c.bf16 %v4387_v5, %v4386_v10  ;;  %v2824_v3 = vadd.f32 %v9180_v17, %v2823_v63  ;;  %v4392_v60 = vmax.f32 %v2832_v56, 0.0  ;;  %v7856_v32 = vpop.f32.mrf.mxu1  ;;  %v4843_v10 = vpack.c.bf16 %v4369_v20, %v4368_v37  ;;  %v8222_v56 = vld [vmem:[%s11025_s0 + $0x428] sm:$0xff]  }
 0x226   :  { %v7593_v47 = vpop.f32.mrf.mxu0  ;;  %7120 = vmatpush3.bf16.msra.mxu1 %v4845_v24  ;;  %11038 = vst [vmem:[#allocation7_spill] sm:$0xff] %v9457_v18  ;;  %v4367_v21 = vmax.f32 %v2731_v31, 0.0  ;;  %v4381_v5 = vmax.f32 %v2787_v58, 0.0  ;;  %v4850_v36 = vpack.c.bf16 %v4383_v29, %v4382_v30  ;;  %v4380_v63 = vmax.f32 %v2784_v42, 0.0  ;;  %v8223_v31 = vld [vmem:[%s11025_s0 + $0x430] sm:$0xff]  }
 0x227   :  { %v2835_v45 = vadd.f32 %v9180_v17, %v7593_v47  ;;  %7121 = vmatprep.subr.bf16.mxu1 %v4852_v12  ;;  %v4390_v11 = vmax.f32 %v2824_v3, 0.0  ;;  %v9459_v4 = vpop.f32.mrf.mxu1  ;;  %v3888_v23 = vadd.f32 %v9180_v17, %v7856_v32  ;;  %v4379_v3 = vmax.f32 %v2779_v62, 0.0  ;;  %v8224_v32 = vld [vmem:[%s11025_s0 + $0x438] sm:$0xff]  }
 0x228   :  { %v2826_v54 = vpop.f32.mrf.mxu0  ;;  %v4842_v2 = vpack.c.bf16 %v4367_v21, %v4366_v0  ;;  %v4849_v59 = vpack.c.bf16 %v4381_v5, %v4380_v63 }
 0x229   :  { %v4393_v1 = vmax.f32 %v2835_v45, 0.0  ;;  %v2827_v9 = vadd.f32 %v9180_v17, %v2826_v54  ;;  %v7857_v12 = vpop.f32.mrf.mxu1 }
 0x22a   :  { %v7596_v61 = vpop.f32.mrf.mxu0  ;;  %7691 = vmatmul.mubr.bf16.gmra.mxu0 %v8220_v48  ;;  %7122 = vmatpush3.bf16.msra.mxu1 %v4844_v52  ;;  %v4378_v52 = vmax.f32 %v2776_v46, 0.0 }
 0x22b   :  { %v9455_v7 = vpack.c.bf16 %v4393_v1, %v4392_v60  ;;  %v4391_v8 = vmax.f32 %v2827_v9, 0.0  ;;  %7123 = vmatprep.subr.bf16.mxu1 %v4851_v53  ;;  %7694 = vmatprep.mubr.bf16.mxu0 %v8221_v43  ;;  %v2848_v25 = vadd.f32 %v9180_v17, %v7596_v61  ;;  %v9479_v48 = vpop.f32.mrf.mxu1  ;;  %v4656_v60 = vmax.f32 %v3888_v23, 0.0  ;;  %v8227_v23 = vld [vmem:[%s11025_s0 + $0x450] sm:$0xff]  }
 0x22c   :  { %v2839_v14 = vpop.f32.mrf.mxu0  ;;  %v3891_v1 = vadd.f32 %v9180_v17, %v7857_v12  ;;  %v4377_v9 = vmax.f32 %v2771_v41, 0.0  ;;  %v4848_v42 = vpack.c.bf16 %v4379_v3, %v4378_v52  ;;  %v9540_v41 = vld [vmem:[%s11027_s1 + $0xa8] sm:$0xff] }
 0x22d   :  { %v9463_v24 = vpack.c.bf16 %v4391_v8, %v4390_v11  ;;  %v2840_v34 = vadd.f32 %v9180_v17, %v2839_v14  ;;  %v4396_v45 = vmax.f32 %v2848_v25, 0.0  ;;  %v7860_v29 = vpop.f32.mrf.mxu1  ;;  %v4376_v8 = vmax.f32 %v2768_v50, 0.0 }
 0x22e   :  { %v7597_v20 = vpop.f32.mrf.mxu0  ;;  %7124 = vmatpush3.bf16.msra.mxu1 %v4843_v10  ;;  %v4657_v30 = vmax.f32 %v3891_v1, 0.0  ;;  %v2760_v10 = vadd.f32 %v9180_v17, %v9372_v22  ;;  %v3904_v5 = vadd.f32 %v9180_v17, %v7860_v29  ;;  %v4375_v25 = vmax.f32 %v2763_v13, 0.0  ;;  %v8229_v1 = vld [vmem:[%s11025_s0 + $0x460] sm:$0xff]  }
 0x22f   :  { %v2851_v28 = vadd.f32 %v9180_v17, %v7597_v20  ;;  %7125 = vmatprep.subr.bf16.mxu1 %v4850_v36  ;;  %v4394_v58 = vmax.f32 %v2840_v34, 0.0  ;;  %v9491_v37 = vpop.f32.mrf.mxu1  ;;  %v4847_v62 = vpack.c.bf16 %v4377_v9, %v4376_v8 }
 0x230   :  { %v2842_v47 = vpop.f32.mrf.mxu0  ;;  %v9508_v21 = vpack.c.bf16 %v4657_v30, %v4656_v60  ;;  %v4374_v0 = vmax.f32 %v2760_v10, 0.0  ;;  %v4660_v63 = vmax.f32 %v3904_v5, 0.0 }
 0x231   :  { %v4397_v43 = vmax.f32 %v2851_v28, 0.0  ;;  %v2843_v6 = vadd.f32 %v9180_v17, %v2842_v47  ;;  %v7861_v11 = vpop.f32.mrf.mxu1 }
 0x232   :  { %v9484_v53 = vpop.f32.mrf.mxu0  ;;  %7695 = vmatmul.mubr.bf16.gmra.mxu0 %v8222_v56  ;;  %7126 = vmatpush3.bf16.msra.mxu1 %v4842_v2  ;;  %11039 = vst [vmem:[#allocation8_spill] sm:$0xff] %v9508_v21  ;;  %v3907_v46 = vadd.f32 %v9180_v17, %v7861_v11  ;;  %v4846_v56 = vpack.c.bf16 %v4375_v25, %v4374_v0  ;;  %v9535_v2 = vld [vmem:[%s11027_s1 + $0x28] sm:$0xff] }
 0x233   :  { %v9486_v35 = vpack.c.bf16 %v4397_v43, %v4396_v45  ;;  %v4395_v54 = vmax.f32 %v2843_v6, 0.0  ;;  %7127 = vmatprep.subr.bf16.mxu1 %v4849_v59  ;;  %7698 = vmatprep.mubr.bf16.mxu0 %v8223_v31  ;;  %v6701_v45 = vcombine.low %v9358_v15, %v9363_v39  ;;  %v6704_v6 = vcombine.high %v9535_v2, %v9540_v41 }
 0x234   :  { %v9489_v16 = vpop.f32.mrf.mxu0  ;;  %v4661_v12 = vmax.f32 %v3907_v46, 0.0 }
 0x235   :  { %v9495_v51 = vpack.c.bf16 %v4395_v54, %v4394_v58 }
 0x236   :  { %v9497_v61 = vpop.f32.mrf.mxu0  ;;  %7128 = vmatpush3.bf16.msra.mxu1 %v9326_v57  ;;  %v9513_v57 = vpop.f32.mrf.mxu1 }
 0x237   :  { %7129 = vmatprep.subr.bf16.mxu1 %v4848_v42  ;;  %v9644_v38 = vadd.f32 %v9180_v17, %v9497_v61 }
 0x238   :  { %v9511_v14 = vpop.f32.mrf.mxu0  ;;  %v7864_v22 = vpop.f32.mrf.mxu1 }
 0x239   :  { %v3920_v59 = vadd.f32 %v9180_v17, %v7864_v22  ;;  %v8230_v22 = vld [vmem:[%s11025_s0 + $0x468] sm:$0xff]  }
 0x23a   :  { %v9515_v36 = vpop.f32.mrf.mxu0  ;;  %7699 = vmatmul.mubr.bf16.gmra.mxu0 %v8224_v32  ;;  %7130 = vmatpush3.bf16.msra.mxu1 %v9332_v26  ;;  %v9521_v20 = vpop.f32.mrf.mxu1  ;;  %v8226_v26 = vld [vmem:[%s11025_s0 + $0x448] sm:$0xff]  }
 0x23b   :  { %7131 = vmatprep.subr.bf16.mxu1 %v4847_v62  ;;  %7702 = vmatprep.mubr.bf16.mxu0 %v8225_v33  ;;  %11040 = vst [vmem:[#allocation9_spill] sm:$0xff] %v9521_v20  ;;  %v4664_v52 = vmax.f32 %v3920_v59, 0.0 }
 0x23c   :  { %v9519_v34 = vpop.f32.mrf.mxu0  ;;  %v7865_v31 = vpop.f32.mrf.mxu1 }
 0x23d   :  { %v3923_v58 = vadd.f32 %v9180_v17, %v7865_v31 }
 0x23e   :  { %v9523_v28 = vpop.f32.mrf.mxu0  ;;  %7132 = vmatpush3.bf16.msra.mxu1 %v9300_v49  ;;  %v9542_v49 = vpack.c.bf16 %v4661_v12, %v4660_v63  ;;  %v9547_v3 = vpop.f32.mrf.mxu1  ;;  %v8231_v63 = vld [vmem:[%s11025_s0 + $0x470] sm:$0xff]  }
 0x23f   :  { %7133 = vmatprep.subr.bf16.mxu1 %v4846_v56  ;;  %11041 = vst [vmem:[#allocation10_spill] sm:$0xff] %v9547_v3  ;;  %v4665_v60 = vmax.f32 %v3923_v58, 0.0 }
 0x240   :  { %v9545_v47 = vpop.f32.mrf.mxu0  ;;  %v7868_v50 = vpop.f32.mrf.mxu1 }
 0x241   :  { %v9569_v9 = vpack.c.bf16 %v4665_v60, %v4664_v52  ;;  %v3936_v13 = vadd.f32 %v9180_v17, %v7868_v50  ;;  %v8232_v60 = vld [vmem:[%s11025_s0 + $0x478] sm:$0xff]  }
 0x242   :  { %v9551_v43 = vpop.f32.mrf.mxu0  ;;  %7703 = vmatmul.mubr.bf16.gmra.mxu0 %v8226_v26  ;;  %7134 = vmatpush3.bf16.msra.mxu1 %v9306_v27  ;;  %v9559_v54 = vpop.f32.mrf.mxu1  ;;  %v8228_v27 = vld [vmem:[%s11025_s0 + $0x458] sm:$0xff]  }
 0x243   :  { %7706 = vmatprep.mubr.bf16.mxu0 %v8227_v23  ;;  %11042 = vst [vmem:[#allocation11_spill] sm:$0xff] %v9569_v9  ;;  %v4668_v8 = vmax.f32 %v3936_v13, 0.0 }
 0x244   :  { %v9557_v29 = vpop.f32.mrf.mxu0  ;;  %v7869_v39 = vpop.f32.mrf.mxu1 }
 0x245   :  { %5387 = vmatmul.mubr.bf16.vlgmr.msra.gmra.mxu1 %v6701_v45  ;;  %v3939_v10 = vadd.f32 %v9180_v17, %v7869_v39  ;;  %v8233_v39 = vld [vmem:[%s11025_s0 + $0x480] sm:$0xff]  }
 0x246   :  { %v9561_v15 = vpop.f32.mrf.mxu0  ;;  %5427 = vmatprep.mubr.bf16.mxu1 %v6704_v6  ;;  %v9574_v30 = vpop.f32.mrf.mxu1 }
 0x247   :  { %v4669_v62 = vmax.f32 %v3939_v10, 0.0 }
 0x248   :  { %v9572_v42 = vpop.f32.mrf.mxu0  ;;  %v7872_v11 = vpop.f32.mrf.mxu1 }
 0x249   :  { %v9591_v46 = vpack.c.bf16 %v4669_v62, %v4668_v8  ;;  %v3952_v56 = vadd.f32 %v9180_v17, %v7872_v11 }
 0x24a   :  { %v9576_v32 = vpop.f32.mrf.mxu0  ;;  %7707 = vmatmul.mubr.bf16.gmra.mxu0 %v8228_v27  ;;  %v9581_v5 = vpop.f32.mrf.mxu1 }
 0x24b   :  { %7710 = vmatprep.mubr.bf16.mxu0 %v8229_v1  ;;  %11043 = vst [vmem:[#allocation12_spill] sm:$0xff] %v9591_v46  ;;  %v4672_v59 = vmax.f32 %v3952_v56, 0.0 }
 0x24c   :  { %v9579_v33 = vpop.f32.mrf.mxu0  ;;  %v7873_v0 = vpop.f32.mrf.mxu1 }
 0x24d   :  { %v3955_v45 = vadd.f32 %v9180_v17, %v7873_v0 }
 0x24e   :  { %v9583_v25 = vpop.f32.mrf.mxu0  ;;  %v9596_v26 = vpop.f32.mrf.mxu1 }
 0x24f   :  { %v4673_v52 = vmax.f32 %v3955_v45, 0.0 }
 0x250   :  { %v9594_v12 = vpop.f32.mrf.mxu0  ;;  %v7876_v23 = vpop.f32.mrf.mxu1 }
 0x251   :  { %v9609_v1 = vpack.c.bf16 %v4673_v52, %v4672_v59  ;;  %v3968_v13 = vadd.f32 %v9180_v17, %v7876_v23  ;;  %v2880_v23 = vadd.f32 %v9180_v17, %v9515_v36  ;;  %v9635_v36 = vadd.f32 %v9180_v17, %v9484_v53 }
 0x252   :  { %v7616_v31 = vpop.f32.mrf.mxu0  ;;  %7711 = vmatmul.mubr.bf16.gmra.mxu0 %v8230_v22  ;;  %v9601_v50 = vpop.f32.mrf.mxu1  ;;  %v2872_v53 = vadd.f32 %v9180_v17, %v9519_v34 }
 0x253   :  { %7714 = vmatprep.mubr.bf16.mxu0 %v8231_v63  ;;  %v4676_v22 = vmax.f32 %v3968_v13, 0.0  ;;  %v2883_v63 = vadd.f32 %v9180_v17, %v9523_v28  ;;  %v8235_v28 = vld [vmem:[%s11025_s0 + $0x490] sm:$0xff]   ;;  %v4404_v18 = vmax.f32 %v2880_v23, 0.0 }
 0x254   :  { %v9599_v6 = vpop.f32.mrf.mxu0  ;;  %v7877_v27 = vpop.f32.mrf.mxu1 }
 0x255   :  { %v3971_v0 = vadd.f32 %v9180_v17, %v7877_v27 }
 0x256   :  { %v7617_v58 = vpop.f32.mrf.mxu0  ;;  %v9612_v8 = vpop.f32.mrf.mxu1 }
 0x257   :  { %v4677_v52 = vmax.f32 %v3971_v0, 0.0  ;;  %v4405_v0 = vmax.f32 %v2883_v63, 0.0  ;;  %v2931_v9 = vadd.f32 %v9180_v17, %v7617_v58  ;;  %v2928_v63 = vadd.f32 %v9180_v17, %v7616_v31 }
 0x258   :  { %v2922_v11 = vpop.f32.mrf.mxu0  ;;  %v7880_v62 = vpop.f32.mrf.mxu1 }
 0x259   :  { %v4417_v23 = vmax.f32 %v2931_v9, 0.0  ;;  %v2923_v34 = vadd.f32 %v9180_v17, %v2922_v11 }
 0x25a   :  { %v7620_v10 = vpop.f32.mrf.mxu0  ;;  %7715 = vmatmul.mubr.bf16.gmra.mxu0 %v8232_v60  ;;  %v9617_v45 = vpop.f32.mrf.mxu1 }
 0x25b   :  { %7718 = vmatprep.mubr.bf16.mxu0 %v8233_v39  ;;  %11044 = vst [vmem:[#allocation13_spill] sm:$0xff] %v9617_v45  ;;  %v2944_v59 = vadd.f32 %v9180_v17, %v7620_v10  ;;  %v8234_v39 = vld [vmem:[%s11025_s0 + $0x488] sm:$0xff]   ;;  %v9630_v45 = vpack.c.bf16 %v4677_v52, %v4676_v22  ;;  %v3984_v10 = vadd.f32 %v9180_v17, %v7880_v62 }
 0x25c   :  { %v2935_v56 = vpop.f32.mrf.mxu0  ;;  %v7881_v27 = vpop.f32.mrf.mxu1 }
 0x25d   :  { %v2936_v44 = vadd.f32 %v9180_v17, %v2935_v56  ;;  %v2875_v56 = vadd.f32 %v9180_v17, %v9545_v47  ;;  %v4420_v22 = vmax.f32 %v2944_v59, 0.0  ;;  %v4680_v46 = vmax.f32 %v3984_v10, 0.0 }
 0x25e   :  { %v7621_v60 = vpop.f32.mrf.mxu0  ;;  %v3987_v61 = vadd.f32 %v9180_v17, %v7881_v27  ;;  %v4400_v59 = vmax.f32 %v9635_v36, 0.0  ;;  %v9659_v27 = vld [vmem:[%s11026_s3] ss:$0 sm:$0xff] }
 0x25f   :  { %v2947_v13 = vadd.f32 %v9180_v17, %v7621_v60  ;;  %v9640_v60 = vpop.f32.mrf.mxu1  ;;  %v4418_v47 = vmax.f32 %v2936_v44, 0.0  ;;  %v8237_v36 = vld [vmem:[%s11025_s0 + $0x4a0] sm:$0xff]  }
 0x260   :  { %v2938_v40 = vpop.f32.mrf.mxu0  ;;  %11045 = vst [vmem:[#allocation14_spill] sm:$0xff] %v9640_v60 }
 0x261   :  { %v4421_v52 = vmax.f32 %v2947_v13, 0.0  ;;  %v2939_v62 = vadd.f32 %v9180_v17, %v2938_v40  ;;  %v7884_v58 = vpop.f32.mrf.mxu1  ;;  %v4861_v13 = vpack.c.bf16 %v4405_v0, %v4404_v18  ;;  %v4403_v40 = vmax.f32 %v2875_v56, 0.0 }
 0x262   :  { %v7624_v3 = vpop.f32.mrf.mxu0  ;;  %7719 = vmatmul.mubr.bf16.gmra.mxu0 %v8234_v39  ;;  %v4681_v39 = vmax.f32 %v3987_v61, 0.0  ;;  %v2920_v18 = vadd.f32 %v9659_v27, %v9599_v6  ;;  %v2859_v6 = vadd.f32 %v9659_v27, %v9511_v14 }
 0x263   :  { %v4869_v20 = vpack.c.bf16 %v4421_v52, %v4420_v22  ;;  %v4419_v60 = vmax.f32 %v2939_v62, 0.0  ;;  %7722 = vmatprep.mubr.bf16.mxu0 %v8235_v28  ;;  %v9652_v19 = vpop.f32.mrf.mxu1  ;;  %v2960_v44 = vadd.f32 %v9180_v17, %v7624_v3  ;;  %v4402_v22 = vmax.f32 %v2872_v53, 0.0  ;;  %v8236_v17 = vld [vmem:[%s11025_s0 + $0x498] sm:$0xff]  }
 0x264   :  { %v2951_v55 = vpop.f32.mrf.mxu0  ;;  %11046 = vst [vmem:[#allocation15_spill] sm:$0xff] %v9652_v19  ;;  %v4416_v28 = vmax.f32 %v2928_v63, 0.0  ;;  %v4401_v3 = vmax.f32 %v9644_v38, 0.0  ;;  %v9672_v0 = vpack.c.bf16 %v4681_v39, %v4680_v46  ;;  %v4415_v53 = vmax.f32 %v2923_v34, 0.0 }
 0x265   :  { %7141 = vmatprep.subr.bf16.mxu1 %v4869_v20  ;;  %v4868_v31 = vpack.c.bf16 %v4419_v60, %v4418_v47  ;;  %v2952_v9 = vadd.f32 %v9659_v27, %v2951_v55  ;;  %v7885_v20 = vpop.f32.mrf.mxu1  ;;  %v4000_v55 = vadd.f32 %v9659_v27, %v7884_v58  ;;  %v4860_v56 = vpack.c.bf16 %v4403_v40, %v4402_v22 }
 0x266   :  { %v7625_v10 = vpop.f32.mrf.mxu0  ;;  %7142 = vmatpush3.bf16.msra.mxu1 %v4861_v13  ;;  %11047 = vst [vmem:[#allocation16_spill] sm:$0xff] %v9672_v0  ;;  %v2915_v60 = vadd.f32 %v9659_v27, %v9583_v25  ;;  %v4867_v52 = vpack.c.bf16 %v4417_v23, %v4416_v28  ;;  %v4424_v63 = vmax.f32 %v2960_v44, 0.0  ;;  %v2856_v46 = vadd.f32 %v9659_v27, %v9489_v16 }
 0x267   :  { %v2963_v11 = vadd.f32 %v9659_v27, %v7625_v10  ;;  %7143 = vmatprep.subr.bf16.mxu1 %v4868_v31  ;;  %v9679_v62 = vpop.f32.mrf.mxu1  ;;  %v2912_v58 = vadd.f32 %v9659_v27, %v9576_v32  ;;  %v4414_v14 = vmax.f32 %v2920_v18, 0.0  ;;  %v4422_v13 = vmax.f32 %v2952_v9, 0.0 }
 0x268   :  { %v2954_v38 = vpop.f32.mrf.mxu0  ;;  %11048 = vst [vmem:[#allocation17_spill] sm:$0xff] %v9679_v62  ;;  %v4684_v34 = vmax.f32 %v4000_v55, 0.0  ;;  %v4003_v44 = vadd.f32 %v9659_v27, %v7885_v20  ;;  %v4859_v39 = vpack.c.bf16 %v4401_v3, %v4400_v59  ;;  %v4399_v22 = vmax.f32 %v2859_v6, 0.0 }
 0x269   :  { %v4425_v47 = vmax.f32 %v2963_v11, 0.0  ;;  %v2955_v61 = vadd.f32 %v9659_v27, %v2954_v38  ;;  %v7888_v25 = vpop.f32.mrf.mxu1  ;;  %v4413_v16 = vmax.f32 %v2915_v60, 0.0  ;;  %v2907_v32 = vadd.f32 %v9659_v27, %v9594_v12  ;;  %v8238_v12 = vld [vmem:[%s11025_s0 + $0x4a8] sm:$0xff]   ;;  %v8239_v60 = vld [vmem:[%s11025_s0 + $0x4b0] sm:$0xff]  }
 0x26a   :  { %v7628_v40 = vpop.f32.mrf.mxu0  ;;  %7723 = vmatmul.mubr.bf16.gmra.mxu0 %v8236_v17  ;;  %7144 = vmatpush3.bf16.msra.mxu1 %v4860_v56  ;;  %v4866_v17 = vpack.c.bf16 %v4415_v53, %v4414_v14  ;;  %v4685_v11 = vmax.f32 %v4003_v44, 0.0  ;;  %v4398_v56 = vmax.f32 %v2856_v46, 0.0  ;;  %v2904_v20 = vadd.f32 %v9659_v27, %v9579_v33 }
 0x26b   :  { %v9686_v23 = vpack.c.bf16 %v4425_v47, %v4424_v63  ;;  %v4423_v31 = vmax.f32 %v2955_v61, 0.0  ;;  %7145 = vmatprep.subr.bf16.mxu1 %v4867_v52  ;;  %7726 = vmatprep.mubr.bf16.mxu0 %v8237_v36  ;;  %v9691_v18 = vpop.f32.mrf.mxu1  ;;  %v2976_v10 = vadd.f32 %v9659_v27, %v7628_v40  ;;  %v4412_v36 = vmax.f32 %v2912_v58, 0.0 }
 0x26c   :  { %v2967_v28 = vpop.f32.mrf.mxu0  ;;  %11049 = vst [vmem:[#allocation18_spill] sm:$0xff] %v9691_v18  ;;  %v9706_v52 = vpack.c.bf16 %v4685_v11, %v4684_v34  ;;  %v4016_v33 = vadd.f32 %v9659_v27, %v7888_v25  ;;  %v4858_v38 = vpack.c.bf16 %v4399_v22, %v4398_v56  ;;  %v2899_v53 = vadd.f32 %v9659_v27, %v9561_v15 }
 0x26d   :  { %v9693_v9 = vpack.c.bf16 %v4423_v31, %v4422_v13  ;;  %v2968_v59 = vadd.f32 %v9659_v27, %v2967_v28  ;;  %v7889_v55 = vpop.f32.mrf.mxu1  ;;  %v4865_v63 = vpack.c.bf16 %v4413_v16, %v4412_v36  ;;  %v4411_v46 = vmax.f32 %v2907_v32, 0.0 }
 0x26e   :  { %v7629_v3 = vpop.f32.mrf.mxu0  ;;  %7146 = vmatpush3.bf16.msra.mxu1 %v4859_v39  ;;  %11050 = vst [vmem:[#allocation19_spill] sm:$0xff] %v9706_v52  ;;  %v4428_v58 = vmax.f32 %v2976_v10, 0.0  ;;  %v2896_v40 = vadd.f32 %v9659_v27, %v9551_v43  ;;  %v4410_v31 = vmax.f32 %v2904_v20, 0.0  ;;  %v4688_v22 = vmax.f32 %v4016_v33, 0.0  ;;  %v8240_v20 = vld [vmem:[%s11025_s0 + $0x4b8] sm:$0xff]  }
 0x26f   :  { %v2979_v6 = vadd.f32 %v9659_v27, %v7629_v3  ;;  %7147 = vmatprep.subr.bf16.mxu1 %v4866_v17  ;;  %v9711_v61 = vpop.f32.mrf.mxu1  ;;  %v4426_v34 = vmax.f32 %v2968_v59, 0.0  ;;  %v4019_v16 = vadd.f32 %v9659_v27, %v7889_v55  ;;  %v4409_v32 = vmax.f32 %v2899_v53, 0.0  ;;  %v8248_v52 = vld [vmem:[%s11025_s0 + $0x4f8] sm:$0xff]  }
 0x270   :  { %v2970_v47 = vpop.f32.mrf.mxu0  ;;  %11051 = vst [vmem:[#allocation20_spill] sm:$0xff] %v9711_v61  ;;  %v2891_v43 = vadd.f32 %v9659_v27, %v9572_v42  ;;  %v4864_v11 = vpack.c.bf16 %v4411_v46, %v4410_v31  ;;  %v4408_v3 = vmax.f32 %v2896_v40, 0.0  ;;  %v8241_v42 = vld [vmem:[%s11025_s0 + $0x4c0] sm:$0xff]  }
 0x271   :  { %v4429_v14 = vmax.f32 %v2979_v6, 0.0  ;;  %v2971_v13 = vadd.f32 %v9659_v27, %v2970_v47  ;;  %v7892_v25 = vpop.f32.mrf.mxu1  ;;  %v4689_v56 = vmax.f32 %v4019_v16, 0.0 }
 0x272   :  { %v9716_v44 = vpop.f32.mrf.mxu0  ;;  %7727 = vmatmul.mubr.bf16.gmra.mxu0 %v8238_v12  ;;  %7148 = vmatpush3.bf16.msra.mxu1 %v4858_v38  ;;  %v2888_v12 = vadd.f32 %v9659_v27, %v9557_v29  ;;  %v4032_v6 = vadd.f32 %v9659_v27, %v7892_v25  ;;  %v4863_v33 = vpack.c.bf16 %v4409_v32, %v4408_v3  ;;  %v4407_v38 = vmax.f32 %v2891_v43, 0.0  ;;  %v8243_v25 = vld [vmem:[%s11025_s0 + $0x4d0] sm:$0xff]  }
 0x273   :  { %v9718_v15 = vpack.c.bf16 %v4429_v14, %v4428_v58  ;;  %v4427_v39 = vmax.f32 %v2971_v13, 0.0  ;;  %7149 = vmatprep.subr.bf16.mxu1 %v4865_v63  ;;  %7730 = vmatprep.mubr.bf16.mxu0 %v8239_v60  ;;  %v9723_v10 = vpop.f32.mrf.mxu1  ;;  %v9740_v55 = vpack.c.bf16 %v4689_v56, %v4688_v22  ;;  %v9772_v22 = vld [vmem:[%s11027_s1 + $0xb0] sm:$0xff] }
 0x274   :  { %v9721_v28 = vpop.f32.mrf.mxu0  ;;  %11052 = vst [vmem:[#allocation21_spill] sm:$0xff] %v9723_v10  ;;  %v4406_v63 = vmax.f32 %v2888_v12, 0.0  ;;  %v4692_v47 = vmax.f32 %v4032_v6, 0.0 }
 0x275   :  { %v9727_v17 = vpack.c.bf16 %v4427_v39, %v4426_v34  ;;  %v7893_v59 = vpop.f32.mrf.mxu1  ;;  %11053 = vst [vmem:[#allocation22_spill] sm:$0xff] %v9740_v55  ;;  %v9767_v39 = vld [vmem:[%s11027_s1 + $0x30] sm:$0xff] }
 0x276   :  { %v9729_v36 = vpop.f32.mrf.mxu0  ;;  %7150 = vmatpush3.bf16.msra.mxu1 %v9486_v35  ;;  %v4035_v46 = vadd.f32 %v9659_v27, %v7893_v59  ;;  %v4862_v13 = vpack.c.bf16 %v4407_v38, %v4406_v63  ;;  %v8245_v38 = vld [vmem:[%s11025_s0 + $0x4e0] sm:$0xff]  }
 0x277   :  { %7151 = vmatprep.subr.bf16.mxu1 %v4864_v11  ;;  %v9745_v35 = vpop.f32.mrf.mxu1  ;;  %v6703_v11 = vcombine.low %v9535_v2, %v9540_v41 }
 0x278   :  { %v9743_v60 = vpop.f32.mrf.mxu0  ;;  %11054 = vst [vmem:[#allocation23_spill] sm:$0xff] %v9745_v35  ;;  %v4693_v40 = vmax.f32 %v4035_v46, 0.0 }
 0x279   :  { %v7896_v29 = vpop.f32.mrf.mxu1 }
 0x27a   :  { %v9747_v53 = vpop.f32.mrf.mxu0  ;;  %7731 = vmatmul.mubr.bf16.gmra.mxu0 %v8240_v20  ;;  %7152 = vmatpush3.bf16.msra.mxu1 %v9495_v51  ;;  %v8242_v51 = vld [vmem:[%s11025_s0 + $0x4c8] sm:$0xff]   ;;  %v4048_v16 = vadd.f32 %v9659_v27, %v7896_v29  ;;  %v6706_v20 = vcombine.high %v9767_v39, %v9772_v22 }
 0x27b   :  { %7153 = vmatprep.subr.bf16.mxu1 %v4863_v33  ;;  %7734 = vmatprep.mubr.bf16.mxu0 %v8241_v42  ;;  %v9753_v14 = vpop.f32.mrf.mxu1 }
 0x27c   :  { %v9751_v58 = vpop.f32.mrf.mxu0  ;;  %11055 = vst [vmem:[#allocation24_spill] sm:$0xff] %v9753_v14  ;;  %v4696_v3 = vmax.f32 %v4048_v16, 0.0 }
 0x27d   :  { %v7897_v34 = vpop.f32.mrf.mxu1 }
 0x27e   :  { %v9755_v31 = vpop.f32.mrf.mxu0  ;;  %7154 = vmatpush3.bf16.msra.mxu1 %v9455_v7  ;;  %v9774_v7 = vpack.c.bf16 %v4693_v40, %v4692_v47  ;;  %v4051_v12 = vadd.f32 %v9659_v27, %v7897_v34 }
 0x27f   :  { %7155 = vmatprep.subr.bf16.mxu1 %v4862_v13  ;;  %v9779_v43 = vpop.f32.mrf.mxu1 }
 0x280   :  { %11056 = vst [vmem:[#allocation25_spill] sm:$0xff] %v9774_v7  ;;  %v9777_v32 = vpop.f32.mrf.mxu0  ;;  %11057 = vst [vmem:[#allocation26_spill] sm:$0xff] %v9779_v43  ;;  %v4697_v33 = vmax.f32 %v4051_v12, 0.0  ;;  %v8247_v12 = vld [vmem:[%s11025_s0 + $0x4f0] sm:$0xff]  }
 0x281   :  { %v7900_v59 = vpop.f32.mrf.mxu1 }
 0x282   :  { %v9783_v56 = vpop.f32.mrf.mxu0  ;;  %7735 = vmatmul.mubr.bf16.gmra.mxu0 %v8242_v51  ;;  %7156 = vmatpush3.bf16.msra.mxu1 %v9463_v24  ;;  %v8244_v24 = vld [vmem:[%s11025_s0 + $0x4d8] sm:$0xff]   ;;  %v9801_v29 = vpack.c.bf16 %v4697_v33, %v4696_v3  ;;  %v4064_v63 = vadd.f32 %v9659_v27, %v7900_v59  ;;  %v8246_v59 = vld [vmem:[%s11025_s0 + $0x4e8] sm:$0xff]  }
 0x283   :  { %7738 = vmatprep.mubr.bf16.mxu0 %v8243_v25  ;;  %v9791_v6 = vpop.f32.mrf.mxu1 }
 0x284   :  { %v9789_v42 = vpop.f32.mrf.mxu0  ;;  %11058 = vst [vmem:[#allocation27_spill] sm:$0xff] %v9791_v6  ;;  %11059 = vst [vmem:[#allocation28_spill] sm:$0xff] %v9801_v29  ;;  %v4700_v51 = vmax.f32 %v4064_v63, 0.0 }
 0x285   :  { %5428 = vmatmul.mubr.bf16.vlgmr.msra.gmra.mxu1 %v6703_v11  ;;  %v7901_v41 = vpop.f32.mrf.mxu1 }
 0x286   :  { %v9793_v2 = vpop.f32.mrf.mxu0  ;;  %5468 = vmatprep.mubr.bf16.mxu1 %v6706_v20  ;;  %v4067_v34 = vadd.f32 %v9659_v27, %v7901_v41 }
 0x287   :  { %v9806_v46 = vpop.f32.mrf.mxu1 }
 0x288   :  { %v9804_v47 = vpop.f32.mrf.mxu0  ;;  %11060 = vst [vmem:[#allocation29_spill] sm:$0xff] %v9806_v46  ;;  %v4701_v11 = vmax.f32 %v4067_v34, 0.0  ;;  %v3008_v46 = vadd.f32 %v9659_v27, %v9747_v53 }
 0x289   :  { %v9810_v40 = vpop.f32.mrf.mxu1 }
 0x28a   :  { %v9808_v13 = vpop.f32.mrf.mxu0  ;;  %7739 = vmatmul.mubr.bf16.gmra.mxu0 %v8244_v24  ;;  %11061 = vst [vmem:[#allocation30_spill] sm:$0xff] %v9810_v40  ;;  %v9827_v33 = vpack.c.bf16 %v4701_v11, %v4700_v51  ;;  %v8249_v51 = vld [vmem:[%s11025_s0 + $0x500] sm:$0xff]   ;;  %v4436_v35 = vmax.f32 %v3008_v46, 0.0 }
 0x28b   :  { %7742 = vmatprep.mubr.bf16.mxu0 %v8245_v38  ;;  %v9815_v16 = vpop.f32.mrf.mxu1 }
 0x28c   :  { %v9813_v25 = vpop.f32.mrf.mxu0  ;;  %11062 = vst [vmem:[#allocation31_spill] sm:$0xff] %v9815_v16  ;;  %11064 = vst [vmem:[#allocation33_spill] sm:$0xff] %v9827_v33  ;;  %v3011_v33 = vadd.f32 %v9659_v27, %v9755_v31  ;;  %v8251_v31 = vld [vmem:[%s11025_s0 + $0x510] sm:$0xff]  }
 0x28d   :  { %v9822_v3 = vpop.f32.mrf.mxu1 }
 0x28e   :  { %v9817_v20 = vpop.f32.mrf.mxu0  ;;  %11063 = vst [vmem:[#allocation32_spill] sm:$0xff] %v9822_v3  ;;  %v4437_v53 = vmax.f32 %v3011_v33, 0.0 }
 0x28f   :  { %v9831_v41 = vpop.f32.mrf.mxu1 }
 0x290   :  { %v9829_v24 = vpop.f32.mrf.mxu0  ;;  %11065 = vst [vmem:[#allocation34_spill] sm:$0xff] %v9831_v41 }
 0x291   :  { %v9833_v63 = vpop.f32.mrf.mxu1 }
 0x292   :  { %v7648_v38 = vpop.f32.mrf.mxu0  ;;  %7743 = vmatmul.mubr.bf16.gmra.mxu0 %v8246_v59  ;;  %11066 = vst [vmem:[#allocation35_spill] sm:$0xff] %v9833_v63 }
 0x293   :  { %7746 = vmatprep.mubr.bf16.mxu0 %v8247_v12  ;;  %v9835_v0 = vpop.f32.mrf.mxu1  ;;  %v3056_v33 = vadd.f32 %v9659_v27, %v7648_v38 }
 0x294   :  { %v3047_v34 = vpop.f32.mrf.mxu0  ;;  %11067 = vst [vmem:[#allocation36_spill] sm:$0xff] %v9835_v0 }
 0x295   :  { %v9840_v43 = vpop.f32.mrf.mxu1 }
 0x296   :  { %v7649_v29 = vpop.f32.mrf.mxu0  ;;  %11068 = vst [vmem:[#allocation37_spill] sm:$0xff] %v9840_v43 }
 0x297   :  { %v9845_v14 = vpop.f32.mrf.mxu1  ;;  %v3059_v7 = vadd.f32 %v9659_v27, %v7649_v29 }
 0x298   :  { %v3050_v11 = vpop.f32.mrf.mxu0  ;;  %11069 = vst [vmem:[#allocation38_spill] sm:$0xff] %v9845_v14 }
 0x299   :  { %v7912_v12 = vpop.f32.mrf.mxu1  ;;  %v4449_v46 = vmax.f32 %v3059_v7, 0.0 }
 0x29a   :  { %v7652_v59 = vpop.f32.mrf.mxu0  ;;  %7747 = vmatmul.mubr.bf16.gmra.mxu0 %v8248_v52  ;;  %v8250_v52 = vld [vmem:[%s11025_s0 + $0x508] sm:$0xff]  }
 0x29b   :  { %7750 = vmatprep.mubr.bf16.mxu0 %v8249_v51  ;;  %v9849_v19 = vpop.f32.mrf.mxu1  ;;  %v3072_v55 = vadd.f32 %v9659_v27, %v7652_v59  ;;  %v9865_v59 = vadd.f32 %v9659_v27, %v9716_v44  ;;  %v3000_v44 = vadd.f32 %v9659_v27, %v9751_v58  ;;  %v3051_v58 = vadd.f32 %v9659_v27, %v3050_v11 }
 0x29c   :  { %v3063_v62 = vpop.f32.mrf.mxu0  ;;  %11070 = vst [vmem:[#allocation39_spill] sm:$0xff] %v9849_v19  ;;  %v4112_v19 = vadd.f32 %v9659_v27, %v7912_v12 }
 0x29d   :  { %v3064_v6 = vadd.f32 %v9659_v27, %v3063_v62  ;;  %v7913_v18 = vpop.f32.mrf.mxu1  ;;  %v3003_v62 = vadd.f32 %v9659_v27, %v9777_v32  ;;  %v4452_v3 = vmax.f32 %v3072_v55, 0.0  ;;  %v4432_v55 = vmax.f32 %v9865_v59, 0.0 }
 0x29e   :  { %v7653_v61 = vpop.f32.mrf.mxu0  ;;  %v4712_v0 = vmax.f32 %v4112_v19, 0.0  ;;  %v3048_v19 = vadd.f32 %v9659_v27, %v3047_v34  ;;  %v2987_v34 = vadd.f32 %v9659_v27, %v9743_v60 }
 0x29f   :  { %v3075_v51 = vadd.f32 %v9659_v27, %v7653_v61  ;;  %v9870_v16 = vpop.f32.mrf.mxu1  ;;  %v9874_v61 = vadd.f32 %v9659_v27, %v9729_v36  ;;  %v4450_v32 = vmax.f32 %v3064_v6, 0.0  ;;  %v4115_v36 = vadd.f32 %v9659_v27, %v7913_v18 }
 0x2a0   :  { %v3066_v41 = vpop.f32.mrf.mxu0  ;;  %11071 = vst [vmem:[#allocation40_spill] sm:$0xff] %v9870_v16  ;;  %v4446_v60 = vmax.f32 %v3048_v19, 0.0 }
 0x2a1   :  { %v4453_v40 = vmax.f32 %v3075_v51, 0.0  ;;  %v3067_v12 = vadd.f32 %v9659_v27, %v3066_v41  ;;  %v7916_v29 = vpop.f32.mrf.mxu1  ;;  %v4877_v51 = vpack.c.bf16 %v4437_v53, %v4436_v35  ;;  %v4435_v41 = vmax.f32 %v3003_v62, 0.0  ;;  %v8252_v35 = vld [vmem:[%s11025_s0 + $0x518] sm:$0xff]  }
 0x2a2   :  { %v7656_v10 = vpop.f32.mrf.mxu0  ;;  %7751 = vmatmul.mubr.bf16.gmra.mxu0 %v8250_v52  ;;  %v4448_v52 = vmax.f32 %v3056_v33, 0.0  ;;  %v4433_v11 = vmax.f32 %v9874_v61, 0.0  ;;  %v3043_v53 = vadd.f32 %v9659_v27, %v9817_v20 }
 0x2a3   :  { %v4885_v14 = vpack.c.bf16 %v4453_v40, %v4452_v3  ;;  %v4451_v16 = vmax.f32 %v3067_v12, 0.0  ;;  %7754 = vmatprep.mubr.bf16.mxu0 %v8251_v31  ;;  %v9882_v63 = vpop.f32.mrf.mxu1  ;;  %v3088_v6 = vadd.f32 %v9659_v27, %v7656_v10  ;;  %v4713_v40 = vmax.f32 %v4115_v36, 0.0 }
 0x2a4   :  { %v3079_v43 = vpop.f32.mrf.mxu0  ;;  %11072 = vst [vmem:[#allocation41_spill] sm:$0xff] %v9882_v63  ;;  %v4434_v3 = vmax.f32 %v3000_v44, 0.0  ;;  %v4883_v62 = vpack.c.bf16 %v4449_v46, %v4448_v52  ;;  %v4447_v44 = vmax.f32 %v3051_v58, 0.0 }
 0x2a5   :  { %7163 = vmatprep.subr.bf16.mxu1 %v4885_v14  ;;  %v4884_v38 = vpack.c.bf16 %v4451_v16, %v4450_v32  ;;  %v3080_v18 = vadd.f32 %v9659_v27, %v3079_v43  ;;  %v7917_v7 = vpop.f32.mrf.mxu1  ;;  %v8253_v14 = vld [vmem:[%s11025_s0 + $0x520] sm:$0xff]   ;;  %v9896_v16 = vpack.c.bf16 %v4713_v40, %v4712_v0  ;;  %v4128_v43 = vadd.f32 %v9659_v27, %v7916_v29 }
 0x2a6   :  { %v7657_v31 = vpop.f32.mrf.mxu0  ;;  %7164 = vmatpush3.bf16.msra.mxu1 %v4877_v51  ;;  %v4876_v59 = vpack.c.bf16 %v4435_v41, %v4434_v3  ;;  %v4456_v33 = vmax.f32 %v3088_v6, 0.0  ;;  %v2984_v0 = vadd.f32 %v9659_v27, %v9721_v28  ;;  %v3040_v29 = vadd.f32 %v9659_v27, %v9808_v13 }
 0x2a7   :  { %v3091_v10 = vadd.f32 %v9659_v27, %v7657_v31  ;;  %7165 = vmatprep.subr.bf16.mxu1 %v4884_v38  ;;  %11073 = vst [vmem:[#allocation42_spill] sm:$0xff] %v9896_v16  ;;  %v9903_v12 = vpop.f32.mrf.mxu1  ;;  %v4454_v51 = vmax.f32 %v3080_v18, 0.0  ;;  %v4716_v6 = vmax.f32 %v4128_v43, 0.0  ;;  %v4131_v38 = vadd.f32 %v9659_v27, %v7917_v7 }
 0x2a8   :  { %v3082_v61 = vpop.f32.mrf.mxu0  ;;  %11074 = vst [vmem:[#allocation43_spill] sm:$0xff] %v9903_v12  ;;  %v4875_v40 = vpack.c.bf16 %v4433_v11, %v4432_v55  ;;  %v4431_v28 = vmax.f32 %v2987_v34, 0.0  ;;  %v4445_v3 = vmax.f32 %v3043_v53, 0.0  ;;  %v3035_v13 = vadd.f32 %v9659_v27, %v9829_v24  ;;  %v8254_v55 = vld [vmem:[%s11025_s0 + $0x528] sm:$0xff]   ;;  %v8255_v53 = vld [vmem:[%s11025_s0 + $0x530] sm:$0xff]   ;;  %v8265_v12 = vld [vmem:[%s11025_s0 + $0x580] sm:$0xff]  }
 0x2a9   :  { %v4457_v32 = vmax.f32 %v3091_v10, 0.0  ;;  %v3083_v36 = vadd.f32 %v9659_v27, %v3082_v61  ;;  %v9910_v20 = vpop.f32.mrf.mxu1  ;;  %v4717_v10 = vmax.f32 %v4131_v38, 0.0  ;;  %v3032_v24 = vadd.f32 %v9659_v27, %v9813_v25 }
 0x2aa   :  { %v7660_v41 = vpop.f32.mrf.mxu0  ;;  %7755 = vmatmul.mubr.bf16.gmra.mxu0 %v8252_v35  ;;  %7166 = vmatpush3.bf16.msra.mxu1 %v4876_v59  ;;  %11075 = vst [vmem:[#allocation44_spill] sm:$0xff] %v9910_v20  ;;  %v4882_v35 = vpack.c.bf16 %v4447_v44, %v4446_v60  ;;  %v4430_v59 = vmax.f32 %v2984_v0, 0.0  ;;  %v3027_v44 = vadd.f32 %v9659_v27, %v9793_v2  ;;  %v4443_v25 = vmax.f32 %v3035_v13, 0.0 }
 0x2ab   :  { %v9912_v46 = vpack.c.bf16 %v4457_v32, %v4456_v33  ;;  %v4455_v58 = vmax.f32 %v3083_v36, 0.0  ;;  %7167 = vmatprep.subr.bf16.mxu1 %v4883_v62  ;;  %7758 = vmatprep.mubr.bf16.mxu0 %v8253_v14  ;;  %v9917_v19 = vpop.f32.mrf.mxu1  ;;  %v3104_v31 = vadd.f32 %v9659_v27, %v7660_v41  ;;  %v4444_v14 = vmax.f32 %v3040_v29, 0.0 }
 0x2ac   :  { %v3095_v52 = vpop.f32.mrf.mxu0  ;;  %11076 = vst [vmem:[#allocation45_spill] sm:$0xff] %v9917_v19  ;;  %v9934_v62 = vpack.c.bf16 %v4717_v10, %v4716_v6  ;;  %v4874_v61 = vpack.c.bf16 %v4431_v28, %v4430_v59  ;;  %v4442_v6 = vmax.f32 %v3032_v24, 0.0  ;;  %v4441_v13 = vmax.f32 %v3027_v44, 0.0  ;;  %v8256_v10 = vld [vmem:[%s11025_s0 + $0x538] sm:$0xff]  }
 0x2ad   :  { %v9919_v18 = vpack.c.bf16 %v4455_v58, %v4454_v51  ;;  %v9925_v7 = vpop.f32.mrf.mxu1  ;;  %v3096_v11 = vadd.f32 %v9659_v27, %v3095_v52  ;;  %v4881_v33 = vpack.c.bf16 %v4445_v3, %v4444_v14  ;;  %v4460_v0 = vmax.f32 %v3104_v31, 0.0 }
 0x2ae   :  { %v7661_v43 = vpop.f32.mrf.mxu0  ;;  %7168 = vmatpush3.bf16.msra.mxu1 %v4875_v40  ;;  %11077 = vst [vmem:[#allocation46_spill] sm:$0xff] %v9925_v7  ;;  %11078 = vst [vmem:[#allocation47_spill] sm:$0xff] %v9934_v62  ;;  %v3024_v51 = vadd.f32 %v9659_v27, %v9783_v56  ;;  %v3019_v56 = vadd.f32 %v9659_v27, %v9804_v47  ;;  %v4880_v31 = vpack.c.bf16 %v4443_v25, %v4442_v6  ;;  %v8257_v47 = vld [vmem:[%s11025_s0 + $0x540] sm:$0xff]   ;;  %v8258_v25 = vld [vmem:[%s11025_s0 + $0x548] sm:$0xff]  }
 0x2af   :  { %v3107_v34 = vadd.f32 %v9659_v27, %v7661_v43  ;;  %7169 = vmatprep.subr.bf16.mxu1 %v4882_v35  ;;  %v9938_v36 = vpop.f32.mrf.mxu1  ;;  %v4458_v2 = vmax.f32 %v3096_v11, 0.0  ;;  %v3016_v43 = vadd.f32 %v9659_v27, %v9789_v42  ;;  %v6705_v6 = vcombine.low %v9767_v39, %v9772_v22  ;;  %v8260_v39 = vld [vmem:[%s11025_s0 + $0x558] sm:$0xff]  }
 0x2b0   :  { %v3098_v32 = vpop.f32.mrf.mxu0  ;;  %11079 = vst [vmem:[#allocation48_spill] sm:$0xff] %v9938_v36  ;;  %v4440_v14 = vmax.f32 %v3024_v51, 0.0  ;;  %v4439_v11 = vmax.f32 %v3019_v56, 0.0 }
 0x2b1   :  { %v4461_v29 = vmax.f32 %v3107_v34, 0.0  ;;  %v3099_v60 = vadd.f32 %v9659_v27, %v3098_v32  ;;  %v9945_v58 = vpop.f32.mrf.mxu1 }
 0x2b2   :  { %v9943_v41 = vpop.f32.mrf.mxu0  ;;  %7759 = vmatmul.mubr.bf16.gmra.mxu0 %v8254_v55  ;;  %7170 = vmatpush3.bf16.msra.mxu1 %v4874_v61  ;;  %11080 = vst [vmem:[#allocation49_spill] sm:$0xff] %v9945_v58  ;;  %v4438_v61 = vmax.f32 %v3016_v43, 0.0 }
 0x2b3   :  { %v9947_v38 = vpack.c.bf16 %v4461_v29, %v4460_v0  ;;  %v4459_v40 = vmax.f32 %v3099_v60, 0.0  ;;  %7171 = vmatprep.subr.bf16.mxu1 %v4881_v33  ;;  %7762 = vmatprep.mubr.bf16.mxu0 %v8255_v53  ;;  %v9951_v3 = vpop.f32.mrf.mxu1  ;;  %v9995_v29 = vld [vmem:[%s11027_s1 + $0x38] sm:$0xff] }
 0x2b4   :  { %v9949_v28 = vpop.f32.mrf.mxu0  ;;  %11081 = vst [vmem:[#allocation50_spill] sm:$0xff] %v9951_v3  ;;  %v4878_v33 = vpack.c.bf16 %v4439_v11, %v4438_v61 }
 0x2b5   :  { %v9955_v52 = vpack.c.bf16 %v4459_v40, %v4458_v2  ;;  %v9963_v59 = vpop.f32.mrf.mxu1 }
 0x2b6   :  { %v9957_v35 = vpop.f32.mrf.mxu0  ;;  %7172 = vmatpush3.bf16.msra.mxu1 %v9718_v15  ;;  %11082 = vst [vmem:[#allocation51_spill] sm:$0xff] %v9963_v59  ;;  %v4879_v15 = vpack.c.bf16 %v4441_v13, %v4440_v14 }
 0x2b7   :  { %7173 = vmatprep.subr.bf16.mxu1 %v4880_v31  ;;  %v9972_v24 = vpop.f32.mrf.mxu1 }
 0x2b8   :  { %v9970_v55 = vpop.f32.mrf.mxu0  ;;  %11083 = vst [vmem:[#allocation52_spill] sm:$0xff] %v9972_v24 }
 0x2b9   :  { %v9977_v53 = vpop.f32.mrf.mxu1 }
 0x2ba   :  { %v9974_v34 = vpop.f32.mrf.mxu0  ;;  %7763 = vmatmul.mubr.bf16.gmra.mxu0 %v8256_v10  ;;  %7174 = vmatpush3.bf16.msra.mxu1 %v9727_v17  ;;  %11084 = vst [vmem:[#allocation53_spill] sm:$0xff] %v9977_v53  ;;  %v8259_v17 = vld [vmem:[%s11025_s0 + $0x550] sm:$0xff]  }
 0x2bb   :  { %7175 = vmatprep.subr.bf16.mxu1 %v4879_v15  ;;  %7766 = vmatprep.mubr.bf16.mxu0 %v8257_v47  ;;  %v9981_v44 = vpop.f32.mrf.mxu1  ;;  %v3136_v19 = vadd.f32 %v9659_v27, %v9974_v34 }
 0x2bc   :  { %v9979_v42 = vpop.f32.mrf.mxu0  ;;  %11085 = vst [vmem:[#allocation54_spill] sm:$0xff] %v9981_v44 }
 0x2bd   :  { %v9987_v0 = vpop.f32.mrf.mxu1  ;;  %v3128_v59 = vadd.f32 %v9659_v27, %v9979_v42 }
 0x2be   :  { %v7669_v32 = vpop.f32.mrf.mxu0  ;;  %7176 = vmatpush3.bf16.msra.mxu1 %v9686_v23  ;;  %11086 = vst [vmem:[#allocation55_spill] sm:$0xff] %v9987_v0  ;;  %v10000_v23 = vld [vmem:[%s11027_s1 + $0xb8] sm:$0xff] }
 0x2bf   :  { %7177 = vmatprep.subr.bf16.mxu1 %v4878_v33  ;;  %v10002_v51 = vpop.f32.mrf.mxu1  ;;  %v6708_v40 = vcombine.high %v9995_v29, %v10000_v23  ;;  %v8264_v0 = vld [vmem:[%s11025_s0 + $0x578] sm:$0xff]  }
 0x2c0   :  { %v3130_v60 = vpop.f32.mrf.mxu0  ;;  %11087 = vst [vmem:[#allocation56_spill] sm:$0xff] %v10002_v51 }
 0x2c1   :  { %v10011_v13 = vpop.f32.mrf.mxu1 }
 0x2c2   :  { %v10006_v2 = vpop.f32.mrf.mxu0  ;;  %7767 = vmatmul.mubr.bf16.gmra.mxu0 %v8258_v25  ;;  %7178 = vmatpush3.bf16.msra.mxu1 %v9693_v9  ;;  %11088 = vst [vmem:[#allocation57_spill] sm:$0xff] %v10011_v13  ;;  %v8261_v9 = vld [vmem:[%s11025_s0 + $0x560] sm:$0xff]   ;;  %v8262_v25 = vld [vmem:[%s11025_s0 + $0x568] sm:$0xff]  }
 0x2c3   :  { %7770 = vmatprep.mubr.bf16.mxu0 %v8259_v17  ;;  %v10015_v31 = vpop.f32.mrf.mxu1 }
 0x2c4   :  { %v10013_v56 = vpop.f32.mrf.mxu0  ;;  %11089 = vst [vmem:[#allocation58_spill] sm:$0xff] %v10015_v31  ;;  %v3139_v31 = vadd.f32 %v9659_v27, %v7669_v32 }
 0x2c5   :  { %5469 = vmatmul.mubr.bf16.vlgmr.msra.gmra.mxu1 %v6705_v6  ;;  %v10022_v22 = vpop.f32.mrf.mxu1  ;;  %v8263_v6 = vld [vmem:[%s11025_s0 + $0x570] sm:$0xff]  }
 0x2c6   :  { %v10017_v10 = vpop.f32.mrf.mxu0  ;;  %5509 = vmatprep.mubr.bf16.mxu1 %v6708_v40  ;;  %11090 = vst [vmem:[#allocation59_spill] sm:$0xff] %v10022_v22 }
 0x2c7   :  { %v10029_v43 = vpop.f32.mrf.mxu1 }
 0x2c8   :  { %v10027_v14 = vpop.f32.mrf.mxu0  ;;  %11091 = vst [vmem:[#allocation60_spill] sm:$0xff] %v10029_v43 }
 0x2c9   :  { %v10033_v15 = vpop.f32.mrf.mxu1 }
 0x2ca   :  { %v10031_v47 = vpop.f32.mrf.mxu0  ;;  %7771 = vmatmul.mubr.bf16.gmra.mxu0 %v8260_v39  ;;  %11092 = vst [vmem:[#allocation61_spill] sm:$0xff] %v10033_v15 }
 0x2cb   :  { %7774 = vmatprep.mubr.bf16.mxu0 %v8261_v9  ;;  %v10037_v61 = vpop.f32.mrf.mxu1 }
 0x2cc   :  { %v10035_v11 = vpop.f32.mrf.mxu0  ;;  %11093 = vst [vmem:[#allocation62_spill] sm:$0xff] %v10037_v61  ;;  %v8266_v61 = vld [vmem:[%s11025_s0 + $0x588] sm:$0xff]  }
 0x2cd   :  { %v10044_v17 = vpop.f32.mrf.mxu1 }
 0x2ce   :  { %v10039_v33 = vpop.f32.mrf.mxu0  ;;  %11094 = vst [vmem:[#allocation63_spill] sm:$0xff] %v10044_v17  ;;  %v4469_v17 = vmax.f32 %v3139_v31, 0.0 }
 0x2cf   :  { %v10051_v39 = vpop.f32.mrf.mxu1 }
 0x2d0   :  { %v10049_v40 = vpop.f32.mrf.mxu0  ;;  %11095 = vst [vmem:[#allocation64_spill] sm:$0xff] %v10051_v39 }
 0x2d1   :  { %v10053_v16 = vpop.f32.mrf.mxu1 }
 0x2d2   :  { %v7680_v9 = vpop.f32.mrf.mxu0  ;;  %7775 = vmatmul.mubr.bf16.gmra.mxu0 %v8262_v25  ;;  %11096 = vst [vmem:[#allocation65_spill] sm:$0xff] %v10053_v16 }
 0x2d3   :  { %7778 = vmatprep.mubr.bf16.mxu0 %v8263_v6  ;;  %v10055_v51 = vpop.f32.mrf.mxu1 }
 0x2d4   :  { %v3175_v62 = vpop.f32.mrf.mxu0  ;;  %11097 = vst [vmem:[#allocation66_spill] sm:$0xff] %v10055_v51 }
 0x2d5   :  { %v10060_v53 = vpop.f32.mrf.mxu1 }
 0x2d6   :  { %v7681_v44 = vpop.f32.mrf.mxu0  ;;  %11098 = vst [vmem:[#allocation67_spill] sm:$0xff] %v10060_v53 }
 0x2d7   :  { %v10065_v43 = vpop.f32.mrf.mxu1  ;;  %v3187_v34 = vadd.f32 %v9659_v27, %v7681_v44 }
 0x2d8   :  { %v3178_v63 = vpop.f32.mrf.mxu0  ;;  %11099 = vst [vmem:[#allocation68_spill] sm:$0xff] %v10065_v43 }
 0x2d9   :  { %v7047_v6 = vpop.f32.mrf.mxu1  ;;  %v4481_v53 = vmax.f32 %v3187_v34, 0.0 }
 0x2da   :  { %v7684_v25 = vpop.f32.mrf.mxu0  ;;  %7779 = vmatmul.mubr.bf16.gmra.mxu0 %v8264_v0 }
 0x2db   :  { %7782 = vmatprep.mubr.bf16.mxu0 %v8265_v12  ;;  %v7048_v13 = vpop.f32.mrf.mxu1  ;;  %v3200_v36 = vadd.f32 %v9659_v27, %v7684_v25  ;;  %v8267_v12 = vld [vmem:[%s11025_s0 + $0x590] sm:$0xff]   ;;  %v3131_v25 = vadd.f32 %v9659_v27, %v3130_v60 }
 0x2dc   :  { %v3191_v22 = vpop.f32.mrf.mxu0  ;;  %v7049_v32 = vadd.f32 %v7048_v13, %v7047_v6  ;;  %v3184_v13 = vadd.f32 %v9659_v27, %v7680_v9 }
 0x2dd   :  { %v7050_v7 = vpop.f32.mrf.mxu1  ;;  %v3192_v20 = vadd.f32 %v9659_v27, %v3191_v22  ;;  %v4484_v3 = vmax.f32 %v3200_v36, 0.0  ;;  %v3123_v22 = vadd.f32 %v9659_v27, %v9957_v35 }
 0x2de   :  { %v7685_v39 = vpop.f32.mrf.mxu0 }
 0x2df   :  { %v3203_v0 = vadd.f32 %v9659_v27, %v7685_v39  ;;  %v7051_v24 = vpop.f32.mrf.mxu1  ;;  %v4468_v39 = vmax.f32 %v3136_v19, 0.0  ;;  %v4482_v6 = vmax.f32 %v3192_v20, 0.0  ;;  %v3120_v19 = vadd.f32 %v9659_v27, %v9943_v41 }
 0x2e0   :  { %v3194_v15 = vpop.f32.mrf.mxu0  ;;  %v4465_v21 = vmax.f32 %v3123_v22, 0.0  ;;  %v3115_v20 = vadd.f32 %v9659_v27, %v9970_v55  ;;  %v3176_v41 = vadd.f32 %v9659_v27, %v3175_v62 }
 0x2e1   :  { %v4485_v43 = vmax.f32 %v3203_v0, 0.0  ;;  %v3195_v51 = vadd.f32 %v9659_v27, %v3194_v15  ;;  %v7069_v60 = vpop.f32.mrf.mxu1  ;;  %v4893_v36 = vpack.c.bf16 %v4469_v17, %v4468_v39  ;;  %v4467_v0 = vmax.f32 %v3131_v25, 0.0 }
 0x2e2   :  { %v7688_v31 = vpop.f32.mrf.mxu0  ;;  %7783 = vmatmul.mubr.bf16.gmra.mxu0 %v8266_v61  ;;  %v3179_v15 = vadd.f32 %v9659_v27, %v3178_v63  ;;  %v7052_v61 = vadd.f32 %v7051_v24, %v7050_v7  ;;  %v8268_v63 = vld [vmem:[%s11025_s0 + $0x598] sm:$0xff]   ;;  %v8269_v7 = vld [vmem:[%s11025_s0 + $0x5a0] sm:$0xff]   ;;  %v3171_v24 = vadd.f32 %v9659_v27, %v10039_v33 }
 0x2e3   :  { %v4901_v44 = vpack.c.bf16 %v4485_v43, %v4484_v3  ;;  %v4483_v58 = vmax.f32 %v3195_v51, 0.0  ;;  %7786 = vmatprep.mubr.bf16.mxu0 %v8267_v12  ;;  %v7070_v35 = vpop.f32.mrf.mxu1  ;;  %v3216_v42 = vadd.f32 %v9659_v27, %v7688_v31  ;;  %v4466_v3 = vmax.f32 %v3128_v59, 0.0 }
 0x2e4   :  { %v3207_v16 = vpop.f32.mrf.mxu0  ;;  %v4480_v51 = vmax.f32 %v3184_v13, 0.0  ;;  %v7071_v59 = vadd.f32 %v7070_v35, %v7069_v60  ;;  %v4479_v34 = vmax.f32 %v3179_v15, 0.0  ;;  %v3168_v60 = vadd.f32 %v9659_v27, %v10031_v47 }
 0x2e5   :  { %7185 = vmatprep.subr.bf16.mxu1 %v4901_v44  ;;  %v4900_v9 = vpack.c.bf16 %v4483_v58, %v4482_v6  ;;  %v7072_v17 = vpop.f32.mrf.mxu1  ;;  %v3208_v12 = vadd.f32 %v9659_v27, %v3207_v16  ;;  %v4892_v55 = vpack.c.bf16 %v4467_v0, %v4466_v3  ;;  %v4488_v13 = vmax.f32 %v3216_v42, 0.0 }
 0x2e6   :  { %v7689_v43 = vpop.f32.mrf.mxu0  ;;  %7186 = vmatpush3.bf16.msra.mxu1 %v4893_v36  ;;  %v4899_v25 = vpack.c.bf16 %v4481_v53, %v4480_v51  ;;  %v5266_v31 = vadd.f32 %v7071_v59, %v7049_v32  ;;  %v4464_v6 = vmax.f32 %v3120_v19, 0.0  ;;  %v3112_v44 = vadd.f32 %v9659_v27, %v9949_v28 }
 0x2e7   :  { %v3219_v58 = vadd.f32 %v9659_v27, %v7689_v43  ;;  %7187 = vmatprep.subr.bf16.mxu1 %v4900_v9  ;;  %v7073_v39 = vpop.f32.mrf.mxu1  ;;  %v4478_v53 = vmax.f32 %v3176_v41, 0.0  ;;  %v4486_v0 = vmax.f32 %v3208_v12, 0.0  ;;  %v4463_v32 = vmax.f32 %v3115_v20, 0.0 }
 0x2e8   :  { %v3210_v22 = vpop.f32.mrf.mxu0  ;;  %v4891_v42 = vpack.c.bf16 %v4465_v21, %v4464_v6  ;;  %v4477_v19 = vmax.f32 %v3171_v24, 0.0  ;;  %v3163_v28 = vadd.f32 %v9659_v27, %v10049_v40  ;;  %v4462_v41 = vmax.f32 %v3112_v44, 0.0  ;;  %v8270_v21 = vld [vmem:[%s11025_s0 + $0x5a8] sm:$0xff]  }
 0x2e9   :  { %v4489_v62 = vmax.f32 %v3219_v58, 0.0  ;;  %v3211_v16 = vadd.f32 %v9659_v27, %v3210_v22  ;;  %v7091_v33 = vpop.f32.mrf.mxu1  ;;  %v4898_v43 = vpack.c.bf16 %v4479_v34, %v4478_v53  ;;  %v4476_v12 = vmax.f32 %v3168_v60, 0.0 }
 0x2ea   :  { %v7692_v36 = vpop.f32.mrf.mxu0  ;;  %7787 = vmatmul.mubr.bf16.gmra.mxu0 %v8268_v63  ;;  %7188 = vmatpush3.bf16.msra.mxu1 %v4892_v55  ;;  %v7074_v63 = vadd.f32 %v7073_v39, %v7072_v17  ;;  %v3160_v58 = vadd.f32 %v9659_v27, %v10035_v11  ;;  %v8271_v17 = vld [vmem:[%s11025_s0 + $0x5b0] sm:$0xff]   ;;  %v3155_v11 = vadd.f32 %v9659_v27, %v10017_v10  ;;  %v4475_v22 = vmax.f32 %v3163_v28, 0.0 }
 0x2eb   :  { %v10109_v15 = vpack.c.bf16 %v4489_v62, %v4488_v13  ;;  %v4487_v35 = vmax.f32 %v3211_v16, 0.0  ;;  %7189 = vmatprep.subr.bf16.mxu1 %v4899_v25  ;;  %7790 = vmatprep.mubr.bf16.mxu0 %v8269_v7  ;;  %v7092_v3 = vpop.f32.mrf.mxu1  ;;  %v3232_v51 = vadd.f32 %v9659_v27, %v7692_v36  ;;  %v4890_v25 = vpack.c.bf16 %v4463_v32, %v4462_v41 }
 0x2ec   :  { %v3223_v9 = vpop.f32.mrf.mxu0  ;;  %v5269_v55 = vadd.f32 %v7074_v63, %v7052_v61  ;;  %v7093_v24 = vadd.f32 %v7092_v3, %v7091_v33  ;;  %v4897_v34 = vpack.c.bf16 %v4477_v19, %v4476_v12  ;;  %v3152_v60 = vadd.f32 %v9659_v27, %v10006_v2  ;;  %v8272_v3 = vld [vmem:[%s11025_s0 + $0x5b8] sm:$0xff]  }
 0x2ed   :  { %v10113_v47 = vpack.c.bf16 %v4487_v35, %v4486_v0  ;;  %v7094_v40 = vpop.f32.mrf.mxu1  ;;  %v3224_v20 = vadd.f32 %v9659_v27, %v3223_v9  ;;  %v4492_v62 = vmax.f32 %v3232_v51, 0.0  ;;  %v4474_v33 = vmax.f32 %v3160_v58, 0.0 }
 0x2ee   :  { %v7693_v7 = vpop.f32.mrf.mxu0  ;;  %7190 = vmatpush3.bf16.msra.mxu1 %v4891_v42  ;;  %v5307_v44 = vadd.f32 %v7093_v24, %v5266_v31  ;;  %v4473_v35 = vmax.f32 %v3155_v11, 0.0  ;;  %v4472_v51 = vmax.f32 %v3152_v60, 0.0  ;;  %v10172_v11 = vld [vmem:[%s11027_s1 + $0x40] sm:$0xff]  ;;  %v8276_v60 = vld [vmem:[%s11025_s0 + $0x5d8] sm:$0xff]  }
 0x2ef   :  { %v3235_v59 = vadd.f32 %v9659_v27, %v7693_v7  ;;  %7191 = vmatprep.subr.bf16.mxu1 %v4898_v43  ;;  %v7095_v13 = vpop.f32.mrf.mxu1  ;;  %v4490_v53 = vmax.f32 %v3224_v20, 0.0  ;;  %v4896_v19 = vpack.c.bf16 %v4475_v22, %v4474_v33 }
 0x2f0   :  { %v3226_v39 = vpop.f32.mrf.mxu0  ;;  %v7096_v28 = vadd.f32 %v7095_v13, %v7094_v40  ;;  %v4895_v7 = vpack.c.bf16 %v4473_v35, %v4472_v51  ;;  %v8279_v51 = vld [vmem:[%s11025_s0 + $0x5f0] sm:$0xff]  }
 0x2f1   :  { %v4493_v16 = vmax.f32 %v3235_v59, 0.0  ;;  %v3227_v6 = vadd.f32 %v9659_v27, %v3226_v39  ;;  %v7113_v61 = vpop.f32.mrf.mxu1  ;;  %v10140_v27 = vld [vmem:[%s11026_s3] ss:$0 sm:$0xff]  ;;  %v6707_v39 = vcombine.low %v9995_v29, %v10000_v23 }
 0x2f2   :  { %v10131_v36 = vpop.f32.mrf.mxu0  ;;  %7791 = vmatmul.mubr.bf16.gmra.mxu0 %v8270_v21  ;;  %7192 = vmatpush3.bf16.msra.mxu1 %v4890_v25  ;;  %v3147_v2 = vadd.f32 %v10140_v27, %v10027_v14  ;;  %v3144_v43 = vadd.f32 %v10140_v27, %v10013_v56  ;;  %v8273_v14 = vld [vmem:[%s11025_s0 + $0x5c0] sm:$0xff]   ;;  %v5310_v63 = vadd.f32 %v7096_v28, %v5269_v55  ;;  %v8274_v25 = vld [vmem:[%s11025_s0 + $0x5c8] sm:$0xff]  }
 0x2f3   :  { %v10133_v10 = vpack.c.bf16 %v4493_v16, %v4492_v62  ;;  %v4491_v0 = vmax.f32 %v3227_v6, 0.0  ;;  %7193 = vmatprep.subr.bf16.mxu1 %v4897_v34  ;;  %7794 = vmatprep.mubr.bf16.mxu0 %v8271_v17  ;;  %v7114_v32 = vpop.f32.mrf.mxu1  ;;  %v10177_v34 = vld [vmem:[%s11027_s1 + $0xc0] sm:$0xff]  ;;  %v8278_v28 = vld [vmem:[%s11025_s0 + $0x5e8] sm:$0xff]  }
 0x2f4   :  { %v10135_v42 = vpop.f32.mrf.mxu0  ;;  %v7115_v41 = vadd.f32 %v7114_v32, %v7113_v61  ;;  %v4470_v20 = vmax.f32 %v3144_v43, 0.0  ;;  %v6710_v62 = vcombine.high %v10172_v11, %v10177_v34  ;;  %v8277_v29 = vld [vmem:[%s11025_s0 + $0x5e0] sm:$0xff]  }
 0x2f5   :  { %v10144_v31 = vpack.c.bf16 %v4491_v0, %v4490_v53  ;;  %v7116_v58 = vpop.f32.mrf.mxu1 }
 0x2f6   :  { %v10146_v9 = vpop.f32.mrf.mxu0  ;;  %7194 = vmatpush3.bf16.msra.mxu1 %v9947_v38  ;;  %v4471_v38 = vmax.f32 %v3147_v2, 0.0  ;;  %v5348_v21 = vadd.f32 %v7115_v41, %v5307_v44 }
 0x2f7   :  { %7195 = vmatprep.subr.bf16.mxu1 %v4896_v19  ;;  %v7117_v59 = vpop.f32.mrf.mxu1 }
 0x2f8   :  { %v10157_v12 = vpop.f32.mrf.mxu0  ;;  %v4894_v17 = vpack.c.bf16 %v4471_v38, %v4470_v20  ;;  %v7118_v24 = vadd.f32 %v7117_v59, %v7116_v58  ;;  %v8280_v58 = vld [vmem:[%s11025_s0 + $0x5f8] sm:$0xff]  }
 0x2fa   :  { %v7700_v40 = vpop.f32.mrf.mxu0  ;;  %7795 = vmatmul.mubr.bf16.gmra.mxu0 %v8272_v3  ;;  %7196 = vmatpush3.bf16.msra.mxu1 %v9955_v52  ;;  %v8275_v52 = vld [vmem:[%s11025_s0 + $0x5d0] sm:$0xff]  }
 0x2fb   :  { %7197 = vmatprep.subr.bf16.mxu1 %v4895_v7  ;;  %7798 = vmatprep.mubr.bf16.mxu0 %v8273_v14  ;;  %v8281_v7 = vld [vmem:[%s11025_s0 + $0x600] sm:$0xff]  }
 0x2fc   :  { %v10160_v56 = vpop.f32.mrf.mxu0 }
 0x2fe   :  { %v7701_v55 = vpop.f32.mrf.mxu0  ;;  %7198 = vmatpush3.bf16.msra.mxu1 %v9912_v46  ;;  %v5351_v46 = vadd.f32 %v7118_v24, %v5310_v63  ;;  %v3264_v24 = vadd.f32 %v10140_v27, %v7700_v40 }
 0x2ff   :  { %7199 = vmatprep.subr.bf16.mxu1 %v4894_v17  ;;  %v3267_v20 = vadd.f32 %v10140_v27, %v7701_v55 }
 0x300   :  { %v3258_v22 = vpop.f32.mrf.mxu0 }
 0x301   :  { %v3259_v55 = vadd.f32 %v10140_v27, %v3258_v22 }
 0x302   :  { %v10181_v13 = vpop.f32.mrf.mxu0  ;;  %7799 = vmatmul.mubr.bf16.gmra.mxu0 %v8274_v25  ;;  %7200 = vmatpush3.bf16.msra.mxu1 %v9919_v18 }
 0x303   :  { %7802 = vmatprep.mubr.bf16.mxu0 %v8275_v52  ;;  %v8282_v52 = vld [vmem:[%s11025_s0 + $0x608] sm:$0xff]  }
 0x304   :  { %v10186_v16 = vpop.f32.mrf.mxu0 }
 0x305   :  { %5510 = vmatmul.mubr.bf16.vlgmr.msra.gmra.mxu1 %v6707_v39  ;;  %v7135_v6 = vpop.f32.mrf.mxu1 }
 0x306   :  { %v10188_v44 = vpop.f32.mrf.mxu0  ;;  %5550 = vmatprep.mubr.bf16.mxu1 %v6710_v62  ;;  %v8283_v62 = vld [vmem:[%s11025_s0 + $0x610] sm:$0xff]  }
 0x307   :  { %v7136_v18 = vpop.f32.mrf.mxu1 }
 0x308   :  { %v10196_v23 = vpop.f32.mrf.mxu0  ;;  %v7137_v61 = vadd.f32 %v7136_v18, %v7135_v6  ;;  %v4501_v6 = vmax.f32 %v3267_v20, 0.0 }
 0x309   :  { %v7138_v33 = vpop.f32.mrf.mxu1 }
 0x30a   :  { %v10198_v53 = vpop.f32.mrf.mxu0  ;;  %7803 = vmatmul.mubr.bf16.gmra.mxu0 %v8276_v60  ;;  %v10200_v0 = vadd.f32 %v7137_v61, %v5348_v21 }
 0x30b   :  { %7806 = vmatprep.mubr.bf16.mxu0 %v8277_v29  ;;  %v7139_v35 = vpop.f32.mrf.mxu1 }
 0x30c   :  { %v10202_v32 = vpop.f32.mrf.mxu0  ;;  %v7140_v2 = vadd.f32 %v7139_v35, %v7138_v33  ;;  %v4500_v33 = vmax.f32 %v3264_v24, 0.0  ;;  %v3256_v35 = vadd.f32 %v10140_v27, %v10160_v56 }
 0x30e   :  { %v10204_v19 = vpop.f32.mrf.mxu0  ;;  %v10209_v3 = vadd.f32 %v7140_v2, %v5351_v46 }
 0x310   :  { %v10214_v43 = vpop.f32.mrf.mxu0 }
 0x312   :  { %v7712_v14 = vpop.f32.mrf.mxu0  ;;  %7807 = vmatmul.mubr.bf16.gmra.mxu0 %v8278_v28 }
 0x313   :  { %7810 = vmatprep.mubr.bf16.mxu0 %v8279_v51  ;;  %v3312_v2 = vadd.f32 %v10140_v27, %v7712_v14  ;;  %v3251_v51 = vadd.f32 %v10140_v27, %v10146_v9  ;;  %v3248_v14 = vadd.f32 %v10140_v27, %v10131_v36  ;;  %v8285_v36 = vld [vmem:[%s11025_s0 + $0x620] sm:$0xff]  }
 0x314   :  { %v3303_v63 = vpop.f32.mrf.mxu0 }
 0x316   :  { %v7713_v41 = vpop.f32.mrf.mxu0 }
 0x317   :  { %v3315_v60 = vadd.f32 %v10140_v27, %v7713_v41  ;;  %v4909_v41 = vpack.c.bf16 %v4501_v6, %v4500_v33 }
 0x318   :  { %v3306_v38 = vpop.f32.mrf.mxu0 }
 0x319   :  { %v4513_v20 = vmax.f32 %v3315_v60, 0.0 }
 0x31a   :  { %v7716_v21 = vpop.f32.mrf.mxu0  ;;  %7811 = vmatmul.mubr.bf16.gmra.mxu0 %v8280_v58 }
 0x31b   :  { %7814 = vmatprep.mubr.bf16.mxu0 %v8281_v7  ;;  %v3328_v17 = vadd.f32 %v10140_v27, %v7716_v21  ;;  %v4499_v21 = vmax.f32 %v3259_v55, 0.0  ;;  %v3243_v55 = vadd.f32 %v10140_v27, %v10157_v12 }
 0x31c   :  { %v3319_v59 = vpop.f32.mrf.mxu0 }
 0x31d   :  { %v3320_v46 = vadd.f32 %v10140_v27, %v3319_v59  ;;  %v4516_v40 = vmax.f32 %v3328_v17, 0.0  ;;  %v3307_v17 = vadd.f32 %v10140_v27, %v3306_v38 }
 0x31e   :  { %v7717_v25 = vpop.f32.mrf.mxu0 }
 0x31f   :  { %v3331_v39 = vadd.f32 %v10140_v27, %v7717_v25  ;;  %v4514_v58 = vmax.f32 %v3320_v46, 0.0  ;;  %v4498_v25 = vmax.f32 %v3256_v35, 0.0  ;;  %v8284_v46 = vld [vmem:[%s11025_s0 + $0x618] sm:$0xff]  }
 0x320   :  { %v3322_v29 = vpop.f32.mrf.mxu0 }
 0x321   :  { %v4517_v18 = vmax.f32 %v3331_v39, 0.0  ;;  %v3323_v61 = vadd.f32 %v10140_v27, %v3322_v29  ;;  %v4497_v39 = vmax.f32 %v3251_v51, 0.0  ;;  %v4908_v60 = vpack.c.bf16 %v4499_v21, %v4498_v25 }
 0x322   :  { %v7720_v28 = vpop.f32.mrf.mxu0  ;;  %7815 = vmatmul.mubr.bf16.gmra.mxu0 %v8282_v52  ;;  %v4512_v52 = vmax.f32 %v3312_v2, 0.0  ;;  %v3299_v29 = vadd.f32 %v10140_v27, %v10204_v19  ;;  %v4496_v2 = vmax.f32 %v3248_v14, 0.0  ;;  %v3296_v51 = vadd.f32 %v10140_v27, %v10198_v53 }
 0x323   :  { %v4917_v22 = vpack.c.bf16 %v4517_v18, %v4516_v40  ;;  %v4515_v7 = vmax.f32 %v3323_v61, 0.0  ;;  %7818 = vmatprep.mubr.bf16.mxu0 %v8283_v62  ;;  %v3344_v24 = vadd.f32 %v10140_v27, %v7720_v28  ;;  %v3304_v62 = vadd.f32 %v10140_v27, %v3303_v63 }
 0x324   :  { %v3335_v59 = vpop.f32.mrf.mxu0  ;;  %v4915_v40 = vpack.c.bf16 %v4513_v20, %v4512_v52  ;;  %v4511_v61 = vmax.f32 %v3307_v17, 0.0  ;;  %v3240_v28 = vadd.f32 %v10140_v27, %v10135_v42  ;;  %v4495_v21 = vmax.f32 %v3243_v55, 0.0  ;;  %v8286_v52 = vld [vmem:[%s11025_s0 + $0x628] sm:$0xff]  }
 0x325   :  { %7207 = vmatprep.subr.bf16.mxu1 %v4917_v22  ;;  %v4916_v56 = vpack.c.bf16 %v4515_v7, %v4514_v58  ;;  %v3336_v38 = vadd.f32 %v10140_v27, %v3335_v59  ;;  %v4520_v63 = vmax.f32 %v3344_v24, 0.0  ;;  %v4510_v12 = vmax.f32 %v3304_v62, 0.0 }
 0x326   :  { %v7721_v9 = vpop.f32.mrf.mxu0  ;;  %7208 = vmatpush3.bf16.msra.mxu1 %v4909_v41  ;;  %v4907_v41 = vpack.c.bf16 %v4497_v39, %v4496_v2  ;;  %v4509_v20 = vmax.f32 %v3299_v29, 0.0  ;;  %v3291_v42 = vadd.f32 %v10140_v27, %v10214_v43  ;;  %v4508_v14 = vmax.f32 %v3296_v51, 0.0  ;;  %v8287_v39 = vld [vmem:[%s11025_s0 + $0x630] sm:$0xff]  }
 0x327   :  { %v3347_v6 = vadd.f32 %v10140_v27, %v7721_v9  ;;  %7209 = vmatprep.subr.bf16.mxu1 %v4916_v56  ;;  %v4518_v22 = vmax.f32 %v3336_v38, 0.0  ;;  %v4914_v24 = vpack.c.bf16 %v4511_v61, %v4510_v12  ;;  %v4494_v56 = vmax.f32 %v3240_v28, 0.0  ;;  %v8288_v12 = vld [vmem:[%s11025_s0 + $0x638] sm:$0xff]  }
 0x328   :  { %v3338_v18 = vpop.f32.mrf.mxu0  ;;  %v3288_v9 = vadd.f32 %v10140_v27, %v10202_v32  ;;  %v3283_v38 = vadd.f32 %v10140_v27, %v10188_v44  ;;  %v4507_v55 = vmax.f32 %v3291_v42, 0.0  ;;  %v3275_v28 = vadd.f32 %v10140_v27, %v10196_v23  ;;  %v8289_v23 = vld [vmem:[%s11025_s0 + $0x640] sm:$0xff]  }
 0x329   :  { %v4521_v33 = vmax.f32 %v3347_v6, 0.0  ;;  %v3339_v35 = vadd.f32 %v10140_v27, %v3338_v18  ;;  %v4906_v62 = vpack.c.bf16 %v4495_v21, %v4494_v56  ;;  %v4913_v6 = vpack.c.bf16 %v4509_v20, %v4508_v14  ;;  %v8291_v56 = vld [vmem:[%s11025_s0 + $0x650] sm:$0xff]   ;;  %v10324_v14 = vld [vmem:[%s11027_s1 + $0xc8] sm:$0xff] }
 0x32a   :  { %v7724_v58 = vpop.f32.mrf.mxu0  ;;  %7819 = vmatmul.mubr.bf16.gmra.mxu0 %v8284_v46  ;;  %7210 = vmatpush3.bf16.msra.mxu1 %v4908_v60  ;;  %v4506_v61 = vmax.f32 %v3288_v9, 0.0  ;;  %v4505_v2 = vmax.f32 %v3283_v38, 0.0  ;;  %v4503_v20 = vmax.f32 %v3275_v28, 0.0 }
 0x32b   :  { %v10263_v19 = vpack.c.bf16 %v4521_v33, %v4520_v63  ;;  %v4519_v7 = vmax.f32 %v3339_v35, 0.0  ;;  %7211 = vmatprep.subr.bf16.mxu1 %v4915_v40  ;;  %7822 = vmatprep.mubr.bf16.mxu0 %v8285_v36  ;;  %v3360_v53 = vadd.f32 %v10140_v27, %v7724_v58  ;;  %v3280_v40 = vadd.f32 %v10140_v27, %v10181_v13 }
 0x32c   :  { %v3351_v59 = vpop.f32.mrf.mxu0  ;;  %v4912_v13 = vpack.c.bf16 %v4507_v55, %v4506_v61 }
 0x32d   :  { %v10267_v17 = vpack.c.bf16 %v4519_v7, %v4518_v22  ;;  %v3352_v46 = vadd.f32 %v10140_v27, %v3351_v59  ;;  %v4524_v60 = vmax.f32 %v3360_v53, 0.0  ;;  %v4504_v22 = vmax.f32 %v3280_v40, 0.0 }
 0x32e   :  { %v7725_v25 = vpop.f32.mrf.mxu0  ;;  %7212 = vmatpush3.bf16.msra.mxu1 %v4907_v41  ;;  %v3272_v7 = vadd.f32 %v10140_v27, %v10186_v16  ;;  %v8290_v16 = vld [vmem:[%s11025_s0 + $0x648] sm:$0xff]  }
 0x32f   :  { %v3363_v43 = vadd.f32 %v10140_v27, %v7725_v25  ;;  %7213 = vmatprep.subr.bf16.mxu1 %v4914_v24  ;;  %v4522_v63 = vmax.f32 %v3352_v46, 0.0  ;;  %v4911_v21 = vpack.c.bf16 %v4505_v2, %v4504_v22  ;;  %v6709_v25 = vcombine.low %v10172_v11, %v10177_v34  ;;  %v8293_v11 = vld [vmem:[%s11025_s0 + $0x660] sm:$0xff]  }
 0x330   :  { %v3354_v36 = vpop.f32.mrf.mxu0 }
 0x331   :  { %v4525_v29 = vmax.f32 %v3363_v43, 0.0  ;;  %v3355_v32 = vadd.f32 %v10140_v27, %v3354_v36 }
 0x332   :  { %v10285_v18 = vpop.f32.mrf.mxu0  ;;  %7823 = vmatmul.mubr.bf16.gmra.mxu0 %v8286_v52  ;;  %7214 = vmatpush3.bf16.msra.mxu1 %v4906_v62  ;;  %v8292_v62 = vld [vmem:[%s11025_s0 + $0x658] sm:$0xff]  }
 0x333   :  { %v10287_v33 = vpack.c.bf16 %v4525_v29, %v4524_v60  ;;  %v4523_v35 = vmax.f32 %v3355_v32, 0.0  ;;  %7215 = vmatprep.subr.bf16.mxu1 %v4913_v6  ;;  %7826 = vmatprep.mubr.bf16.mxu0 %v8287_v39  ;;  %v8294_v29 = vld [vmem:[%s11025_s0 + $0x668] sm:$0xff]   ;;  %v8295_v32 = vld [vmem:[%s11025_s0 + $0x670] sm:$0xff]  }
 0x334   :  { %v10289_v44 = vpop.f32.mrf.mxu0 }
 0x335   :  { %v10293_v51 = vpack.c.bf16 %v4523_v35, %v4522_v63  ;;  %v8296_v35 = vld [vmem:[%s11025_s0 + $0x678] sm:$0xff]  }
 0x336   :  { %v10295_v58 = vpop.f32.mrf.mxu0  ;;  %7216 = vmatpush3.bf16.msra.mxu1 %v10133_v10  ;;  %v4502_v10 = vmax.f32 %v3272_v7, 0.0 }
 0x337   :  { %7217 = vmatprep.subr.bf16.mxu1 %v4912_v13 }
 0x338   :  { %v10306_v41 = vpop.f32.mrf.mxu0  ;;  %v4910_v53 = vpack.c.bf16 %v4503_v20, %v4502_v10 }
 0x33a   :  { %v7732_v59 = vpop.f32.mrf.mxu0  ;;  %7827 = vmatmul.mubr.bf16.gmra.mxu0 %v8288_v12  ;;  %7218 = vmatpush3.bf16.msra.mxu1 %v10144_v31  ;;  %v10319_v31 = vld [vmem:[%s11027_s1 + $0x48] sm:$0xff] }
 0x33b   :  { %7219 = vmatprep.subr.bf16.mxu1 %v4911_v21  ;;  %7830 = vmatprep.mubr.bf16.mxu0 %v8289_v23  ;;  %v6712_v9 = vcombine.high %v10319_v31, %v10324_v14  ;;  %v3392_v7 = vadd.f32 %v10140_v27, %v7732_v59 }
 0x33c   :  { %v3383_v42 = vpop.f32.mrf.mxu0 }
 0x33e   :  { %v7733_v24 = vpop.f32.mrf.mxu0  ;;  %7220 = vmatpush3.bf16.msra.mxu1 %v10109_v15 }
 0x33f   :  { %7221 = vmatprep.subr.bf16.mxu1 %v4910_v53  ;;  %v3395_v13 = vadd.f32 %v10140_v27, %v7733_v24 }
 0x340   :  { %v3386_v15 = vpop.f32.mrf.mxu0 }
 0x341   :  { %v4533_v10 = vmax.f32 %v3395_v13, 0.0  ;;  %v3387_v53 = vadd.f32 %v10140_v27, %v3386_v15 }
 0x342   :  { %v10328_v52 = vpop.f32.mrf.mxu0  ;;  %7831 = vmatmul.mubr.bf16.gmra.mxu0 %v8290_v16  ;;  %7222 = vmatpush3.bf16.msra.mxu1 %v10113_v47 }
 0x343   :  { %7834 = vmatprep.mubr.bf16.mxu0 %v8291_v56 }
 0x344   :  { %v10333_v46 = vpop.f32.mrf.mxu0 }
 0x345   :  { %5551 = vmatmul.mubr.bf16.vlgmr.msra.gmra.mxu1 %v6709_v25  ;;  %v7157_v43 = vpop.f32.mrf.mxu1 }
 0x346   :  { %v10335_v39 = vpop.f32.mrf.mxu0  ;;  %5591 = vmatprep.mubr.bf16.mxu1 %v6712_v9 }
 0x347   :  { %v7158_v47 = vpop.f32.mrf.mxu1 }
 0x348   :  { %v10343_v34 = vpop.f32.mrf.mxu0  ;;  %v7159_v38 = vadd.f32 %v7158_v47, %v7157_v43  ;;  %v4532_v43 = vmax.f32 %v3392_v7, 0.0  ;;  %v3379_v47 = vadd.f32 %v10140_v27, %v10295_v58 }
 0x34a   :  { %v10345_v6 = vpop.f32.mrf.mxu0  ;;  %7835 = vmatmul.mubr.bf16.gmra.mxu0 %v8292_v62  ;;  %v10348_v36 = vadd.f32 %v7159_v38, %v10200_v0  ;;  %v3384_v62 = vadd.f32 %v10140_v27, %v3383_v42  ;;  %v4925_v15 = vpack.c.bf16 %v4533_v10, %v4532_v43  ;;  %v3376_v42 = vadd.f32 %v10140_v27, %v10285_v18 }
 0x34b   :  { %7838 = vmatprep.mubr.bf16.mxu0 %v8293_v11  ;;  %v4529_v58 = vmax.f32 %v3379_v47, 0.0 }
 0x34c   :  { %v10350_v55 = vpop.f32.mrf.mxu0 }
 0x34e   :  { %v7741_v60 = vpop.f32.mrf.mxu0 }
 0x350   :  { %v10358_v40 = vpop.f32.mrf.mxu0 }
 0x352   :  { %v7744_v61 = vpop.f32.mrf.mxu0  ;;  %7839 = vmatmul.mubr.bf16.gmra.mxu0 %v8294_v29 }
 0x353   :  { %7842 = vmatprep.mubr.bf16.mxu0 %v8295_v32  ;;  %v3440_v59 = vadd.f32 %v10140_v27, %v7744_v61  ;;  %v4530_v61 = vmax.f32 %v3384_v62, 0.0  ;;  %v4528_v62 = vmax.f32 %v3376_v42, 0.0  ;;  %v3416_v42 = vadd.f32 %v10140_v27, %v10350_v55 }
 0x354   :  { %v3431_v63 = vpop.f32.mrf.mxu0 }
 0x355   :  { %v4544_v7 = vmax.f32 %v3440_v59, 0.0  ;;  %v3424_v59 = vadd.f32 %v10140_v27, %v10345_v6 }
 0x356   :  { %v7745_v0 = vpop.f32.mrf.mxu0 }
 0x357   :  { %v3443_v16 = vadd.f32 %v10140_v27, %v7745_v0 }
 0x358   :  { %v3434_v2 = vpop.f32.mrf.mxu0 }
 0x359   :  { %v4545_v0 = vmax.f32 %v3443_v16, 0.0  ;;  %v3435_v13 = vadd.f32 %v10140_v27, %v3434_v2  ;;  %v3371_v2 = vadd.f32 %v10140_v27, %v10306_v41  ;;  %v3427_v16 = vadd.f32 %v10140_v27, %v7741_v60 }
 0x35a   :  { %v7748_v28 = vpop.f32.mrf.mxu0  ;;  %7843 = vmatmul.mubr.bf16.gmra.mxu0 %v8296_v35  ;;  %v4531_v35 = vmax.f32 %v3387_v53, 0.0 }
 0x35b   :  { %v3456_v22 = vadd.f32 %v10140_v27, %v7748_v28 }
 0x35c   :  { %v3447_v12 = vpop.f32.mrf.mxu0  ;;  %v4924_v53 = vpack.c.bf16 %v4531_v35, %v4530_v61 }
 0x35d   :  { %v3448_v21 = vadd.f32 %v10140_v27, %v3447_v12  ;;  %v4548_v25 = vmax.f32 %v3456_v22, 0.0 }
 0x35e   :  { %v7749_v23 = vpop.f32.mrf.mxu0 }
 0x35f   :  { %v3459_v20 = vadd.f32 %v10140_v27, %v7749_v23  ;;  %v4546_v38 = vmax.f32 %v3448_v21, 0.0  ;;  %v3432_v21 = vadd.f32 %v10140_v27, %v3431_v63  ;;  %v3368_v63 = vadd.f32 %v10140_v27, %v10289_v44 }
 0x360   :  { %v3450_v56 = vpop.f32.mrf.mxu0 }
 0x361   :  { %v4549_v9 = vmax.f32 %v3459_v20, 0.0  ;;  %v3451_v24 = vadd.f32 %v10140_v27, %v3450_v56  ;;  %v4931_v56 = vpack.c.bf16 %v4545_v0, %v4544_v7  ;;  %v4542_v41 = vmax.f32 %v3432_v21, 0.0 }
 0x362   :  { %v7752_v11 = vpop.f32.mrf.mxu0  ;;  %v3419_v0 = vadd.f32 %v10140_v27, %v10358_v40  ;;  %v3411_v40 = vadd.f32 %v10140_v27, %v10335_v39 }
 0x363   :  { %v4933_v29 = vpack.c.bf16 %v4549_v9, %v4548_v25  ;;  %v4547_v32 = vmax.f32 %v3451_v24, 0.0  ;;  %v3472_v22 = vadd.f32 %v10140_v27, %v7752_v11  ;;  %v4543_v25 = vmax.f32 %v3435_v13, 0.0 }
 0x364   :  { %v3463_v28 = vpop.f32.mrf.mxu0  ;;  %v4526_v13 = vmax.f32 %v3368_v63, 0.0 }
 0x365   :  { %v4932_v12 = vpack.c.bf16 %v4547_v32, %v4546_v38  ;;  %7229 = vmatprep.subr.bf16.mxu1 %v4933_v29  ;;  %v3464_v20 = vadd.f32 %v10140_v27, %v3463_v28  ;;  %v4552_v9 = vmax.f32 %v3472_v22, 0.0  ;;  %v4923_v29 = vpack.c.bf16 %v4529_v58, %v4528_v62 }
 0x366   :  { %v7753_v23 = vpop.f32.mrf.mxu0  ;;  %7230 = vmatpush3.bf16.msra.mxu1 %v4925_v15  ;;  %v4527_v32 = vmax.f32 %v3371_v2, 0.0  ;;  %v4541_v15 = vmax.f32 %v3427_v16, 0.0  ;;  %v4930_v28 = vpack.c.bf16 %v4543_v25, %v4542_v41  ;;  %v3408_v16 = vadd.f32 %v10140_v27, %v10328_v52 }
 0x367   :  { %v3475_v10 = vadd.f32 %v10140_v27, %v7753_v23  ;;  %7231 = vmatprep.subr.bf16.mxu1 %v4932_v12  ;;  %v4550_v47 = vmax.f32 %v3464_v20, 0.0  ;;  %v4540_v12 = vmax.f32 %v3424_v59, 0.0  ;;  %v4539_v20 = vmax.f32 %v3419_v0, 0.0 }
 0x368   :  { %v3466_v18 = vpop.f32.mrf.mxu0  ;;  %v4922_v23 = vpack.c.bf16 %v4527_v32, %v4526_v13  ;;  %v4536_v52 = vmax.f32 %v3408_v16, 0.0 }
 0x369   :  { %v4553_v24 = vmax.f32 %v3475_v10, 0.0  ;;  %v3467_v43 = vadd.f32 %v10140_v27, %v3466_v18  ;;  %v4929_v58 = vpack.c.bf16 %v4541_v15, %v4540_v12 }
 0x36a   :  { %v7756_v11 = vpop.f32.mrf.mxu0  ;;  %7232 = vmatpush3.bf16.msra.mxu1 %v4924_v53 }
 0x36b   :  { %v10390_v38 = vpack.c.bf16 %v4553_v24, %v4552_v9  ;;  %v4551_v60 = vmax.f32 %v3467_v43, 0.0  ;;  %7233 = vmatprep.subr.bf16.mxu1 %v4931_v56  ;;  %v3488_v6 = vadd.f32 %v10140_v27, %v7756_v11  ;;  %v4538_v56 = vmax.f32 %v3416_v42, 0.0 }
 0x36c   :  { %v3479_v35 = vpop.f32.mrf.mxu0  ;;  %v4537_v24 = vmax.f32 %v3411_v40, 0.0  ;;  %v3403_v43 = vadd.f32 %v10140_v27, %v10343_v34  ;;  %v3400_v11 = vadd.f32 %v10140_v27, %v10333_v46  ;;  %v10431_v46 = vld [vmem:[%s11027_s1 + $0xd0] sm:$0xff] }
 0x36d   :  { %v10394_v44 = vpack.c.bf16 %v4551_v60, %v4550_v47  ;;  %v3480_v61 = vadd.f32 %v10140_v27, %v3479_v35  ;;  %v4556_v10 = vmax.f32 %v3488_v6, 0.0  ;;  %v4928_v62 = vpack.c.bf16 %v4539_v20, %v4538_v56 }
 0x36e   :  { %v7757_v22 = vpop.f32.mrf.mxu0  ;;  %7234 = vmatpush3.bf16.msra.mxu1 %v4923_v29  ;;  %v4927_v47 = vpack.c.bf16 %v4537_v24, %v4536_v52  ;;  %v4535_v60 = vmax.f32 %v3403_v43, 0.0  ;;  %v4534_v32 = vmax.f32 %v3400_v11, 0.0 }
 0x36f   :  { %v3491_v7 = vadd.f32 %v10140_v27, %v7757_v22  ;;  %7235 = vmatprep.subr.bf16.mxu1 %v4930_v28  ;;  %v4554_v18 = vmax.f32 %v3480_v61, 0.0 }
 0x370   :  { %v3482_v21 = vpop.f32.mrf.mxu0  ;;  %v4926_v15 = vpack.c.bf16 %v4535_v60, %v4534_v32 }
 0x371   :  { %v4557_v2 = vmax.f32 %v3491_v7, 0.0  ;;  %v3483_v53 = vadd.f32 %v10140_v27, %v3482_v21 }
 0x372   :  { %v10406_v55 = vpop.f32.mrf.mxu0  ;;  %7236 = vmatpush3.bf16.msra.mxu1 %v4922_v23 }
 0x373   :  { %v10408_v25 = vpack.c.bf16 %v4557_v2, %v4556_v10  ;;  %v4555_v9 = vmax.f32 %v3483_v53, 0.0  ;;  %7237 = vmatprep.subr.bf16.mxu1 %v4929_v58 }
 0x374   :  { %v10410_v39 = vpop.f32.mrf.mxu0 }
 0x375   :  { %v10414_v63 = vpack.c.bf16 %v4555_v9, %v4554_v18 }
 0x376   :  { %v7761_v59 = vpop.f32.mrf.mxu0  ;;  %7238 = vmatpush3.bf16.msra.mxu1 %v10287_v33  ;;  %v10426_v33 = vld [vmem:[%s11027_s1 + $0x50] sm:$0xff] }
 0x377   :  { %7239 = vmatprep.subr.bf16.mxu1 %v4928_v62  ;;  %v3507_v32 = vadd.f32 %v10140_v27, %v7761_v59 }
 0x378   :  { %v10419_v41 = vpop.f32.mrf.mxu0 }
 0x379   :  { %v4561_v59 = vmax.f32 %v3507_v32, 0.0 }
 0x37a   :  { %v7764_v29 = vpop.f32.mrf.mxu0  ;;  %7240 = vmatpush3.bf16.msra.mxu1 %v10293_v51  ;;  %v6711_v51 = vcombine.low %v10319_v31, %v10324_v14 }
 0x37b   :  { %7241 = vmatprep.subr.bf16.mxu1 %v4927_v47  ;;  %v3520_v10 = vadd.f32 %v10140_v27, %v7764_v29 }
 0x37c   :  { %v3511_v34 = vpop.f32.mrf.mxu0 }
 0x37d   :  { %v4564_v11 = vmax.f32 %v3520_v10, 0.0  ;;  %v3512_v47 = vadd.f32 %v10140_v27, %v3511_v34  ;;  %v3504_v34 = vadd.f32 %v10140_v27, %v10406_v55 }
 0x37e   :  { %v7765_v35 = vpop.f32.mrf.mxu0  ;;  %7242 = vmatpush3.bf16.msra.mxu1 %v10263_v19  ;;  %v6714_v19 = vcombine.high %v10426_v33, %v10431_v46 }
 0x37f   :  { %7243 = vmatprep.subr.bf16.mxu1 %v4926_v15  ;;  %v3523_v58 = vadd.f32 %v10140_v27, %v7765_v35 }
 0x380   :  { %v3514_v0 = vpop.f32.mrf.mxu0 }
 0x381   :  { %v4565_v56 = vmax.f32 %v3523_v58, 0.0  ;;  %v3515_v18 = vadd.f32 %v10140_v27, %v3514_v0 }
 0x382   :  { %v10435_v28 = vpop.f32.mrf.mxu0  ;;  %7244 = vmatpush3.bf16.msra.mxu1 %v10267_v17 }
 0x383   :  { %v4563_v0 = vmax.f32 %v3515_v18, 0.0 }
 0x384   :  { %v10440_v6 = vpop.f32.mrf.mxu0 }
 0x385   :  { %5592 = vmatmul.mubr.bf16.vlgmr.msra.gmra.mxu1 %v6711_v51 }
 0x386   :  { %v10442_v13 = vpop.f32.mrf.mxu0  ;;  %5632 = vmatprep.mubr.bf16.mxu1 %v6714_v19  ;;  %v4941_v19 = vpack.c.bf16 %v4565_v56, %v4564_v11 }
 0x388   :  { %v10444_v12 = vpop.f32.mrf.mxu0 }
 0x38a   :  { %v7772_v22 = vpop.f32.mrf.mxu0 }
 0x38c   :  { %v10446_v42 = vpop.f32.mrf.mxu0 }
 0x38e   :  { %v7773_v61 = vpop.f32.mrf.mxu0 }
 0x390   :  { %v10448_v31 = vpop.f32.mrf.mxu0 }
 0x392   :  { %v7776_v14 = vpop.f32.mrf.mxu0 }
 0x393   :  { %v3568_v60 = vadd.f32 %v10140_v27, %v7776_v14  ;;  %v4562_v14 = vmax.f32 %v3512_v47, 0.0  ;;  %v4560_v47 = vmax.f32 %v3504_v34, 0.0  ;;  %v3544_v34 = vadd.f32 %v10140_v27, %v10446_v42 }
 0x394   :  { %v3559_v7 = vpop.f32.mrf.mxu0 }
 0x395   :  { %v4576_v10 = vmax.f32 %v3568_v60, 0.0  ;;  %v4940_v18 = vpack.c.bf16 %v4563_v0, %v4562_v14  ;;  %v3552_v60 = vadd.f32 %v10140_v27, %v7772_v22 }
 0x396   :  { %v7777_v17 = vpop.f32.mrf.mxu0 }
 0x397   :  { %v3571_v9 = vadd.f32 %v10140_v27, %v7777_v17 }
 0x398   :  { %v3562_v23 = vpop.f32.mrf.mxu0 }
 0x399   :  { %v3563_v58 = vadd.f32 %v10140_v27, %v3562_v23  ;;  %v3499_v23 = vadd.f32 %v10140_v27, %v10419_v41 }
 0x39a   :  { %v7780_v40 = vpop.f32.mrf.mxu0 }
 0x39b   :  { %v3584_v20 = vadd.f32 %v10140_v27, %v7780_v40  ;;  %v4577_v40 = vmax.f32 %v3571_v9, 0.0  ;;  %v3555_v9 = vadd.f32 %v10140_v27, %v7773_v61 }
 0x39c   :  { %v3575_v21 = vpop.f32.mrf.mxu0 }
 0x39d   :  { %v3576_v53 = vadd.f32 %v10140_v27, %v3575_v21  ;;  %v4580_v43 = vmax.f32 %v3584_v20, 0.0 }
 0x39e   :  { %v7781_v2 = vpop.f32.mrf.mxu0 }
 0x39f   :  { %v3587_v16 = vadd.f32 %v10140_v27, %v7781_v2  ;;  %v4578_v15 = vmax.f32 %v3576_v53, 0.0  ;;  %v3560_v53 = vadd.f32 %v10140_v27, %v3559_v7  ;;  %v3496_v7 = vadd.f32 %v10140_v27, %v10410_v39 }
 0x3a0   :  { %v3578_v24 = vpop.f32.mrf.mxu0 }
 0x3a1   :  { %v4581_v62 = vmax.f32 %v3587_v16, 0.0  ;;  %v3579_v52 = vadd.f32 %v10140_v27, %v3578_v24  ;;  %v4947_v24 = vpack.c.bf16 %v4577_v40, %v4576_v10  ;;  %v4574_v32 = vmax.f32 %v3560_v53, 0.0 }
 0x3a2   :  { %v7784_v29 = vpop.f32.mrf.mxu0  ;;  %v3547_v40 = vadd.f32 %v10140_v27, %v10448_v31  ;;  %v4558_v22 = vmax.f32 %v3496_v7, 0.0  ;;  %v3539_v31 = vadd.f32 %v10140_v27, %v10442_v13 }
 0x3a3   :  { %v4949_v35 = vpack.c.bf16 %v4581_v62, %v4580_v43  ;;  %v4579_v51 = vmax.f32 %v3579_v52, 0.0  ;;  %v3600_v20 = vadd.f32 %v10140_v27, %v7784_v29  ;;  %v4575_v43 = vmax.f32 %v3563_v58, 0.0 }
 0x3a4   :  { %v3591_v17 = vpop.f32.mrf.mxu0 }
 0x3a5   :  { %v4948_v21 = vpack.c.bf16 %v4579_v51, %v4578_v15  ;;  %7251 = vmatprep.subr.bf16.mxu1 %v4949_v35  ;;  %v3592_v16 = vadd.f32 %v10140_v27, %v3591_v17  ;;  %v4584_v62 = vmax.f32 %v3600_v20, 0.0  ;;  %v4939_v35 = vpack.c.bf16 %v4561_v59, %v4560_v47 }
 0x3a6   :  { %v7785_v2 = vpop.f32.mrf.mxu0  ;;  %7252 = vmatpush3.bf16.msra.mxu1 %v4941_v19  ;;  %v4559_v51 = vmax.f32 %v3499_v23, 0.0  ;;  %v4573_v19 = vmax.f32 %v3555_v9, 0.0  ;;  %v4946_v17 = vpack.c.bf16 %v4575_v43, %v4574_v32  ;;  %v3536_v9 = vadd.f32 %v10140_v27, %v10435_v28 }
 0x3a7   :  { %v3603_v56 = vadd.f32 %v10140_v27, %v7785_v2  ;;  %7253 = vmatprep.subr.bf16.mxu1 %v4948_v21  ;;  %v4582_v41 = vmax.f32 %v3592_v16, 0.0  ;;  %v4572_v21 = vmax.f32 %v3552_v60, 0.0  ;;  %v4571_v16 = vmax.f32 %v3547_v40, 0.0 }
 0x3a8   :  { %v3594_v55 = vpop.f32.mrf.mxu0  ;;  %v4938_v2 = vpack.c.bf16 %v4559_v51, %v4558_v22  ;;  %v4568_v28 = vmax.f32 %v3536_v9, 0.0 }
 0x3a9   :  { %v4585_v52 = vmax.f32 %v3603_v56, 0.0  ;;  %v3595_v11 = vadd.f32 %v10140_v27, %v3594_v55  ;;  %v4945_v59 = vpack.c.bf16 %v4573_v19, %v4572_v21 }
 0x3aa   :  { %v7788_v29 = vpop.f32.mrf.mxu0  ;;  %7254 = vmatpush3.bf16.msra.mxu1 %v4940_v18 }
 0x3ab   :  { %v10475_v15 = vpack.c.bf16 %v4585_v52, %v4584_v62  ;;  %v4583_v61 = vmax.f32 %v3595_v11, 0.0  ;;  %7255 = vmatprep.subr.bf16.mxu1 %v4947_v24  ;;  %v3616_v39 = vadd.f32 %v10140_v27, %v7788_v29  ;;  %v4570_v24 = vmax.f32 %v3544_v34, 0.0 }
 0x3ac   :  { %v3607_v0 = vpop.f32.mrf.mxu0  ;;  %v4569_v52 = vmax.f32 %v3539_v31, 0.0  ;;  %v3531_v11 = vadd.f32 %v10140_v27, %v10444_v12  ;;  %v3528_v29 = vadd.f32 %v10140_v27, %v10440_v6  ;;  %v10538_v31 = vld [vmem:[%s11026_s3] ss:$0 sm:$0xff] }
 0x3ad   :  { %v10479_v58 = vpack.c.bf16 %v4583_v61, %v4582_v41  ;;  %v3608_v14 = vadd.f32 %v10140_v27, %v3607_v0  ;;  %v4588_v56 = vmax.f32 %v3616_v39, 0.0  ;;  %v4944_v47 = vpack.c.bf16 %v4571_v16, %v4570_v24 }
 0x3ae   :  { %v7789_v20 = vpop.f32.mrf.mxu0  ;;  %7256 = vmatpush3.bf16.msra.mxu1 %v4939_v35  ;;  %v4943_v41 = vpack.c.bf16 %v4569_v52, %v4568_v28  ;;  %v4567_v61 = vmax.f32 %v3531_v11, 0.0  ;;  %v4566_v51 = vmax.f32 %v3528_v29, 0.0 }
 0x3af   :  { %v3619_v10 = vadd.f32 %v10140_v27, %v7789_v20  ;;  %7257 = vmatprep.subr.bf16.mxu1 %v4946_v17  ;;  %v4586_v55 = vmax.f32 %v3608_v14, 0.0 }
 0x3b0   :  { %v3610_v53 = vpop.f32.mrf.mxu0  ;;  %v4942_v19 = vpack.c.bf16 %v4567_v61, %v4566_v51 }
 0x3b1   :  { %v4589_v23 = vmax.f32 %v3619_v10, 0.0  ;;  %v3611_v18 = vadd.f32 %v10140_v27, %v3610_v53  ;;  %v10511_v27 = vld [vmem:[%s11027_s1 + $0x58] sm:$0xff] }
 0x3b2   :  { %v10491_v42 = vpop.f32.mrf.mxu0  ;;  %7258 = vmatpush3.bf16.msra.mxu1 %v4938_v2 }
 0x3b3   :  { %v10493_v43 = vpack.c.bf16 %v4589_v23, %v4588_v56  ;;  %v4587_v62 = vmax.f32 %v3611_v18, 0.0  ;;  %7259 = vmatprep.subr.bf16.mxu1 %v4945_v59 }
 0x3b4   :  { %v10495_v13 = vpop.f32.mrf.mxu0 }
 0x3b5   :  { %v10499_v7 = vpack.c.bf16 %v4587_v62, %v4586_v55 }
 0x3b6   :  { %v7793_v60 = vpop.f32.mrf.mxu0  ;;  %7260 = vmatpush3.bf16.msra.mxu1 %v10408_v25  ;;  %v10516_v25 = vld [vmem:[%s11027_s1 + $0xd8] sm:$0xff] }
 0x3b7   :  { %7261 = vmatprep.subr.bf16.mxu1 %v4944_v47  ;;  %v3635_v51 = vadd.f32 %v10538_v31, %v7793_v60 }
 0x3b8   :  { %v10504_v32 = vpop.f32.mrf.mxu0 }
 0x3b9   :  { %v4593_v60 = vmax.f32 %v3635_v51, 0.0 }
 0x3ba   :  { %v7796_v35 = vpop.f32.mrf.mxu0  ;;  %7262 = vmatpush3.bf16.msra.mxu1 %v10414_v63  ;;  %v6713_v63 = vcombine.low %v10426_v33, %v10431_v46 }
 0x3bb   :  { %7263 = vmatprep.subr.bf16.mxu1 %v4943_v41  ;;  %v3648_v56 = vadd.f32 %v10538_v31, %v7796_v35 }
 0x3bc   :  { %v3639_v12 = vpop.f32.mrf.mxu0 }
 0x3bd   :  { %v4596_v29 = vmax.f32 %v3648_v56, 0.0  ;;  %v3640_v41 = vadd.f32 %v10538_v31, %v3639_v12  ;;  %v3632_v12 = vadd.f32 %v10538_v31, %v10491_v42 }
 0x3be   :  { %v7797_v0 = vpop.f32.mrf.mxu0  ;;  %7264 = vmatpush3.bf16.msra.mxu1 %v10390_v38  ;;  %v6716_v38 = vcombine.high %v10511_v27, %v10516_v25 }
 0x3bf   :  { %7265 = vmatprep.subr.bf16.mxu1 %v4942_v19  ;;  %v3651_v59 = vadd.f32 %v10538_v31, %v7797_v0 }
 0x3c0   :  { %v3642_v6 = vpop.f32.mrf.mxu0 }
 0x3c1   :  { %v4597_v24 = vmax.f32 %v3651_v59, 0.0  ;;  %v3643_v55 = vadd.f32 %v10538_v31, %v3642_v6 }
 0x3c2   :  { %v10520_v40 = vpop.f32.mrf.mxu0  ;;  %7266 = vmatpush3.bf16.msra.mxu1 %v10394_v44 }
 0x3c3   :  { %v4595_v6 = vmax.f32 %v3643_v55, 0.0 }
 0x3c4   :  { %v10525_v17 = vpop.f32.mrf.mxu0 }
 0x3c5   :  { %5633 = vmatmul.mubr.bf16.vlgmr.msra.gmra.mxu1 %v6713_v63 }
 0x3c6   :  { %v10527_v39 = vpop.f32.mrf.mxu0  ;;  %5673 = vmatprep.mubr.bf16.mxu1 %v6716_v38  ;;  %v4957_v38 = vpack.c.bf16 %v4597_v24, %v4596_v29 }
 0x3c8   :  { %v10529_v22 = vpop.f32.mrf.mxu0 }
 0x3ca   :  { %v7804_v21 = vpop.f32.mrf.mxu0 }
 0x3cc   :  { %v10531_v20 = vpop.f32.mrf.mxu0 }
 0x3ce   :  { %v7805_v34 = vpop.f32.mrf.mxu0 }
 0x3d0   :  { %v10533_v33 = vpop.f32.mrf.mxu0 }
 0x3d2   :  { %v7808_v46 = vpop.f32.mrf.mxu0 }
 0x3d3   :  { %v3696_v61 = vadd.f32 %v10538_v31, %v7808_v46  ;;  %v4594_v46 = vmax.f32 %v3640_v41, 0.0  ;;  %v4592_v41 = vmax.f32 %v3632_v12, 0.0  ;;  %v3672_v12 = vadd.f32 %v10538_v31, %v10531_v20 }
 0x3d4   :  { %v3687_v14 = vpop.f32.mrf.mxu0 }
 0x3d5   :  { %v4608_v56 = vmax.f32 %v3696_v61, 0.0  ;;  %v4956_v55 = vpack.c.bf16 %v4595_v6, %v4594_v46  ;;  %v3680_v61 = vadd.f32 %v10538_v31, %v7804_v21 }
 0x3d6   :  { %v7809_v44 = vpop.f32.mrf.mxu0 }
 0x3d7   :  { %v3699_v62 = vadd.f32 %v10538_v31, %v7809_v44 }
 0x3d8   :  { %v3690_v10 = vpop.f32.mrf.mxu0 }
 0x3d9   :  { %v3691_v59 = vadd.f32 %v10538_v31, %v3690_v10  ;;  %v3627_v10 = vadd.f32 %v10538_v31, %v10504_v32 }
 0x3da   :  { %v7812_v2 = vpop.f32.mrf.mxu0 }
 0x3db   :  { %v3712_v16 = vadd.f32 %v10538_v31, %v7812_v2  ;;  %v4609_v2 = vmax.f32 %v3699_v62, 0.0  ;;  %v3683_v62 = vadd.f32 %v10538_v31, %v7805_v34 }
 0x3dc   :  { %v3703_v53 = vpop.f32.mrf.mxu0 }
 0x3dd   :  { %v3704_v18 = vadd.f32 %v10538_v31, %v3703_v53  ;;  %v4612_v11 = vmax.f32 %v3712_v16, 0.0 }
 0x3de   :  { %v7813_v23 = vpop.f32.mrf.mxu0 }
 0x3df   :  { %v3715_v9 = vadd.f32 %v10538_v31, %v7813_v23  ;;  %v4610_v19 = vmax.f32 %v3704_v18, 0.0  ;;  %v3688_v18 = vadd.f32 %v10538_v31, %v3687_v14  ;;  %v3624_v14 = vadd.f32 %v10538_v31, %v10495_v13 }
 0x3e0   :  { %v3706_v52 = vpop.f32.mrf.mxu0 }
 0x3e1   :  { %v4613_v47 = vmax.f32 %v3715_v9, 0.0  ;;  %v3707_v28 = vadd.f32 %v10538_v31, %v3706_v52  ;;  %v4963_v52 = vpack.c.bf16 %v4609_v2, %v4608_v56  ;;  %v4606_v51 = vmax.f32 %v3688_v18, 0.0 }
 0x3e2   :  { %v7816_v35 = vpop.f32.mrf.mxu0  ;;  %v3675_v2 = vadd.f32 %v10538_v31, %v10533_v33  ;;  %v4590_v21 = vmax.f32 %v3624_v14, 0.0  ;;  %v3667_v33 = vadd.f32 %v10538_v31, %v10527_v39 }
 0x3e3   :  { %v4965_v0 = vpack.c.bf16 %v4613_v47, %v4612_v11  ;;  %v4611_v63 = vmax.f32 %v3707_v28, 0.0  ;;  %v3728_v16 = vadd.f32 %v10538_v31, %v7816_v35  ;;  %v4607_v11 = vmax.f32 %v3691_v59, 0.0 }
 0x3e4   :  { %v3719_v44 = vpop.f32.mrf.mxu0 }
 0x3e5   :  { %v4964_v53 = vpack.c.bf16 %v4611_v63, %v4610_v19  ;;  %7273 = vmatprep.subr.bf16.mxu1 %v4965_v0  ;;  %v3720_v9 = vadd.f32 %v10538_v31, %v3719_v44  ;;  %v4616_v47 = vmax.f32 %v3728_v16, 0.0  ;;  %v4955_v0 = vpack.c.bf16 %v4593_v60, %v4592_v41 }
 0x3e6   :  { %v7817_v23 = vpop.f32.mrf.mxu0  ;;  %7274 = vmatpush3.bf16.msra.mxu1 %v4957_v38  ;;  %v4591_v63 = vmax.f32 %v3627_v10, 0.0  ;;  %v4605_v38 = vmax.f32 %v3683_v62, 0.0  ;;  %v4962_v44 = vpack.c.bf16 %v4607_v11, %v4606_v51  ;;  %v3664_v62 = vadd.f32 %v10538_v31, %v10520_v40 }
 0x3e7   :  { %v3731_v24 = vadd.f32 %v10538_v31, %v7817_v23  ;;  %7275 = vmatprep.subr.bf16.mxu1 %v4964_v53  ;;  %v4614_v32 = vmax.f32 %v3720_v9, 0.0  ;;  %v4604_v53 = vmax.f32 %v3680_v61, 0.0  ;;  %v4603_v9 = vmax.f32 %v3675_v2, 0.0 }
 0x3e8   :  { %v3722_v42 = vpop.f32.mrf.mxu0  ;;  %v4954_v23 = vpack.c.bf16 %v4591_v63, %v4590_v21  ;;  %v4600_v40 = vmax.f32 %v3664_v62, 0.0 }
 0x3e9   :  { %v4617_v28 = vmax.f32 %v3731_v24, 0.0  ;;  %v3723_v29 = vadd.f32 %v10538_v31, %v3722_v42  ;;  %v4961_v60 = vpack.c.bf16 %v4605_v38, %v4604_v53 }
 0x3ea   :  { %v7820_v35 = vpop.f32.mrf.mxu0  ;;  %7276 = vmatpush3.bf16.msra.mxu1 %v4956_v55 }
 0x3eb   :  { %v10565_v19 = vpack.c.bf16 %v4617_v28, %v4616_v47  ;;  %v4615_v34 = vmax.f32 %v3723_v29, 0.0  ;;  %7277 = vmatprep.subr.bf16.mxu1 %v4963_v52  ;;  %v3744_v13 = vadd.f32 %v10538_v31, %v7820_v35  ;;  %v4602_v52 = vmax.f32 %v3672_v12, 0.0 }
 0x3ec   :  { %v3735_v6 = vpop.f32.mrf.mxu0  ;;  %v4601_v28 = vmax.f32 %v3667_v33, 0.0  ;;  %v3659_v29 = vadd.f32 %v10538_v31, %v10529_v22  ;;  %v3656_v35 = vadd.f32 %v10538_v31, %v10525_v17  ;;  %v10606_v17 = vld [vmem:[%s11027_s1 + $0xe0] sm:$0xff] }
 0x3ed   :  { %v10569_v59 = vpack.c.bf16 %v4615_v34, %v4614_v32  ;;  %v3736_v46 = vadd.f32 %v10538_v31, %v3735_v6  ;;  %v4620_v24 = vmax.f32 %v3744_v13, 0.0  ;;  %v4960_v41 = vpack.c.bf16 %v4603_v9, %v4602_v52 }
 0x3ee   :  { %v7821_v16 = vpop.f32.mrf.mxu0  ;;  %7278 = vmatpush3.bf16.msra.mxu1 %v4955_v0  ;;  %v4959_v32 = vpack.c.bf16 %v4601_v28, %v4600_v40  ;;  %v4599_v34 = vmax.f32 %v3659_v29, 0.0  ;;  %v4598_v63 = vmax.f32 %v3656_v35, 0.0 }
 0x3ef   :  { %v3747_v56 = vadd.f32 %v10538_v31, %v7821_v16  ;;  %7279 = vmatprep.subr.bf16.mxu1 %v4962_v44  ;;  %v4618_v42 = vmax.f32 %v3736_v46, 0.0 }
 0x3f0   :  { %v3738_v18 = vpop.f32.mrf.mxu0  ;;  %v4958_v38 = vpack.c.bf16 %v4599_v34, %v4598_v63 }
 0x3f1   :  { %v4621_v10 = vmax.f32 %v3747_v56, 0.0  ;;  %v3739_v55 = vadd.f32 %v10538_v31, %v3738_v18 }
 0x3f2   :  { %v10581_v20 = vpop.f32.mrf.mxu0  ;;  %7280 = vmatpush3.bf16.msra.mxu1 %v4954_v23 }
 0x3f3   :  { %v10583_v11 = vpack.c.bf16 %v4621_v10, %v4620_v24  ;;  %v4619_v47 = vmax.f32 %v3739_v55, 0.0  ;;  %7281 = vmatprep.subr.bf16.mxu1 %v4961_v60 }
 0x3f4   :  { %v10585_v39 = vpop.f32.mrf.mxu0 }
 0x3f5   :  { %v10589_v14 = vpack.c.bf16 %v4619_v47, %v4618_v42 }
 0x3f6   :  { %v7825_v61 = vpop.f32.mrf.mxu0  ;;  %7282 = vmatpush3.bf16.msra.mxu1 %v10493_v43  ;;  %v10601_v43 = vld [vmem:[%s11027_s1 + $0x60] sm:$0xff] }
 0x3f7   :  { %7283 = vmatprep.subr.bf16.mxu1 %v4960_v41 }
 0x3f8   :  { %v10594_v51 = vpop.f32.mrf.mxu0 }
 0x3fa   :  { %v7828_v0 = vpop.f32.mrf.mxu0  ;;  %7284 = vmatpush3.bf16.msra.mxu1 %v10499_v7  ;;  %v6715_v7 = vcombine.low %v10511_v27, %v10516_v25 }
 0x3fb   :  { %7285 = vmatprep.subr.bf16.mxu1 %v4959_v32  ;;  %v3776_v24 = vadd.f32 %v10538_v31, %v7828_v0 }
 0x3fc   :  { %v3767_v22 = vpop.f32.mrf.mxu0 }
 0x3fd   :  { %v4628_v35 = vmax.f32 %v3776_v24, 0.0  ;;  %v3768_v32 = vadd.f32 %v10538_v31, %v3767_v22 }
 0x3fe   :  { %v7829_v6 = vpop.f32.mrf.mxu0  ;;  %7286 = vmatpush3.bf16.msra.mxu1 %v10475_v15  ;;  %v6718_v15 = vcombine.high %v10601_v43, %v10606_v17 }
 0x3ff   :  { %7287 = vmatprep.subr.bf16.mxu1 %v4958_v38  ;;  %v3779_v60 = vadd.f32 %v10538_v31, %v7829_v6  ;;  %v3763_v6 = vadd.f32 %v10538_v31, %v7825_v61  ;;  %v3755_v61 = vadd.f32 %v10538_v31, %v10594_v51 }
 0x400   :  { %v3770_v2 = vpop.f32.mrf.mxu0 }
 0x401   :  { %v4629_v52 = vmax.f32 %v3779_v60, 0.0  ;;  %v3771_v42 = vadd.f32 %v10538_v31, %v3770_v2  ;;  %v3760_v60 = vadd.f32 %v10538_v31, %v10581_v20 }
 0x402   :  { %v10610_v44 = vpop.f32.mrf.mxu0  ;;  %7288 = vmatpush3.bf16.msra.mxu1 %v10479_v58 }
 0x404   :  { %v10615_v13 = vpop.f32.mrf.mxu0 }
 0x405   :  { %5674 = vmatmul.mubr.bf16.vlgmr.msra.gmra.mxu1 %v6715_v7  ;;  %v4973_v7 = vpack.c.bf16 %v4629_v52, %v4628_v35  ;;  %v3752_v52 = vadd.f32 %v10538_v31, %v10585_v39 }
 0x406   :  { %v10617_v21 = vpop.f32.mrf.mxu0  ;;  %5714 = vmatprep.mubr.bf16.mxu1 %v6718_v15  ;;  %v4627_v15 = vmax.f32 %v3771_v42, 0.0 }
 0x407   :  { %v3795_v39 = vadd.f32 %v10538_v31, %v10617_v21 }
 0x408   :  { %v10619_v53 = vpop.f32.mrf.mxu0 }
 0x40a   :  { %v7836_v16 = vpop.f32.mrf.mxu0 }
 0x40b   :  { %v3808_v20 = vadd.f32 %v10538_v31, %v7836_v16 }
 0x40c   :  { %v3799_v12 = vpop.f32.mrf.mxu0 }
 0x40e   :  { %v7837_v46 = vpop.f32.mrf.mxu0 }
 0x410   :  { %v3802_v56 = vpop.f32.mrf.mxu0 }
 0x412   :  { %v7840_v27 = vpop.f32.mrf.mxu0 }
 0x413   :  { %v3824_v34 = vadd.f32 %v10538_v31, %v7840_v27 }
 0x414   :  { %v3815_v25 = vpop.f32.mrf.mxu0 }
 0x415   :  { %v4640_v22 = vmax.f32 %v3824_v34, 0.0  ;;  %v3816_v27 = vadd.f32 %v10538_v31, %v3815_v25  ;;  %v3792_v34 = vadd.f32 %v10538_v31, %v10610_v44  ;;  %v3960_v44 = vadd.f32 %v10538_v31, %v9601_v50 }
 0x416   :  { %v7841_v23 = vpop.f32.mrf.mxu0  ;;  %v3896_v50 = vadd.f32 %v10538_v31, %v9491_v37  ;;  %v3944_v37 = vadd.f32 %v10538_v31, %v9581_v5 }
 0x417   :  { %v3827_v28 = vadd.f32 %v10538_v31, %v7841_v23  ;;  %v4638_v42 = vmax.f32 %v3816_v27, 0.0 }
 0x418   :  { %v3818_v33 = vpop.f32.mrf.mxu0 }
 0x419   :  { %v4641_v2 = vmax.f32 %v3827_v28, 0.0 }
 0x41a   :  { %v7844_v58 = vpop.f32.mrf.mxu0 }
 0x41b   :  { %v3840_v9 = vadd.f32 %v10538_v31, %v7844_v58  ;;  %v3819_v58 = vadd.f32 %v10538_v31, %v3818_v33 }
 0x41c   :  { %v3831_v18 = vpop.f32.mrf.mxu0 }
 0x41d   :  { %v3832_v55 = vadd.f32 %v10538_v31, %v3831_v18  ;;  %v4644_v29 = vmax.f32 %v3840_v9, 0.0  ;;  %v4626_v18 = vmax.f32 %v3768_v32, 0.0  ;;  %v4625_v9 = vmax.f32 %v3763_v6, 0.0 }
 0x41e   :  { %v7845_v10 = vpop.f32.mrf.mxu0  ;;  %v4639_v33 = vmax.f32 %v3819_v58, 0.0  ;;  %v3784_v6 = vadd.f32 %v10538_v31, %v10615_v13  ;;  %v4674_v13 = vmax.f32 %v3960_v44, 0.0 }
 0x41f   :  { %v3843_v62 = vadd.f32 %v10538_v31, %v7845_v10  ;;  %v4642_v0 = vmax.f32 %v3832_v55, 0.0  ;;  %v4972_v24 = vpack.c.bf16 %v4627_v15, %v4626_v18  ;;  %v3811_v10 = vadd.f32 %v10538_v31, %v7837_v46 }
 0x420   :  { %v3834_v47 = vpop.f32.mrf.mxu0  ;;  %v4979_v55 = vpack.c.bf16 %v4641_v2, %v4640_v22  ;;  %v4978_v51 = vpack.c.bf16 %v4639_v33, %v4638_v42  ;;  %v4636_v46 = vmax.f32 %v3808_v20, 0.0  ;;  %v4630_v15 = vmax.f32 %v3784_v6, 0.0  ;;  %v11104_v42 = vld [vmem:[#allocation9_spill] sm:$0xff] }
 0x421   :  { %v4645_v41 = vmax.f32 %v3843_v62, 0.0  ;;  %v3835_v40 = vadd.f32 %v10538_v31, %v3834_v47  ;;  %v4624_v62 = vmax.f32 %v3760_v60, 0.0  ;;  %v4623_v47 = vmax.f32 %v3755_v61, 0.0 }
 0x422   :  { %v4637_v28 = vmax.f32 %v3811_v10, 0.0  ;;  %v4658_v60 = vmax.f32 %v3896_v50, 0.0  ;;  %v11102_v10 = vld [vmem:[#allocation6_spill] sm:$0xff]  ;;  %v11114_v50 = vld [vmem:[#allocation3_spill] sm:$0xff] }
 0x423   :  { %v4981_v63 = vpack.c.bf16 %v4645_v41, %v4644_v29  ;;  %v4643_v38 = vmax.f32 %v3835_v40, 0.0  ;;  %v4971_v25 = vpack.c.bf16 %v4625_v9, %v4624_v62  ;;  %v3803_v29 = vadd.f32 %v10538_v31, %v3802_v56 }
 0x424   :  { %v4622_v41 = vmax.f32 %v3752_v52, 0.0  ;;  %v3800_v40 = vadd.f32 %v10538_v31, %v3799_v12  ;;  %v4977_v32 = vpack.c.bf16 %v4637_v28, %v4636_v46  ;;  %v4633_v56 = vmax.f32 %v3795_v39, 0.0  ;;  %v11103_v52 = vld [vmem:[#allocation12_spill] sm:$0xff] }
 0x425   :  { %v4980_v23 = vpack.c.bf16 %v4643_v38, %v4642_v0  ;;  %7295 = vmatprep.subr.bf16.mxu1 %v4981_v63  ;;  %v4635_v16 = vmax.f32 %v3803_v29, 0.0  ;;  %v3787_v63 = vadd.f32 %v10538_v31, %v10619_v53  ;;  %v4632_v12 = vmax.f32 %v3792_v34, 0.0  ;;  %v11106_v29 = vld [vmem:[#allocation7_spill] sm:$0xff]  ;;  %v11108_v46 = vld [vmem:[#allocation4_spill] sm:$0xff] }
 0x426   :  { %7296 = vmatpush3.bf16.msra.mxu1 %v4973_v7  ;;  %v4970_v35 = vpack.c.bf16 %v4623_v47, %v4622_v41  ;;  %v4634_v0 = vmax.f32 %v3800_v40, 0.0  ;;  %v3963_v53 = vadd.f32 %v10538_v31, %v9612_v8  ;;  %v3899_v8 = vadd.f32 %v10538_v31, %v9513_v57 }
 0x427   :  { %7297 = vmatprep.subr.bf16.mxu1 %v4980_v23  ;;  %v4975_v21 = vpack.c.bf16 %v4633_v56, %v4632_v12  ;;  %v4631_v7 = vmax.f32 %v3787_v63, 0.0  ;;  %v3947_v57 = vadd.f32 %v10538_v31, %v9596_v26  ;;  %v3928_v9 = vadd.f32 %v10538_v31, %v9559_v54  ;;  %v11111_v12 = vld [vmem:[#allocation11_spill] sm:$0xff] }
 0x428   :  { %v4976_v38 = vpack.c.bf16 %v4635_v16, %v4634_v0  ;;  %v4675_v58 = vmax.f32 %v3963_v53, 0.0  ;;  %v4659_v18 = vmax.f32 %v3899_v8, 0.0  ;;  %v3851_v40 = vadd.f32 %v10538_v31, %v11108_v46  ;;  %v11109_v16 = vld [vmem:[#allocation35_spill] sm:$0xff]  ;;  %v11110_v0 = vld [vmem:[#allocation37_spill] sm:$0xff]  ;;  %v11113_v53 = vld [vmem:[#allocation38_spill] sm:$0xff] }
 0x429   :  { %v4974_v2 = vpack.c.bf16 %v4631_v7, %v4630_v15  ;;  %v4671_v27 = vmax.f32 %v3947_v57, 0.0  ;;  %v4096_v34 = vadd.f32 %v10538_v31, %v11109_v16  ;;  %v4099_v56 = vadd.f32 %v10538_v31, %v11110_v0  ;;  %v11112_v7 = vld [vmem:[#allocation36_spill] sm:$0xff]  ;;  %v11126_v46 = vld [vmem:[#allocation22_spill] sm:$0xff] }
 0x42a   :  { %7298 = vmatpush3.bf16.msra.mxu1 %v4972_v24  ;;  %v4996_v22 = vpack.c.bf16 %v4675_v58, %v4674_v13  ;;  %v11100_v24 = vld [vmem:[#allocation8_spill] sm:$0xff]  ;;  %v4088_v15 = vadd.f32 %v10538_v31, %v11112_v7 }
 0x42b   :  { %7299 = vmatprep.subr.bf16.mxu1 %v4979_v55  ;;  %v3867_v55 = vadd.f32 %v10538_v31, %v11102_v10  ;;  %v4709_v44 = vmax.f32 %v4099_v56, 0.0  ;;  %v10721_v13 = vld [vmem:[%s11027_s1 + $0x70] sm:$0xff]  ;;  %v11129_v56 = vld [vmem:[#allocation33_spill] sm:$0xff] }
 0x42c   :  { %v10726_v58 = vld [vmem:[%s11027_s1 + $0xf0] sm:$0xff] }
 0x42d   :  { %v4651_v20 = vmax.f32 %v3867_v55, 0.0 }
 0x42e   :  { %7300 = vmatpush3.bf16.msra.mxu1 %v4971_v25  ;;  %v11105_v25 = vld [vmem:[#allocation10_spill] sm:$0xff] }
 0x42f   :  { %7301 = vmatprep.subr.bf16.mxu1 %v4978_v51  ;;  %v3915_v47 = vadd.f32 %v10538_v31, %v11105_v25  ;;  %v11107_v51 = vld [vmem:[#allocation2_spill] sm:$0xff] }
 0x430   :  { %v3848_v41 = vadd.f32 %v10538_v31, %v11107_v51 }
 0x432   :  { %7302 = vmatpush3.bf16.msra.mxu1 %v4970_v35  ;;  %v4646_v63 = vmax.f32 %v3848_v41, 0.0 }
 0x433   :  { %7303 = vmatprep.subr.bf16.mxu1 %v4977_v32  ;;  %v4663_v32 = vmax.f32 %v3915_v47, 0.0  ;;  %v11124_v47 = vld [vmem:[#allocation27_spill] sm:$0xff] }
 0x436   :  { %7304 = vmatpush3.bf16.msra.mxu1 %v10583_v11  ;;  %v10662_v11 = vld [vmem:[%s11027_s1 + $0x68] sm:$0xff] }
 0x437   :  { %7305 = vmatprep.subr.bf16.mxu1 %v4976_v38  ;;  %v4647_v38 = vmax.f32 %v3851_v40, 0.0  ;;  %v11127_v40 = vld [vmem:[#allocation15_spill] sm:$0xff] }
 0x439   :  { %v4982_v8 = vpack.c.bf16 %v4647_v38, %v4646_v63 }
 0x43a   :  { %7306 = vmatpush3.bf16.msra.mxu1 %v10589_v14  ;;  %v10667_v14 = vld [vmem:[%s11027_s1 + $0xe8] sm:$0xff] }
 0x43b   :  { %7307 = vmatprep.subr.bf16.mxu1 %v4975_v21  ;;  %v6720_v23 = vcombine.high %v10662_v11, %v10667_v14  ;;  %v4708_v21 = vmax.f32 %v4096_v34, 0.0 }
 0x43e   :  { %7308 = vmatpush3.bf16.msra.mxu1 %v10565_v19  ;;  %v6717_v19 = vcombine.low %v10601_v43, %v10606_v17  ;;  %v4988_v43 = vpack.c.bf16 %v4659_v18, %v4658_v60  ;;  %v4670_v17 = vmax.f32 %v3944_v37, 0.0  ;;  %v11116_v60 = vld [vmem:[#allocation23_spill] sm:$0xff]  ;;  %v11117_v37 = vld [vmem:[#allocation30_spill] sm:$0xff] }
 0x43f   :  { %7309 = vmatprep.subr.bf16.mxu1 %v4974_v2  ;;  %v4091_v2 = vadd.f32 %v10538_v31, %v11113_v53  ;;  %v4027_v18 = vadd.f32 %v10538_v31, %v11116_v60  ;;  %v4080_v57 = vadd.f32 %v10538_v31, %v11117_v37  ;;  %v11133_v53 = vld [vmem:[#allocation13_spill] sm:$0xff] }
 0x440   :  { %v4994_v61 = vpack.c.bf16 %v4671_v27, %v4670_v17  ;;  %v6719_v27 = vcombine.low %v10662_v11, %v10667_v14  ;;  %v11122_v11 = vld [vmem:[#allocation18_spill] sm:$0xff] }
 0x441   :  { %v4707_v17 = vmax.f32 %v4091_v2, 0.0  ;;  %v4008_v14 = vadd.f32 %v10538_v31, %v11122_v11  ;;  %v3976_v2 = vadd.f32 %v10538_v31, %v11133_v53 }
 0x442   :  { %7310 = vmatpush3.bf16.msra.mxu1 %v10569_v59  ;;  %v3880_v59 = vadd.f32 %v10538_v31, %v9459_v4  ;;  %v11101_v4 = vld [vmem:[#allocation5_spill] sm:$0xff] }
 0x443   :  { %7317 = vmatprep.subr.bf16.mxu1 %v9630_v45  ;;  %v3883_v45 = vadd.f32 %v10538_v31, %v9479_v48  ;;  %v3864_v48 = vadd.f32 %v10538_v31, %v11101_v4 }
 0x444   :  { %v4654_v5 = vmax.f32 %v3880_v59, 0.0 }
 0x445   :  { %5715 = vmatmul.mubr.bf16.vlgmr.msra.gmra.mxu1 %v6717_v19  ;;  %v4655_v26 = vmax.f32 %v3883_v45, 0.0  ;;  %v4650_v54 = vmax.f32 %v3864_v48, 0.0  ;;  %v11115_v19 = vld [vmem:[#allocation21_spill] sm:$0xff]  ;;  %v4706_v45 = vmax.f32 %v4088_v15, 0.0  ;;  %v11120_v48 = vld [vmem:[#allocation34_spill] sm:$0xff] }
 0x446   :  { %7318 = vmatpush3.bf16.msra.mxu1 %v9542_v49  ;;  %5755 = vmatprep.mubr.bf16.mxu1 %v6720_v23  ;;  %v3931_v49 = vadd.f32 %v10538_v31, %v9574_v30  ;;  %v3912_v30 = vadd.f32 %v10538_v31, %v11104_v42  ;;  %v4024_v23 = vadd.f32 %v10538_v31, %v11115_v19 }
 0x447   :  { %7319 = vmatprep.subr.bf16.mxu1 %v4996_v22  ;;  %v4986_v33 = vpack.c.bf16 %v4655_v26, %v4654_v5  ;;  %v4984_v35 = vpack.c.bf16 %v4651_v20, %v4650_v54  ;;  %v11118_v22 = vld [vmem:[#allocation32_spill] sm:$0xff]  ;;  %v6722_v5 = vcombine.high %v10721_v13, %v10726_v58  ;;  %v4075_v10 = vadd.f32 %v10538_v31, %v11120_v48 }
 0x448   :  { %v4667_v62 = vmax.f32 %v3931_v49, 0.0  ;;  %v4662_v39 = vmax.f32 %v3912_v30, 0.0  ;;  %v4083_v59 = vadd.f32 %v10538_v31, %v11118_v22  ;;  %v4690_v26 = vmax.f32 %v4024_v23, 0.0  ;;  %v11119_v49 = vld [vmem:[#allocation31_spill] sm:$0xff]  ;;  %v11141_v48 = vld [vmem:[#allocation68_spill] sm:$0xff] }
 0x449   :  { %v5012_v55 = vpack.c.bf16 %v4707_v17, %v4706_v45  ;;  %v4703_v42 = vmax.f32 %v4075_v10, 0.0  ;;  %v4686_v30 = vmax.f32 %v4008_v14, 0.0  ;;  %v4219_v10 = vadd.f32 %v10538_v31, %v11141_v48  ;;  %v11143_v14 = vld [vmem:[#allocation50_spill] sm:$0xff]  ;;  %v11158_v48 = vld [vmem:[#allocation43_spill] sm:$0xff] }
 0x44a   :  { %7320 = vmatpush3.bf16.msra.mxu1 %v4988_v43  ;;  %v4990_v6 = vpack.c.bf16 %v4663_v32, %v4662_v39  ;;  %v5013_v43 = vpack.c.bf16 %v4709_v44, %v4708_v21  ;;  %v4705_v4 = vmax.f32 %v4083_v59, 0.0  ;;  %v11128_v39 = vld [vmem:[#allocation17_spill] sm:$0xff]  ;;  %v11131_v21 = vld [vmem:[#allocation26_spill] sm:$0xff]  ;;  %v11132_v44 = vld [vmem:[#allocation19_spill] sm:$0xff]  ;;  %v4678_v59 = vmax.f32 %v3976_v2, 0.0 }
 0x44b   :  { %7321 = vmatprep.subr.bf16.mxu1 %v9609_v1  ;;  %v4666_v1 = vmax.f32 %v3928_v9, 0.0  ;;  %v4691_v9 = vmax.f32 %v4027_v18, 0.0  ;;  %v3995_v32 = vadd.f32 %v10538_v31, %v11128_v39  ;;  %v4043_v7 = vadd.f32 %v10538_v31, %v11131_v21  ;;  %v11135_v18 = vld [vmem:[#allocation65_spill] sm:$0xff]  ;;  %v11152_v2 = vld [vmem:[#allocation48_spill] sm:$0xff] }
 0x44c   :  { %v4224_v37 = vadd.f32 %v10538_v31, %v11135_v18 }
 0x44d   :  { %v4992_v28 = vpack.c.bf16 %v4667_v62, %v4666_v1  ;;  %v11123_v1 = vld [vmem:[#allocation20_spill] sm:$0xff]  ;;  %v4683_v38 = vmax.f32 %v3995_v32, 0.0  ;;  %v4695_v60 = vmax.f32 %v4043_v7, 0.0  ;;  %v11148_v32 = vld [vmem:[#allocation46_spill] sm:$0xff] }
 0x44e   :  { %7322 = vmatpush3.bf16.msra.mxu1 %v11100_v24  ;;  %v4704_v24 = vmax.f32 %v4080_v57, 0.0  ;;  %v4011_v62 = vadd.f32 %v10538_v31, %v11123_v1  ;;  %v11136_v57 = vld [vmem:[#allocation67_spill] sm:$0xff]  ;;  %v4152_v1 = vadd.f32 %v10538_v31, %v11143_v14 }
 0x44f   :  { %7323 = vmatprep.subr.bf16.mxu1 %v4994_v61  ;;  %v4072_v61 = vadd.f32 %v10538_v31, %v11119_v49  ;;  %v4227_v22 = vadd.f32 %v10538_v31, %v11136_v57  ;;  %v4740_v49 = vmax.f32 %v4224_v37, 0.0  ;;  %v11160_v14 = vld [vmem:[#allocation55_spill] sm:$0xff] }
 0x450   :  { %v5011_v20 = vpack.c.bf16 %v4705_v4, %v4704_v24  ;;  %v4687_v25 = vmax.f32 %v4011_v62, 0.0  ;;  %v10787_v62 = vld [vmem:[%s11027_s1 + $0x78] sm:$0xff] }
 0x451   :  { %v4702_v54 = vmax.f32 %v4072_v61, 0.0  ;;  %v11140_v61 = vld [vmem:[#allocation66_spill] sm:$0xff]  ;;  %v4741_v4 = vmax.f32 %v4227_v22, 0.0 }
 0x452   :  { %7324 = vmatpush3.bf16.msra.mxu1 %v4986_v33  ;;  %v11121_v33 = vld [vmem:[#allocation25_spill] sm:$0xff]  ;;  %v5002_v16 = vpack.c.bf16 %v4687_v25, %v4686_v30  ;;  %v4216_v24 = vadd.f32 %v10538_v31, %v11140_v61 }
 0x453   :  { %7325 = vmatprep.subr.bf16.mxu1 %v11103_v52  ;;  %v5004_v52 = vpack.c.bf16 %v4691_v9, %v4690_v26  ;;  %v5010_v41 = vpack.c.bf16 %v4703_v42, %v4702_v54  ;;  %v11145_v30 = vld [vmem:[#allocation61_spill] sm:$0xff] }
 0x454   :  { %v4208_v25 = vadd.f32 %v10538_v31, %v11145_v30 }
 0x456   :  { %7326 = vmatpush3.bf16.msra.mxu1 %v11106_v29  ;;  %v11125_v29 = vld [vmem:[#allocation29_spill] sm:$0xff] }
 0x457   :  { %7327 = vmatprep.subr.bf16.mxu1 %v4992_v28  ;;  %v4056_v28 = vadd.f32 %v10538_v31, %v11124_v47  ;;  %v4059_v51 = vadd.f32 %v10538_v31, %v11125_v29  ;;  %v11146_v47 = vld [vmem:[#allocation63_spill] sm:$0xff]  ;;  %v4738_v29 = vmax.f32 %v4216_v24, 0.0  ;;  %v11157_v24 = vld [vmem:[#allocation41_spill] sm:$0xff] }
 0x459   :  { %v4698_v34 = vmax.f32 %v4056_v28, 0.0  ;;  %v4699_v0 = vmax.f32 %v4059_v51, 0.0  ;;  %v4211_v28 = vadd.f32 %v10538_v31, %v11146_v47  ;;  %v5029_v51 = vpack.c.bf16 %v4741_v4, %v4740_v49  ;;  %v11161_v47 = vld [vmem:[#allocation54_spill] sm:$0xff] }
 0x45a   :  { %7328 = vmatpush3.bf16.msra.mxu1 %v4984_v35  ;;  %v3992_v35 = vadd.f32 %v10538_v31, %v11127_v40  ;;  %v4120_v4 = vadd.f32 %v10538_v31, %v11157_v24 }
 0x45b   :  { %7329 = vmatprep.subr.bf16.mxu1 %v11111_v12  ;;  %v11130_v12 = vld [vmem:[#allocation24_spill] sm:$0xff]  ;;  %v5008_v15 = vpack.c.bf16 %v4699_v0, %v4698_v34  ;;  %v4722_v34 = vmax.f32 %v4152_v1, 0.0  ;;  %v4179_v1 = vadd.f32 %v10538_v31, %v11160_v14 }
 0x45c   :  { %v4682_v63 = vmax.f32 %v3992_v35, 0.0  ;;  %v11147_v35 = vld [vmem:[#allocation44_spill] sm:$0xff]  ;;  %v4714_v30 = vmax.f32 %v4120_v4, 0.0 }
 0x45d   :  { %v4144_v39 = vadd.f32 %v10538_v31, %v11147_v35  ;;  %v11163_v35 = vld [vmem:[#allocation47_spill] sm:$0xff] }
 0x45e   :  { %7330 = vmatpush3.bf16.msra.mxu1 %v11114_v50  ;;  %v11134_v50 = vld [vmem:[#allocation14_spill] sm:$0xff]  ;;  %v5000_v19 = vpack.c.bf16 %v4683_v38, %v4682_v63 }
 0x45f   :  { %7331 = vmatprep.subr.bf16.mxu1 %v4990_v6  ;;  %v4040_v6 = vadd.f32 %v10538_v31, %v11130_v12  ;;  %v11149_v63 = vld [vmem:[#allocation62_spill] sm:$0xff]  ;;  %v4736_v12 = vmax.f32 %v4208_v25, 0.0  ;;  %v4720_v7 = vmax.f32 %v4144_v39, 0.0  ;;  %v11164_v39 = vld [vmem:[#allocation39_spill] sm:$0xff] }
 0x460   :  { %v4200_v38 = vadd.f32 %v10538_v31, %v11149_v63 }
 0x461   :  { %v4694_v23 = vmax.f32 %v4040_v6, 0.0  ;;  %v4737_v6 = vmax.f32 %v4211_v28, 0.0  ;;  %v4168_v28 = vadd.f32 %v10538_v31, %v11161_v47 }
 0x462   :  { %7332 = vmatpush3.bf16.msra.mxu1 %v4982_v8  ;;  %v3979_v8 = vadd.f32 %v10538_v31, %v11134_v50  ;;  %v4139_v50 = vadd.f32 %v10538_v31, %v11152_v2  ;;  %v4734_v37 = vmax.f32 %v4200_v38, 0.0  ;;  %v7160_v2 = vpop.f32.mrf.mxu1 }
 0x463   :  { %7339 = vmatprep.subr.bf16.mxu1 %v5013_v43  ;;  %v11137_v43 = vld [vmem:[#allocation49_spill] sm:$0xff]  ;;  %v5006_v9 = vpack.c.bf16 %v4695_v60, %v4694_v23  ;;  %v11154_v60 = vld [vmem:[#allocation59_spill] sm:$0xff]  ;;  %v5027_v57 = vpack.c.bf16 %v4737_v6, %v4736_v12 }
 0x464   :  { %v4679_v45 = vmax.f32 %v3979_v8, 0.0  ;;  %v4160_v17 = vadd.f32 %v10538_v31, %v11137_v43  ;;  %v4195_v18 = vadd.f32 %v10538_v31, %v11154_v60  ;;  %v4719_v43 = vmax.f32 %v4139_v50, 0.0  ;;  %v7161_v50 = vpop.f32.mrf.mxu1 }
 0x465   :  { %5756 = vmatmul.mubr.bf16.vlgmr.msra.gmra.mxu1 %v6719_v27  ;;  %v11138_v27 = vld [vmem:[#allocation28_spill] sm:$0xff] }
 0x466   :  { %7340 = vmatpush3.bf16.msra.mxu1 %v11121_v33  ;;  %5796 = vmatprep.mubr.bf16.mxu1 %v6722_v5  ;;  %v11139_v5 = vld [vmem:[#allocation51_spill] sm:$0xff]  ;;  %v4998_v33 = vpack.c.bf16 %v4679_v45, %v4678_v59  ;;  %v4724_v11 = vmax.f32 %v4160_v17, 0.0  ;;  %v11155_v17 = vld [vmem:[#allocation58_spill] sm:$0xff] }
 0x467   :  { %7341 = vmatprep.subr.bf16.mxu1 %v5012_v55  ;;  %v4163_v26 = vadd.f32 %v10538_v31, %v11139_v5  ;;  %v11142_v55 = vld [vmem:[#allocation16_spill] sm:$0xff] }
 0x469   :  { %v4725_v54 = vmax.f32 %v4163_v26, 0.0  ;;  %v4733_v26 = vmax.f32 %v4195_v18, 0.0  ;;  %v8304_v18 = vld [vmem:[%s11028_s4] sm:$0xff]  }
 0x46a   :  { %7342 = vmatpush3.bf16.msra.mxu1 %v5004_v52  ;;  %v10792_v52 = vld [vmem:[%s11027_s1 + $0xf8] sm:$0xff] }
 0x46b   :  { %7343 = vmatprep.subr.bf16.mxu1 %v5011_v20  ;;  %v11144_v20 = vld [vmem:[#allocation52_spill] sm:$0xff]  ;;  %v6724_v40 = vcombine.high %v10787_v62, %v10792_v52  ;;  %v5021_v0 = vpack.c.bf16 %v4725_v54, %v4724_v11 }
 0x46c   :  { %v4155_v42 = vadd.f32 %v10538_v31, %v11144_v20 }
 0x46e   :  { %7344 = vmatpush3.bf16.msra.mxu1 %v11126_v46  ;;  %v6721_v46 = vcombine.low %v10721_v13, %v10726_v58  ;;  %v11150_v13 = vld [vmem:[#allocation64_spill] sm:$0xff] }
 0x46f   :  { %7345 = vmatprep.subr.bf16.mxu1 %v5010_v41  ;;  %v4739_v41 = vmax.f32 %v4219_v10, 0.0  ;;  %v4203_v58 = vadd.f32 %v10538_v31, %v11150_v13  ;;  %v4123_v10 = vadd.f32 %v10538_v31, %v11158_v48 }
 0x471   :  { %v5028_v21 = vpack.c.bf16 %v4739_v41, %v4738_v29  ;;  %v4735_v22 = vmax.f32 %v4203_v58, 0.0  ;;  %v4715_v25 = vmax.f32 %v4123_v10, 0.0  ;;  %v11162_v41 = vld [vmem:[#allocation56_spill] sm:$0xff]  ;;  %v11166_v58 = vld [vmem:[#allocation42_spill] sm:$0xff] }
 0x472   :  { %7346 = vmatpush3.bf16.msra.mxu1 %v5002_v16  ;;  %v4147_v16 = vadd.f32 %v10538_v31, %v11148_v32  ;;  %v4104_v32 = vadd.f32 %v10538_v31, %v11164_v39 }
 0x473   :  { %7347 = vmatprep.subr.bf16.mxu1 %v11129_v56  ;;  %v4723_v56 = vmax.f32 %v4155_v42, 0.0  ;;  %v5026_v61 = vpack.c.bf16 %v4735_v22, %v4734_v37  ;;  %v8307_v22 = vld [vmem:[%s11029_s6 + $0xac] ss:$12 sps:$4 sm:$0xff]  }
 0x474   :  { %v4721_v53 = vmax.f32 %v4147_v16, 0.0  ;;  %v11165_v16 = vld [vmem:[#allocation40_spill] sm:$0xff]  ;;  %v4710_v12 = vmax.f32 %v4104_v32, 0.0 }
 0x475   :  { %v5020_v8 = vpack.c.bf16 %v4723_v56, %v4722_v34  ;;  %v4107_v34 = vadd.f32 %v10538_v31, %v11165_v16  ;;  %v4726_v56 = vmax.f32 %v4168_v28, 0.0 }
 0x476   :  { %7348 = vmatpush3.bf16.msra.mxu1 %v11132_v44  ;;  %v5019_v45 = vpack.c.bf16 %v4721_v53, %v4720_v7  ;;  %v6723_v7 = vcombine.low %v10787_v62, %v10792_v52  ;;  %v8299_v62 = vld [vmem:[%s11028_s4 + $0x28] sm:$0xff]   ;;  %v8300_v52 = vld [vmem:[%s11028_s4 + $0x20] sm:$0xff]   ;;  %v8301_v53 = vld [vmem:[%s11028_s4 + $0x18] sm:$0xff]  }
 0x477   :  { %7349 = vmatprep.subr.bf16.mxu1 %v5008_v15  ;;  %v11151_v15 = vld [vmem:[#allocation45_spill] sm:$0xff]  ;;  %v4711_v6 = vmax.f32 %v4107_v34, 0.0 }
 0x478   :  { %v4136_v44 = vadd.f32 %v10538_v31, %v11151_v15  ;;  %v8357_v15 = vmov 0.0  }
 0x47a   :  { %7350 = vmatpush3.bf16.msra.mxu1 %v5000_v19  ;;  %v11153_v19 = vld [vmem:[#allocation57_spill] sm:$0xff]  ;;  %v4718_v59 = vmax.f32 %v4136_v44, 0.0  ;;  %v8298_v44 = vld [vmem:[%s11028_s4 + $0x30] sm:$0xff]  }
 0x47b   :  { %7351 = vmatprep.subr.bf16.mxu1 %v11138_v27  ;;  %v4192_v23 = vadd.f32 %v10538_v31, %v11153_v19  ;;  %v4184_v27 = vadd.f32 %v10538_v31, %v11155_v17  ;;  %v7179_v19 = vpop.f32.mrf.mxu1 }
 0x47d   :  { %v4732_v5 = vmax.f32 %v4192_v23, 0.0  ;;  %v4730_v54 = vmax.f32 %v4184_v27, 0.0  ;;  %v8303_v23 = vld [vmem:[%s11028_s4 + $0x8] sm:$0xff]   ;;  %v7180_v60 = vpop.f32.mrf.mxu1 }
 0x47e   :  { %7352 = vmatpush3.bf16.msra.mxu1 %v11142_v55  ;;  %v5018_v55 = vpack.c.bf16 %v4719_v43, %v4718_v59 }
 0x47f   :  { %7353 = vmatprep.subr.bf16.mxu1 %v5006_v9  ;;  %v11156_v9 = vld [vmem:[#allocation60_spill] sm:$0xff]  ;;  %v5025_v20 = vpack.c.bf16 %v4733_v26, %v4732_v5  ;;  %v7182_v37 = vpop.f32.mrf.mxu1 }
 0x480   :  { %v4187_v49 = vadd.f32 %v10538_v31, %v11156_v9 }
 0x482   :  { %7354 = vmatpush3.bf16.msra.mxu1 %v4998_v33  ;;  %v11159_v33 = vld [vmem:[#allocation53_spill] sm:$0xff]  ;;  %v4731_v42 = vmax.f32 %v4187_v49, 0.0 }
 0x483   :  { %7361 = vmatprep.subr.bf16.mxu1 %v5029_v51  ;;  %v4176_v11 = vadd.f32 %v10538_v31, %v11159_v33  ;;  %v4729_v51 = vmax.f32 %v4179_v1, 0.0 }
 0x485   :  { %5797 = vmatmul.mubr.bf16.vlgmr.msra.gmra.mxu1 %v6721_v46  ;;  %v4728_v29 = vmax.f32 %v4176_v11, 0.0  ;;  %v4171_v46 = vadd.f32 %v10538_v31, %v11162_v41  ;;  %v8297_v31 = vld [vmem:[%s11028_s4 + $0x38] sm:$0xff]  }
 0x486   :  { %7362 = vmatpush3.bf16.msra.mxu1 %v5021_v0  ;;  %5837 = vmatprep.mubr.bf16.mxu1 %v6724_v40  ;;  %v5024_v40 = vpack.c.bf16 %v4731_v42, %v4730_v54  ;;  %v5016_v0 = vpack.c.bf16 %v4715_v25, %v4714_v30 }
 0x487   :  { %7363 = vmatprep.subr.bf16.mxu1 %v5028_v21  ;;  %v5023_v63 = vpack.c.bf16 %v4729_v51, %v4728_v29  ;;  %v4727_v38 = vmax.f32 %v4171_v46, 0.0  ;;  %v5014_v21 = vpack.c.bf16 %v4711_v6, %v4710_v12  ;;  %v7162_v51 = vadd.f32 %v7161_v50, %v7160_v2 }
 0x489   :  { %v5022_v13 = vpack.c.bf16 %v4727_v38, %v4726_v56 }
 0x48a   :  { %7364 = vmatpush3.bf16.msra.mxu1 %v5020_v8  ;;  %v8302_v8 = vld [vmem:[%s11028_s4 + $0x10] sm:$0xff]  }
 0x48b   :  { %7365 = vmatprep.subr.bf16.mxu1 %v5027_v57  ;;  %v7183_v57 = vpop.f32.mrf.mxu1 }
 0x48c   :  { %v7184_v39 = vadd.f32 %v7183_v57, %v7182_v37 }
 0x48d   :  { %v7201_v59 = vpop.f32.mrf.mxu1 }
 0x48e   :  { %7366 = vmatpush3.bf16.msra.mxu1 %v5019_v45 }
 0x48f   :  { %7367 = vmatprep.subr.bf16.mxu1 %v5026_v61  ;;  %v7202_v45 = vpop.f32.mrf.mxu1 }
 0x490   :  { %v7203_v32 = vadd.f32 %v7202_v45, %v7201_v59 }
 0x491   :  { %v7204_v43 = vpop.f32.mrf.mxu1 }
 0x492   :  { %7368 = vmatpush3.bf16.msra.mxu1 %v5018_v55 }
 0x493   :  { %7369 = vmatprep.subr.bf16.mxu1 %v5025_v20  ;;  %v7205_v17 = vpop.f32.mrf.mxu1 }
 0x494   :  { %v7206_v16 = vadd.f32 %v7205_v17, %v7204_v43 }
 0x495   :  { %v7223_v27 = vpop.f32.mrf.mxu1 }
 0x496   :  { %7370 = vmatpush3.bf16.msra.mxu1 %v11163_v35  ;;  %v7181_v35 = vadd.f32 %v7180_v60, %v7179_v19 }
 0x497   :  { %7371 = vmatprep.subr.bf16.mxu1 %v5024_v40  ;;  %v7224_v5 = vpop.f32.mrf.mxu1  ;;  %v5433_v40 = vadd.f32 %v7162_v51, %v10209_v3  ;;  %v8325_v51 = vld [vmem:[%s11029_s6 + $0x1c] ss:$12 sps:$4 sm:$0xff]  }
 0x499   :  { %v7226_v26 = vpop.f32.mrf.mxu1  ;;  %v5474_v56 = vadd.f32 %v7184_v39, %v5433_v40  ;;  %v8326_v40 = vld [vmem:[%s11029_s6] ss:$12 sps:$4 sm:$0xff]  }
 0x49a   :  { %7372 = vmatpush3.bf16.msra.mxu1 %v5016_v0  ;;  %v5471_v0 = vadd.f32 %v7181_v35, %v10348_v36  ;;  %v8359_v35 = vmov 0  }
 0x49b   :  { %7373 = vmatprep.subr.bf16.mxu1 %v5023_v63  ;;  %v7227_v9 = vpop.f32.mrf.mxu1  ;;  %v7225_v63 = vadd.f32 %v7224_v5, %v7223_v27  ;;  %v5515_v6 = vadd.f32 %v7206_v16, %v5474_v56 }
 0x49c   :  { %v7228_v38 = vadd.f32 %v7227_v9, %v7226_v26  ;;  %v5512_v12 = vadd.f32 %v7203_v32, %v5471_v0  ;;  %v6725_v32 = vld [vmem:[%s11030_s5] ss:$0 sm:$0xff] }
 0x49d   :  { %v7245_v49 = vpop.f32.mrf.mxu1 }
 0x49e   :  { %7374 = vmatpush3.bf16.msra.mxu1 %v11166_v58 }
 0x49f   :  { %7375 = vmatprep.subr.bf16.mxu1 %v5022_v13  ;;  %v7246_v61 = vpop.f32.mrf.mxu1 }
 0x4a0   :  { %v7247_v13 = vadd.f32 %v7246_v61, %v7245_v49 }
 0x4a1   :  { %v7248_v24 = vpop.f32.mrf.mxu1 }
 0x4a2   :  { %7376 = vmatpush3.bf16.msra.mxu1 %v5014_v21 }
 0x4a3   :  { %7942 = vmatprep.subr.bf16.mxu1 %v8357_v15  ;;  %v7249_v4 = vpop.f32.mrf.mxu1 }
 0x4a4   :  { %v7250_v58 = vadd.f32 %v7249_v4, %v7248_v24 }
 0x4a5   :  { %5838 = vmatmul.mubr.bf16.vlgmr.msra.gmra.mxu1 %v6723_v7  ;;  %v7267_v48 = vpop.f32.mrf.mxu1  ;;  %v5553_v7 = vadd.f32 %v7225_v63, %v5512_v12 }
 0x4a6   :  { %7943 = vmatpush3.bf16.msra.mxu1 %v8297_v31  ;;  %7958 = vmatprep.mubr.msk.bf16.mxu1 %vm8358_vm0, %v8357_v15  ;;  %v5556_v31 = vadd.f32 %v7228_v38, %v5515_v6  ;;  %v8329_v38 = vld [vmem:[%s11029_s6 + $0xb0] ss:$12 sps:$4 sm:$0xff]   ;;  %v8330_v6 = vld [vmem:[%s11029_s6 + $0x98] ss:$12 sps:$4 sm:$0xff]  }
 0x4a7   :  { %7944 = vmatprep.subr.bf16.mxu1 %v8357_v15  ;;  %v7268_v10 = vpop.f32.mrf.mxu1  ;;  %v5594_v3 = vadd.f32 %v7247_v13, %v5553_v7  ;;  %v8331_v13 = vld [vmem:[%s11029_s6 + $0x80] ss:$12 sps:$4 sm:$0xff]   ;;  %v8334_v7 = vld [vmem:[%s11029_s6 + $0x38] ss:$12 sps:$4 sm:$0xff]  }
 0x4a9   :  { %v7270_v55 = vpop.f32.mrf.mxu1 }
 0x4aa   :  { %7945 = vmatpush3.bf16.msra.mxu1 %v8298_v44  ;;  %v7269_v44 = vadd.f32 %v7268_v10, %v7267_v48 }
 0x4ab   :  { %7946 = vmatprep.subr.bf16.mxu1 %v8357_v15  ;;  %v7271_v33 = vpop.f32.mrf.mxu1 }
 0x4ae   :  { %7947 = vmatpush3.bf16.msra.mxu1 %v8299_v62  ;;  %v7272_v62 = vadd.f32 %v7271_v33, %v7270_v55  ;;  %v8305_v33 = vld [vmem:[%s11029_s6 + $0xa8] ss:$12 sps:$4 sm:$0xff]  }
 0x4af   :  { %7948 = vmatprep.subr.bf16.mxu1 %v8357_v15 }
 0x4b2   :  { %7949 = vmatpush3.bf16.msra.mxu1 %v8300_v52  ;;  %v5597_v52 = vadd.f32 %v7250_v58, %v5556_v31  ;;  %v8332_v58 = vld [vmem:[%s11029_s6 + $0x68] ss:$12 sps:$4 sm:$0xff]   ;;  %v8335_v31 = vld [vmem:[%s11029_s6 + $0x20] ss:$12 sps:$4 sm:$0xff]  }
 0x4b3   :  { %7950 = vmatprep.subr.bf16.mxu1 %v8357_v15 }
 0x4b4   :  { %v5638_v19 = vadd.f32 %v7272_v62, %v5597_v52 }
 0x4b6   :  { %7951 = vmatpush3.bf16.msra.mxu1 %v8301_v53 }
 0x4b7   :  { %7952 = vmatprep.subr.bf16.mxu1 %v8357_v15 }
 0x4ba   :  { %7953 = vmatpush3.bf16.msra.mxu1 %v8302_v8  ;;  %v5635_v8 = vadd.f32 %v7269_v44, %v5594_v3  ;;  %v8336_v44 = vld [vmem:[%s11029_s6 + $0x8] ss:$12 sps:$4 sm:$0xff]  }
 0x4bb   :  { %7954 = vmatprep.subr.bf16.mxu1 %v8357_v15 }
 0x4be   :  { %7955 = vmatpush3.bf16.msra.mxu1 %v8303_v23 }
 0x4bf   :  { %7956 = vmatprep.subr.bf16.mxu1 %v8357_v15 }
 0x4c2   :  { %7957 = vmatpush3.bf16.msra.mxu1 %v8304_v18 }
 0x4c3   :  { %6120 = vmatprep.subr.bf16.mxu1 %v8307_v22 }
 0x4c5   :  { %v7289_v11 = vpop.f32.mrf.mxu1 }
 0x4c7   :  { %v7290_v14 = vpop.f32.mrf.mxu1 }
 0x4c8   :  { %v7291_v53 = vadd.f32 %v7290_v14, %v7289_v11  ;;  %v8310_v14 = vld [vmem:[%s11029_s6 + $0x94] ss:$12 sps:$4 sm:$0xff]  }
 0x4c9   :  { %v7292_v1 = vpop.f32.mrf.mxu1 }
 0x4ca   :  { %v5676_v18 = vadd.f32 %v7291_v53, %v5635_v8 }
 0x4cb   :  { %v7293_v54 = vpop.f32.mrf.mxu1 }
 0x4cc   :  { %v7294_v2 = vadd.f32 %v7293_v54, %v7292_v1  ;;  %v8308_v1 = vld [vmem:[%s11029_s6 + $0x90] ss:$12 sps:$4 sm:$0xff]  }
 0x4cd   :  { %v8313_v54 = vld [vmem:[%s11029_s6 + $0x7c] ss:$12 sps:$4 sm:$0xff]  }
 0x4ce   :  { %v5679_v37 = vadd.f32 %v7294_v2, %v5638_v19 }
 0x505   :  { %v7311_v20 = vpop.f32.mrf.mxu1 }
 0x507   :  { %v7312_v42 = vpop.f32.mrf.mxu1 }
 0x508   :  { %v7313_v36 = vadd.f32 %v7312_v42, %v7311_v20  ;;  %v8311_v20 = vld [vmem:[%s11029_s6 + $0x78] ss:$12 sps:$4 sm:$0xff]  }
 0x509   :  { %v7314_v30 = vpop.f32.mrf.mxu1  ;;  %v8316_v42 = vld [vmem:[%s11029_s6 + $0x64] ss:$12 sps:$4 sm:$0xff]  }
 0x50a   :  { %v5717_v45 = vadd.f32 %v7313_v36, %v5676_v18 }
 0x50b   :  { %v7315_v25 = vpop.f32.mrf.mxu1 }
 0x50c   :  { %v7316_v23 = vadd.f32 %v7315_v25, %v7314_v30  ;;  %v8314_v30 = vld [vmem:[%s11029_s6 + $0x60] ss:$12 sps:$4 sm:$0xff]  }
 0x50d   :  { %v8319_v25 = vld [vmem:[%s11029_s6 + $0x4c] ss:$12 sps:$4 sm:$0xff]  }
 0x50e   :  { %v5720_v43 = vadd.f32 %v7316_v23, %v5679_v37 }
 0x525   :  { %v7333_v47 = vpop.f32.mrf.mxu1 }
 0x527   :  { %v7334_v28 = vpop.f32.mrf.mxu1 }
 0x528   :  { %v7335_v57 = vadd.f32 %v7334_v28, %v7333_v47  ;;  %v8317_v47 = vld [vmem:[%s11029_s6 + $0x48] ss:$12 sps:$4 sm:$0xff]  }
 0x529   :  { %v7336_v29 = vpop.f32.mrf.mxu1  ;;  %v8322_v28 = vld [vmem:[%s11029_s6 + $0x34] ss:$12 sps:$4 sm:$0xff]  }
 0x52a   :  { %v5758_v26 = vadd.f32 %v7335_v57, %v5717_v45 }
 0x52b   :  { %v7337_v41 = vpop.f32.mrf.mxu1 }
 0x52c   :  { %v7338_v22 = vadd.f32 %v7337_v41, %v7336_v29  ;;  %v8320_v29 = vld [vmem:[%s11029_s6 + $0x30] ss:$12 sps:$4 sm:$0xff]   ;;  %v8323_v41 = vld [vmem:[%s11029_s6 + $0x18] ss:$12 sps:$4 sm:$0xff]  }
 0x52e   :  { %v5761_v9 = vadd.f32 %v7338_v22, %v5720_v43 }
 0x545   :  { %v7355_v46 = vpop.f32.mrf.mxu1 }
 0x547   :  { %v7356_v34 = vpop.f32.mrf.mxu1 }
 0x548   :  { %v7357_v17 = vadd.f32 %v7356_v34, %v7355_v46  ;;  %v8328_v46 = vld [vmem:[%s11029_s6 + $0x4] ss:$12 sps:$4 sm:$0xff]  }
 0x549   :  { %v7358_v21 = vpop.f32.mrf.mxu1 }
 0x54a   :  { %v5799_v24 = vadd.f32 %v7357_v17, %v5758_v26 }
 0x54b   :  { %v7359_v50 = vpop.f32.mrf.mxu1 }
 0x54c   :  { %v7360_v27 = vadd.f32 %v7359_v50, %v7358_v21  ;;  %v8333_v21 = vld [vmem:[%s11029_s6 + $0x50] ss:$12 sps:$4 sm:$0xff]  }
 0x54e   :  { %v5802_v4 = vadd.f32 %v7360_v27, %v5761_v9 }
 0x565   :  { %v7377_v60 = vpop.f32.mrf.mxu1 }
 0x567   :  { %v7378_v59 = vpop.f32.mrf.mxu1 }
 0x568   :  { %v7379_v49 = vadd.f32 %v7378_v59, %v7377_v60 }
 0x569   :  { %v7380_v5 = vpop.f32.mrf.mxu1 }
 0x56a   :  { %v5840_v10 = vadd.f32 %v7379_v49, %v5799_v24 }
 0x56b   :  { %v7381_v61 = vpop.f32.mrf.mxu1 }
 0x56c   :  { %v7382_v48 = vadd.f32 %v7381_v61, %v7380_v5 }
 0x56e   :  { %v5843_v55 = vadd.f32 %v7382_v48, %v5802_v4 }
 0x570   :  { %v5846_v11 = vpack.c.bf16 %v5843_v55, %v5840_v10 }
 0x572   :  { %7959 = vmatmul.mubr.bf16.vlgmr.msra.gmra.mxu1 %v5846_v11 }
 0x573   :  { %6121 = vmatpush1.bf16.msra.mxu1 %v8305_v33  ;;  %6152 = vmatprep.mubr.bf16.mxu1 %v8359_v35 }
 0x574   :  { %6122 = vmatprep.subr.bf16.mxu1 %v8310_v14 }
 0x577   :  { %6123 = vmatpush1.bf16.msra.mxu1 %v8308_v1  ;;  %v8337_v1 = vld [vmem:[%s11031_s7 + $0x38] sm:$0xff]  }
 0x578   :  { %6124 = vmatprep.subr.bf16.mxu1 %v8313_v54 }
 0x57b   :  { %6125 = vmatpush1.bf16.msra.mxu1 %v8311_v20  ;;  %v8338_v20 = vld [vmem:[%s11031_s7 + $0x30] sm:$0xff]  }
 0x57c   :  { %6126 = vmatprep.subr.bf16.mxu1 %v8316_v42  ;;  %v8339_v42 = vld [vmem:[%s11031_s7 + $0x28] sm:$0xff]  }
 0x57f   :  { %6127 = vmatpush1.bf16.msra.mxu1 %v8314_v30  ;;  %v8340_v30 = vld [vmem:[%s11031_s7 + $0x20] sm:$0xff]  }
 0x580   :  { %6128 = vmatprep.subr.bf16.mxu1 %v8319_v25  ;;  %v8341_v25 = vld [vmem:[%s11031_s7 + $0x18] sm:$0xff]  }
 0x583   :  { %6129 = vmatpush1.bf16.msra.mxu1 %v8317_v47  ;;  %v8342_v47 = vld [vmem:[%s11031_s7 + $0x10] sm:$0xff]  }
 0x584   :  { %6130 = vmatprep.subr.bf16.mxu1 %v8322_v28  ;;  %v8343_v28 = vld [vmem:[%s11031_s7 + $0x8] sm:$0xff]  }
 0x587   :  { %6131 = vmatpush1.bf16.msra.mxu1 %v8320_v29  ;;  %v8344_v29 = vld [vmem:[%s11031_s7] sm:$0xff]  }
 0x588   :  { %6132 = vmatprep.subr.bf16.mxu1 %v8325_v51 }
 0x58b   :  { %6133 = vmatpush1.bf16.msra.mxu1 %v8323_v41 }
 0x58c   :  { %6134 = vmatprep.subr.bf16.mxu1 %v8328_v46 }
 0x58f   :  { %6135 = vmatpush1.bf16.msra.mxu1 %v8326_v40 }
 0x590   :  { %7962 = vmatprep.subr.bf16.mxu1 %v8357_v15 }
 0x632   :  { %v5952_v39 = vpop.f32.mrf.mxu1 }
 0x633   :  { %v10932_v0 = vadd.f32 %v6725_v32, %v5952_v39 }
 0x634   :  { %v7960_v16 = vpop.f32.mrf.mxu1 }
 0x636   :  { %v5955_v34 = vpop.f32.mrf.mxu1 }
 0x637   :  { %v10934_v56 = vadd.f32 %v6725_v32, %v5955_v34 }
 0x638   :  { %v7961_v63 = vpop.f32.mrf.mxu1 }
 0x639   :  { %v5959_v12 = vpack.c.bf16 %v10934_v56, %v10932_v0 }
 0x63b   :  { %6153 = vmatmul.mubr.bf16.vlgmr.msra.gmra.mxu1 %v5959_v12 }
 0x63c   :  { %7963 = vmatpush3.bf16.msra.mxu1 %v8329_v38  ;;  %7978 = vmatprep.mubr.msk.bf16.mxu1 %vm8358_vm0, %v8357_v15 }
 0x63d   :  { %7964 = vmatprep.subr.bf16.mxu1 %v8357_v15 }
 0x640   :  { %7965 = vmatpush3.bf16.msra.mxu1 %v8330_v6 }
 0x641   :  { %7966 = vmatprep.subr.bf16.mxu1 %v8357_v15 }
 0x644   :  { %7967 = vmatpush3.bf16.msra.mxu1 %v8331_v13 }
 0x645   :  { %7968 = vmatprep.subr.bf16.mxu1 %v8357_v15 }
 0x648   :  { %7969 = vmatpush3.bf16.msra.mxu1 %v8332_v58 }
 0x649   :  { %7970 = vmatprep.subr.bf16.mxu1 %v8357_v15 }
 0x64c   :  { %7971 = vmatpush3.bf16.msra.mxu1 %v8333_v21 }
 0x64d   :  { %7972 = vmatprep.subr.bf16.mxu1 %v8357_v15 }
 0x650   :  { %7973 = vmatpush3.bf16.msra.mxu1 %v8334_v7 }
 0x651   :  { %7974 = vmatprep.subr.bf16.mxu1 %v8357_v15 }
 0x654   :  { %7975 = vmatpush3.bf16.msra.mxu1 %v8335_v31 }
 0x655   :  { %7976 = vmatprep.subr.bf16.mxu1 %v8357_v15 }
 0x658   :  { %7977 = vmatpush3.bf16.msra.mxu1 %v8336_v44 }
 0x659   :  { %7982 = vmatprep.subr.bf16.mxu1 %v8357_v15 }
 0x65b   :  { %7979 = vmatmul.mubr.bf16.vlgmr.msra.gmra.mxu1 %v5959_v12 }
 0x65c   :  { %7984 = vmatprep.mubr.msk.bf16.mxu1 %vm8358_vm0, %v8357_v15 }
 0x6fb   :  { %v6154_v62 = vpop.f32.mrf.mxu1 }
 0x6fd   :  { %v6156_v3 = vpop.f32.mrf.mxu1 }
 0x6ff   :  { %v6158_v52 = vpop.f32.mrf.mxu1 }
 0x700   :  { %v6204_v50 = vpack.c.bf16 %v6158_v52, %v6154_v62 }
 0x701   :  { %v6160_v53 = vpop.f32.mrf.mxu1 }
 0x702   :  { %v6205_v2 = vpack.c.bf16 %v6160_v53, %v6156_v3 }
 0x704   :  { %7983 = vmatpush3.bf16.xpose.msra.mxu1 %v6205_v2 }
 0x705   :  { %7988 = vmatprep.subr.bf16.mxu1 %v8357_v15 }
 0x70b   :  { %7985 = vmatmul.mubr.bf16.vlgmr.msra.gmra.mxu1 %v6204_v50 }
 0x70c   :  { %7990 = vmatprep.mubr.msk.bf16.mxu1 %vm8358_vm0, %v8357_v15 }
 0x71b   :  { %v6197_v8 = vpop.f32.mrf.mxu1 }
 0x71d   :  { %v7980_v19 = vpop.f32.mrf.mxu1 }
 0x71f   :  { %v6200_v36 = vpop.f32.mrf.mxu1 }
 0x720   :  { %v6271_v23 = vpack.c.bf16 %v6200_v36, %v6197_v8 }
 0x721   :  { %v7981_v60 = vpop.f32.mrf.mxu1 }
 0x722   :  { %7989 = vmatpush3.bf16.msra.mxu1 %v6271_v23 }
 0x723   :  { %7994 = vmatprep.subr.bf16.mxu1 %v8357_v15 }
 0x7cb   :  { %v6240_v18 = vpop.f32.mrf.mxu1 }
 0x7cc   :  { %v6248_v37 = vsel %vm6247_vm1, %v6240_v18, -inf }
 0x7cd   :  { %6249 = vmax.xlane.f32.xlu0 %v6248_v37  ;;  %v7986_v57 = vpop.f32.mrf.mxu1 }
 0x7cf   :  { %v6243_v22 = vpop.f32.mrf.mxu1 }
 0x7d0   :  { %v6251_v59 = vsel %vm6247_vm1, %v6243_v22, -inf }
 0x7d1   :  { %6252 = vmax.xlane.f32.xlu0 %v6251_v59  ;;  %v7987_v45 = vpop.f32.mrf.mxu1 }
 0x856   :  { %v6250_v43 = vpop.xlane.xlu0 %6249 }
 0x857   :  { %v6254_v17 = vsub.f32 %v6240_v18, %v6250_v43 }
 0x859   :  { %v6256_v27 = vmul.f32 1.442695, %v6254_v17 }
 0x85a   :  { %v6253_v5 = vpop.xlane.xlu0 %6252 }
 0x85b   :  { %8345 = vpow2.f32 %v6256_v27  ;;  %v6255_v26 = vsub.f32 %v6243_v22, %v6253_v5 }
 0x85d   :  { %v6258_v9 = vmul.f32 1.442695, %v6255_v26 }
 0x85f   :  { %8347 = vpow2.f32 %v6258_v9 }
 0x868   :  { %v8346_v49 = vpop.eup %8345 }
 0x869   :  { %v6260_v61 = vsel %vm6247_vm1, %v8346_v49, 0.0 }
 0x86a   :  { %6261 = vadd.xlane.f32.xlu1 %v6260_v61 }
 0x86c   :  { %v8348_v24 = vpop.eup %8347 }
 0x86d   :  { %v6263_v4 = vsel %vm6247_vm1, %v8348_v24, 0.0 }
 0x86e   :  { %6264 = vadd.xlane.f32.xlu1 %v6263_v4 }
 0x8f3   :  { %v6262_v48 = vpop.xlane.xlu1 %6261 }
 0x8f4   :  { %8349 = vrcp.f32 %v6262_v48 }
 0x8f7   :  { %v6265_v10 = vpop.xlane.xlu1 %6264 }
 0x8f8   :  { %8351 = vrcp.f32 %v6265_v10 }
 0x901   :  { %v8350_v55 = vpop.eup %8349 }
 0x902   :  { %v6268_v11 = vmul.f32 %v8350_v55, %v8346_v49 }
 0x905   :  { %v8352_v33 = vpop.eup %8351 }
 0x906   :  { %v6269_v14 = vmul.f32 %v8352_v33, %v8348_v24 }
 0x908   :  { %v6270_v54 = vpack.c.bf16 %v6269_v14, %v6268_v11 }
 0x90a   :  { %7991 = vmatmul.mubr.msk.bf16.vlgmr.msra.gmra.mxu1 %vm6247_vm1, %v6270_v54 }
 0x90b   :  { %7995 = vmatpush3.bf16.msra.mxu1 %v8337_v1  ;;  %8010 = vmatprep.mubr.msk.bf16.mxu1 %vm8358_vm0, %v8357_v15 }
 0x90c   :  { %7996 = vmatprep.subr.bf16.mxu1 %v8357_v15 }
 0x90f   :  { %7997 = vmatpush3.bf16.msra.mxu1 %v8338_v20 }
 0x910   :  { %7998 = vmatprep.subr.bf16.mxu1 %v8357_v15 }
 0x913   :  { %7999 = vmatpush3.bf16.msra.mxu1 %v8339_v42 }
 0x914   :  { %8000 = vmatprep.subr.bf16.mxu1 %v8357_v15 }
 0x917   :  { %8001 = vmatpush3.bf16.msra.mxu1 %v8340_v30 }
 0x918   :  { %8002 = vmatprep.subr.bf16.mxu1 %v8357_v15 }
 0x91b   :  { %8003 = vmatpush3.bf16.msra.mxu1 %v8341_v25 }
 0x91c   :  { %8004 = vmatprep.subr.bf16.mxu1 %v8357_v15 }
 0x91f   :  { %8005 = vmatpush3.bf16.msra.mxu1 %v8342_v47 }
 0x920   :  { %8006 = vmatprep.subr.bf16.mxu1 %v8357_v15 }
 0x923   :  { %8007 = vmatpush3.bf16.msra.mxu1 %v8343_v28 }
 0x924   :  { %8008 = vmatprep.subr.bf16.mxu1 %v8357_v15 }
 0x927   :  { %8009 = vmatpush3.bf16.msra.mxu1 %v8344_v29 }
 0x9ca   :  { %v6309_v51 = vpop.f32.mrf.mxu1 }
 0x9cc   :  { %v7992_v41 = vpop.f32.mrf.mxu1 }
 0x9ce   :  { %v6312_v46 = vpop.f32.mrf.mxu1 }
 0x9cf   :  { %v6316_v40 = vpack.c.bf16 %v6312_v46, %v6309_v51 }
 0x9d0   :  { %v7993_v35 = vpop.f32.mrf.mxu1 }
 0x9d1   :  { %8011 = vmatmul.mubr.bf16.vlgmr.msra.gmra.mxu1 %v6316_v40 }
 0xa91   :  { %v6415_v39 = vpop.f32.mrf.mxu1 }
 0xa92   :  { %v6416_v32 = vadd.f32 %v6415_v39, %v10932_v0 }
 0xa93   :  { %v8012_v16 = vpop.f32.mrf.mxu1 }
 0xa94   :  { %6422 = vst [vmem:[%s11032_s8] sm:$0xff] %v6416_v32 }
 0xa95   :  { %v6418_v15 = vpop.f32.mrf.mxu1 }
 0xa96   :  { %v6419_v34 = vadd.f32 %v6418_v15, %v10934_v56 }
 0xa97   :  { %v8013_v63 = vpop.f32.mrf.mxu1 }
 0xa98   :  { %6423 = vst [vmem:[%s11032_s8 + $0x8] sm:$0xff] %v6419_v34 }

</bundles_post_ra>
